<compile_context>
chip_gen: v7x
topology: tpu7x:2x2x1
jax: 0.10.0
libtpu: 0.0.40
codegen_flags: <defaults>
</compile_context>

<pallas_src>
import functools

import jax
import jax.numpy as jnp
from jax import lax
from jax.experimental import pallas as pl
from jax.experimental.pallas import tpu as pltpu

IGNORE_INDEX = -100
MAX_TILE_HW = 32768                   # lanes (pixels) per grid step; mult of 128
VMEM_TILE_BUDGET = 8 * 1024 * 1024    # bytes of blocks+scratch allowed per step


def _ce_kernel(logits_ref, tgt_ref, sum_ref, cnt_ref, acc_sum, acc_cnt,
               *, hw, padded):
    """One (1, C, T) logits tile + (1, 1, T) int32 target tile.

    Accumulates masked -log p[target] and valid-pixel count into lane-dense
    per-batch VMEM accumulators; cross-lane reduce + per-batch partial store
    happens only on the last pixel tile of each batch.
    """
    j = pl.program_id(1)

    @pl.when(j == 0)
    def _init():
        acc_sum[...] = jnp.zeros_like(acc_sum)
        acc_cnt[...] = jnp.zeros_like(acc_cnt)

    x = logits_ref[0].astype(jnp.float32)      # (C, T) -- pixels on lanes
    t = tgt_ref[0]                             # (1, T) int32
    C, T = x.shape

    valid = t != IGNORE_INDEX                  # (1, T)
    if padded:
        # Mask the tail of the (single / last) partial pixel tile.  NaN-safe:
        # zero the garbage logits BEFORE the logsumexp.  This whole block is
        # statically skipped when hw is an exact multiple of T.
        col = j * T + lax.broadcasted_iota(jnp.int32, (1, T), 1)
        in_range = col < hw
        x = jnp.where(in_range, x, 0.0)
        valid = jnp.logical_and(valid, in_range)

    # log-softmax denominator over the small class axis (sublane reduce).
    m = jnp.max(x, axis=0, keepdims=True)                               # (1,T)
    lse = jnp.log(jnp.sum(jnp.exp(x - m), axis=0, keepdims=True)) + m   # (1,T)

    # Logit at the target class: statically unrolled select over the C rows.
    picked = jnp.zeros((1, T), jnp.float32)
    for c in range(C):
        picked = picked + jnp.where(t == c, x[c:c + 1, :], 0.0)

    acc_sum[...] += jnp.where(valid, lse - picked, 0.0)
    acc_cnt[...] += valid.astype(jnp.float32)

    @pl.when(j == pl.num_programs(1) - 1)
    def _fin():
        sum_ref[...] = jnp.full(sum_ref.shape, jnp.sum(acc_sum[...]),
                                jnp.float32)
        cnt_ref[...] = jnp.full(cnt_ref.shape, jnp.sum(acc_cnt[...]),
                                jnp.float32)


def _round_up(x, m):
    return ((x + m - 1) // m) * m


def _ce_sum_count(logits_bchw, target_bhw):
    """(sum of -log p[target] over valid pixels, number of valid pixels)."""
    B, C, h, w = logits_bchw.shape
    hw = h * w
    logits = logits_bchw.reshape(B, C, hw)             # free reshape, no copy
    tgt = target_bhw.reshape(B, 1, hw).astype(jnp.int32)

    # 128-aligned pixel tile, as large as the VMEM budget allows (fewer grid
    # steps + longer contiguous HBM reads); the partial tail is masked
    # in-kernel instead of padding the logits in HBM.
    cpad = _round_up(C, 8)
    per_lane_bytes = (2 * cpad * logits.dtype.itemsize   # dbl-buffered logits
                      + 2 * 4                            # dbl-buffered i32 tgt
                      + 2 * 4)                           # f32 accumulators
    t_cap = max(128, (VMEM_TILE_BUDGET // per_lane_bytes) // 128 * 128)
    T = min(_round_up(hw, 128), MAX_TILE_HW, t_cap)
    n_tiles = pl.cdiv(hw, T)
    padded = (n_tiles * T != hw)

    kernel = functools.partial(_ce_kernel, hw=hw, padded=padded)
    # TODO(synk): if a profile still shows exposed DMA for many-tile scales,
    # add pipeline_mode=pl.Buffered(3) on the logits BlockSpec.
    sum_out, cnt_out = pl.pallas_call(
        kernel,
        out_shape=(jax.ShapeDtypeStruct((B, 1, 128), jnp.float32),
                   jax.ShapeDtypeStruct((B, 1, 128), jnp.float32)),
        grid_spec=pltpu.PrefetchScalarGridSpec(
            num_scalar_prefetch=0,
            grid=(B, n_tiles),
            in_specs=[pl.BlockSpec((1, C, T), lambda b, j: (b, 0, j)),
                      pl.BlockSpec((1, 1, T), lambda b, j: (b, 0, j))],
            out_specs=(pl.BlockSpec((1, 1, 128), lambda b, j: (b, 0, 0)),
                       pl.BlockSpec((1, 1, 128), lambda b, j: (b, 0, 0))),
            scratch_shapes=[pltpu.VMEM((1, T), jnp.float32),
                            pltpu.VMEM((1, T), jnp.float32)],
        ),
        compiler_params=pltpu.CompilerParams(
            # Batch axis is independent (per-batch partial outputs + per-batch
            # accumulator reset at j==0) -> 'parallel' lets v7x split it over
            # its 2 TensorCores; pixel axis feeds the resident accumulator.
            dimension_semantics=("parallel", "arbitrary"),
            # Explicit limit: generous vs the <~8 MiB working set, safe on all
            # of v5e (16 MiB scoped default) .. v7x (64 MiB physical VMEM).
            vmem_limit_bytes=32 * 1024 * 1024),
    )(logits, tgt)
    # Sum the per-batch partials (lane 0 of each per-batch output row).
    return jnp.sum(sum_out[:, 0, 0]), jnp.sum(cnt_out[:, 0, 0])


def _nearest_resize_target(target, h, w):
    """Match F.interpolate(target.unsqueeze(1).float(), size=(h, w)) (mode='nearest')."""
    B, Ht, Wt = target.shape
    rows = jnp.minimum((jnp.arange(h) * Ht) // h, Ht - 1)
    cols = jnp.minimum((jnp.arange(w) * Wt) // w, Wt - 1)
    return target[:, rows[:, None], cols[None, :]]


def _msc_cross_entropy_loss(inputs, target):
    """MscCrossEntropyLoss.forward: weight=None, ignore_index=-100, reduction='mean'."""
    if not isinstance(inputs, (tuple, list)):
        inputs = (inputs,)
    loss = jnp.float32(0.0)
    for item in inputs:
        _, _, h, w = item.shape
        t = _nearest_resize_target(target, h, w)        # (B, h, w) int
        s, c = _ce_sum_count(item, t)
        # NOTE: matches PyTorch -- a scale with zero valid pixels yields NaN.
        loss = loss + s / c                             # reduction='mean'
    return loss / len(inputs)


# One dispatch for the whole multi-scale loop: the nearest resizes, every
# per-scale pallas_call and the final reductions are traced into one program.
msc_cross_entropy_loss = jax.jit(_msc_cross_entropy_loss)


def _reference_loss(inputs, target):
    """Pure-JAX reference for validation."""
    if not isinstance(inputs, (tuple, list)):
        inputs = (inputs,)
    total = 0.0
    for item in inputs:
        B, C, h, w = item.shape
        t = _nearest_resize_target(target, h, w).reshape(-1)
        logits = jnp.transpose(item, (0, 2, 3, 1)).reshape(-1, C).astype(jnp.float32)
        logp = jax.nn.log_softmax(logits, axis=-1)
        valid = t != IGNORE_INDEX
        safe_t = jnp.where(valid, t, 0)
        nll = -jnp.take_along_axis(logp, safe_t[:, None], axis=1)[:, 0]
        nll = jnp.where(valid, nll, 0.0)
        total = total + nll.sum() / valid.sum()
    return total / len(inputs)


if __name__ == "__main__":
    key = jax.random.PRNGKey(0)
    k1, k2, k3, k4, k5 = jax.random.split(key, 5)

    B, C = 2, 4
    # Multi-scale logits tuple (as produced by a multi-output segmentation net).
    # 16x16: exact 128-multiple tile (unpadded static path).
    # 8x8  : single padded tile (hw=64 < 128).
    # 68x68: hw=4624 -> one 4736-lane padded tile (no wasteful tail step).
    logits_a = jax.random.normal(k1, (B, C, 16, 16), dtype=jnp.float32)
    logits_b = jax.random.normal(k2, (B, C, 8, 8), dtype=jnp.float32)
    logits_c = jax.random.normal(k5, (B, C, 68, 68), dtype=jnp.float32)
    # Integer class target at full resolution, with some ignore_index pixels.
    target = jax.random.randint(k3, (B, 16, 16), 0, C, dtype=jnp.int32)
    ignore_mask = jax.random.uniform(k4, (B, 16, 16)) < 0.1
    target = jnp.where(ignore_mask, IGNORE_INDEX, target)

    loss = msc_cross_entropy_loss((logits_a, logits_b, logits_c), target)
    loss = jax.block_until_ready(loss)

    ref = jax.block_until_ready(
        _reference_loss((logits_a, logits_b, logits_c), target))
    assert jnp.allclose(loss, ref, rtol=1e-5, atol=1e-5), (loss, ref)

    print("KERNEL_OK")
</pallas_src>

<mosaic_0001>
module attributes {stable_mosaic.version = 11 : i64} {
  func.func @_ce_kernel(%arg0: i32, %arg1: i32, %arg2: memref<1x4x128xf32, #tpu.memory_space<vmem>>, %arg3: memref<1x1x128xi32, #tpu.memory_space<vmem>>, %arg4: memref<1x1x128xf32, #tpu.memory_space<vmem>>, %arg5: memref<1x1x128xf32, #tpu.memory_space<vmem>>, %arg6: memref<1x128xf32, #tpu.memory_space<vmem>>, %arg7: memref<1x128xf32, #tpu.memory_space<vmem>>) attributes {dimension_semantics = [#tpu.dimension_semantics<parallel>, #tpu.dimension_semantics<arbitrary>], iteration_bounds = array<i64: 2, 1>, scalar_prefetch = 0 : i64, scratch_operands = 2 : i64, tpu.core_type = #tpu.core_type<tc>, window_params = [{transform_indices = @transform_0, window_bounds = array<i64: 1, 4, 128>}, {transform_indices = @transform_1, window_bounds = array<i64: 1, 1, 128>}, {transform_indices = @transform_2, window_bounds = array<i64: 1, 1, 128>}, {transform_indices = @transform_3, window_bounds = array<i64: 1, 1, 128>}]} {
    %c0_i32 = arith.constant 0 : i32
    %0 = arith.cmpi eq, %arg1, %c0_i32 : i32
    %1 = arith.extui %0 : i1 to i32
    %c0_i32_0 = arith.constant 0 : i32
    %2 = arith.cmpi ne, %1, %c0_i32_0 : i32
    scf.if %2 {
      %cst_25 = arith.constant 0.000000e+00 : f32
      %68 = vector.broadcast %cst_25 : f32 to vector<1x128xf32>
      %c0_26 = arith.constant 0 : index
      %c0_27 = arith.constant 0 : index
      %69 = vector.load %arg6[%c0_26, %c0_27] : memref<1x128xf32, #tpu.memory_space<vmem>>, vector<1x128xf32>
      tpu.vector_store %arg6[%c0_26, %c0_27], %68 {strides = array<i32>} : memref<1x128xf32, #tpu.memory_space<vmem>>, vector<1x128xf32>,
      %cst_28 = arith.constant 0.000000e+00 : f32
      %70 = vector.broadcast %cst_28 : f32 to vector<1x128xf32>
      %c0_29 = arith.constant 0 : index
      %c0_30 = arith.constant 0 : index
      %71 = vector.load %arg7[%c0_29, %c0_30] : memref<1x128xf32, #tpu.memory_space<vmem>>, vector<1x128xf32>
      tpu.vector_store %arg7[%c0_29, %c0_30], %70 {strides = array<i32>} : memref<1x128xf32, #tpu.memory_space<vmem>>, vector<1x128xf32>,
    } else {
    }
    %c0 = arith.constant 0 : index
    %c0_1 = arith.constant 0 : index
    %c0_2 = arith.constant 0 : index
    %3 = vector.load %arg2[%c0, %c0_1, %c0_2] : memref<1x4x128xf32, #tpu.memory_space<vmem>>, vector<1x4x128xf32>
    %4 = vector.shape_cast %3 : vector<1x4x128xf32> to vector<4x128xf32>
    %c0_3 = arith.constant 0 : index
    %c0_4 = arith.constant 0 : index
    %c0_5 = arith.constant 0 : index
    %5 = vector.load %arg3[%c0_3, %c0_4, %c0_5] : memref<1x1x128xi32, #tpu.memory_space<vmem>>, vector<1x1x128xi32>
    %6 = vector.shape_cast %5 : vector<1x1x128xi32> to vector<1x128xi32>
    %c-100_i32 = arith.constant -100 : i32
    %7 = vector.broadcast %c-100_i32 : i32 to vector<1x128xi32>
    %8 = arith.cmpi ne, %6, %7 : vector<1x128xi32>
    %c128_i32 = arith.constant 128 : i32
    %9 = arith.muli %arg1, %c128_i32 : i32
    %10 = tpu.iota {dimensions = array<i32: 1>} : vector<1x128xi32>
    %11 = vector.broadcast %9 : i32 to vector<1x128xi32>
    %12 = arith.addi %11, %10 : vector<1x128xi32>
    %c64_i32 = arith.constant 64 : i32
    %13 = vector.broadcast %c64_i32 : i32 to vector<1x128xi32>
    %14 = arith.cmpi slt, %12, %13 : vector<1x128xi32>
    %cst = arith.constant 0.000000e+00 : f32
    %15 = vector.shape_cast %14 : vector<1x128xi1> to vector<1x128xi1>
    %16 = vector.broadcast %15 : vector<1x128xi1> to vector<4x128xi1>
    %17 = vector.broadcast %cst : f32 to vector<4x128xf32>
    %18 = arith.select %16, %4, %17 : vector<4x128xi1>, vector<4x128xf32>
    %19 = arith.andi %8, %14 : vector<1x128xi1>
    %cst_6 = arith.constant dense<0xFF800000> : vector<128xf32>
    %20 = vector.multi_reduction <maximumf>, %18, %cst_6 [0] : vector<4x128xf32> to vector<128xf32>
    %21 = vector.shape_cast %20 : vector<128xf32> to vector<1x128xf32>
    %22 = vector.broadcast %21 : vector<1x128xf32> to vector<4x128xf32>
    %23 = arith.subf %18, %22 : vector<4x128xf32>
    %24 = math.exp %23 : vector<4x128xf32>
    %cst_7 = arith.constant dense<0.000000e+00> : vector<128xf32>
    %25 = vector.multi_reduction <add>, %24, %cst_7 [0] : vector<4x128xf32> to vector<128xf32>
    %26 = vector.shape_cast %25 : vector<128xf32> to vector<1x128xf32>
    %27 = math.log %26 : vector<1x128xf32>
    %28 = arith.addf %27, %21 : vector<1x128xf32>
    %cst_8 = arith.constant 0.000000e+00 : f32
    %29 = vector.broadcast %cst_8 : f32 to vector<1x128xf32>
    %c0_i32_9 = arith.constant 0 : i32
    %30 = vector.broadcast %c0_i32_9 : i32 to vector<1x128xi32>
    %31 = arith.cmpi eq, %6, %30 : vector<1x128xi32>
    %32 = vector.extract_strided_slice %18 {offsets = [0, 0], sizes = [1, 128], strides = [1, 1]} : vector<4x128xf32> to vector<1x128xf32>
    %cst_10 = arith.constant 0.000000e+00 : f32
    %33 = vector.broadcast %cst_10 : f32 to vector<1x128xf32>
    %34 = arith.select %31, %32, %33 : vector<1x128xi1>, vector<1x128xf32>
    %35 = arith.addf %29, %34 : vector<1x128xf32>
    %c1_i32 = arith.constant 1 : i32
    %36 = vector.broadcast %c1_i32 : i32 to vector<1x128xi32>
    %37 = arith.cmpi eq, %6, %36 : vector<1x128xi32>
    %38 = vector.extract_strided_slice %18 {offsets = [1, 0], sizes = [1, 128], strides = [1, 1]} : vector<4x128xf32> to vector<1x128xf32>
    %cst_11 = arith.constant 0.000000e+00 : f32
    %39 = vector.broadcast %cst_11 : f32 to vector<1x128xf32>
    %40 = arith.select %37, %38, %39 : vector<1x128xi1>, vector<1x128xf32>
    %41 = arith.addf %35, %40 : vector<1x128xf32>
    %c2_i32 = arith.constant 2 : i32
    %42 = vector.broadcast %c2_i32 : i32 to vector<1x128xi32>
    %43 = arith.cmpi eq, %6, %42 : vector<1x128xi32>
    %44 = vector.extract_strided_slice %18 {offsets = [2, 0], sizes = [1, 128], strides = [1, 1]} : vector<4x128xf32> to vector<1x128xf32>
    %cst_12 = arith.constant 0.000000e+00 : f32
    %45 = vector.broadcast %cst_12 : f32 to vector<1x128xf32>
    %46 = arith.select %43, %44, %45 : vector<1x128xi1>, vector<1x128xf32>
    %47 = arith.addf %41, %46 : vector<1x128xf32>
    %c3_i32 = arith.constant 3 : i32
    %48 = vector.broadcast %c3_i32 : i32 to vector<1x128xi32>
    %49 = arith.cmpi eq, %6, %48 : vector<1x128xi32>
    %50 = vector.extract_strided_slice %18 {offsets = [3, 0], sizes = [1, 128], strides = [1, 1]} : vector<4x128xf32> to vector<1x128xf32>
    %cst_13 = arith.constant 0.000000e+00 : f32
    %51 = vector.broadcast %cst_13 : f32 to vector<1x128xf32>
    %52 = arith.select %49, %50, %51 : vector<1x128xi1>, vector<1x128xf32>
    %53 = arith.addf %47, %52 : vector<1x128xf32>
    %c0_14 = arith.constant 0 : index
    %c0_15 = arith.constant 0 : index
    %54 = vector.load %arg6[%c0_14, %c0_15] : memref<1x128xf32, #tpu.memory_space<vmem>>, vector<1x128xf32>
    %55 = arith.subf %28, %53 : vector<1x128xf32>
    %cst_16 = arith.constant 0.000000e+00 : f32
    %56 = vector.broadcast %cst_16 : f32 to vector<1x128xf32>
    %57 = arith.select %19, %55, %56 : vector<1x128xi1>, vector<1x128xf32>
    %58 = arith.addf %54, %57 : vector<1x128xf32>
    %c0_17 = arith.constant 0 : index
    %c0_18 = arith.constant 0 : index
    %59 = vector.load %arg6[%c0_17, %c0_18] : memref<1x128xf32, #tpu.memory_space<vmem>>, vector<1x128xf32>
    tpu.vector_store %arg6[%c0_17, %c0_18], %58 {strides = array<i32>} : memref<1x128xf32, #tpu.memory_space<vmem>>, vector<1x128xf32>,
    %c0_19 = arith.constant 0 : index
    %c0_20 = arith.constant 0 : index
    %60 = vector.load %arg7[%c0_19, %c0_20] : memref<1x128xf32, #tpu.memory_space<vmem>>, vector<1x128xf32>
    %61 = arith.extui %19 : vector<1x128xi1> to vector<1x128xi32>
    %62 = arith.sitofp %61 : vector<1x128xi32> to vector<1x128xf32>
    %63 = arith.addf %60, %62 : vector<1x128xf32>
    %c0_21 = arith.constant 0 : index
    %c0_22 = arith.constant 0 : index
    %64 = vector.load %arg7[%c0_21, %c0_22] : memref<1x128xf32, #tpu.memory_space<vmem>>, vector<1x128xf32>
    tpu.vector_store %arg7[%c0_21, %c0_22], %63 {strides = array<i32>} : memref<1x128xf32, #tpu.memory_space<vmem>>, vector<1x128xf32>,
    %c0_i32_23 = arith.constant 0 : i32
    %65 = arith.cmpi eq, %arg1, %c0_i32_23 : i32
    %66 = arith.extui %65 : i1 to i32
    %c0_i32_24 = arith.constant 0 : i32
    %67 = arith.cmpi ne, %66, %c0_i32_24 : i32
    scf.if %67 {
      %c0_25 = arith.constant 0 : index
      %c0_26 = arith.constant 0 : index
      %68 = vector.load %arg6[%c0_25, %c0_26] : memref<1x128xf32, #tpu.memory_space<vmem>>, vector<1x128xf32>
      %69 = vector.shape_cast %68 : vector<1x128xf32> to vector<1x1x128xf32>
      %cst_27 = arith.constant dense<0.000000e+00> : vector<1xf32>
      %70 = vector.multi_reduction <add>, %69, %cst_27 [1, 2] : vector<1x1x128xf32> to vector<1xf32>
      %71 = vector.shape_cast %70 : vector<1xf32> to vector<1x1x1xf32>
      %72 = vector.extract %71[0, 0, 0] : f32 from vector<1x1x1xf32>
      %73 = vector.broadcast %72 : f32 to vector<1x1x128xf32>
      %c0_28 = arith.constant 0 : index
      %c0_29 = arith.constant 0 : index
      %c0_30 = arith.constant 0 : index
      %74 = vector.load %arg4[%c0_28, %c0_29, %c0_30] : memref<1x1x128xf32, #tpu.memory_space<vmem>>, vector<1x1x128xf32>
      tpu.vector_store %arg4[%c0_28, %c0_29, %c0_30], %73 {strides = array<i32>} : memref<1x1x128xf32, #tpu.memory_space<vmem>>, vector<1x1x128xf32>,
      %c0_31 = arith.constant 0 : index
      %c0_32 = arith.constant 0 : index
      %75 = vector.load %arg7[%c0_31, %c0_32] : memref<1x128xf32, #tpu.memory_space<vmem>>, vector<1x128xf32>
      %76 = vector.shape_cast %75 : vector<1x128xf32> to vector<1x1x128xf32>
      %cst_33 = arith.constant dense<0.000000e+00> : vector<1xf32>
      %77 = vector.multi_reduction <add>, %76, %cst_33 [1, 2] : vector<1x1x128xf32> to vector<1xf32>
      %78 = vector.shape_cast %77 : vector<1xf32> to vector<1x1x1xf32>
      %79 = vector.extract %78[0, 0, 0] : f32 from vector<1x1x1xf32>
      %80 = vector.broadcast %79 : f32 to vector<1x1x128xf32>
      %c0_34 = arith.constant 0 : index
      %c0_35 = arith.constant 0 : index
      %c0_36 = arith.constant 0 : index
      %81 = vector.load %arg5[%c0_34, %c0_35, %c0_36] : memref<1x1x128xf32, #tpu.memory_space<vmem>>, vector<1x1x128xf32>
      tpu.vector_store %arg5[%c0_34, %c0_35, %c0_36], %80 {strides = array<i32>} : memref<1x1x128xf32, #tpu.memory_space<vmem>>, vector<1x1x128xf32>,
    } else {
    }
    return
  }
  func.func @transform_0(%arg0: i32, %arg1: i32) -> (i32, i32, i32) {
    %c0_i32 = arith.constant 0 : i32
    %c0_i32_0 = arith.constant 0 : i32
    return %arg0, %c0_i32, %arg1 : i32, i32, i32
  }
  func.func @transform_1(%arg0: i32, %arg1: i32) -> (i32, i32, i32) {
    %c0_i32 = arith.constant 0 : i32
    %c0_i32_0 = arith.constant 0 : i32
    return %arg0, %c0_i32, %arg1 : i32, i32, i32
  }
  func.func @transform_2(%arg0: i32, %arg1: i32) -> (i32, i32, i32) {
    %c0_i32 = arith.constant 0 : i32
    %c0_i32_0 = arith.constant 0 : i32
    %c0_i32_1 = arith.constant 0 : i32
    return %arg0, %c0_i32, %c0_i32_0 : i32, i32, i32
  }
  func.func @transform_3(%arg0: i32, %arg1: i32) -> (i32, i32, i32) {
    %c0_i32 = arith.constant 0 : i32
    %c0_i32_0 = arith.constant 0 : i32
    %c0_i32_1 = arith.constant 0 : i32
    return %arg0, %c0_i32, %c0_i32_0 : i32, i32, i32
  }
}

module attributes {stable_mosaic.version = 11 : i64} {
  func.func @_ce_kernel(%arg0: i32, %arg1: i32, %arg2: memref<1x4x256xf32, #tpu.memory_space<vmem>>, %arg3: memref<1x1x256xi32, #tpu.memory_space<vmem>>, %arg4: memref<1x1x128xf32, #tpu.memory_space<vmem>>, %arg5: memref<1x1x128xf32, #tpu.memory_space<vmem>>, %arg6: memref<1x256xf32, #tpu.memory_space<vmem>>, %arg7: memref<1x256xf32, #tpu.memory_space<vmem>>) attributes {dimension_semantics = [#tpu.dimension_semantics<parallel>, #tpu.dimension_semantics<arbitrary>], iteration_bounds = array<i64: 2, 1>, scalar_prefetch = 0 : i64, scratch_operands = 2 : i64, tpu.core_type = #tpu.core_type<tc>, window_params = [{transform_indices = @transform_0, window_bounds = array<i64: 1, 4, 256>}, {transform_indices = @transform_1, window_bounds = array<i64: 1, 1, 256>}, {transform_indices = @transform_2, window_bounds = array<i64: 1, 1, 128>}, {transform_indices = @transform_3, window_bounds = array<i64: 1, 1, 128>}]} {
    %c0_i32 = arith.constant 0 : i32
    %0 = arith.cmpi eq, %arg1, %c0_i32 : i32
    %1 = arith.extui %0 : i1 to i32
    %c0_i32_0 = arith.constant 0 : i32
    %2 = arith.cmpi ne, %1, %c0_i32_0 : i32
    scf.if %2 {
      %cst_24 = arith.constant 0.000000e+00 : f32
      %57 = vector.broadcast %cst_24 : f32 to vector<1x256xf32>
      %c0_25 = arith.constant 0 : index
      %c0_26 = arith.constant 0 : index
      %58 = vector.load %arg6[%c0_25, %c0_26] : memref<1x256xf32, #tpu.memory_space<vmem>>, vector<1x256xf32>
      tpu.vector_store %arg6[%c0_25, %c0_26], %57 {strides = array<i32>} : memref<1x256xf32, #tpu.memory_space<vmem>>, vector<1x256xf32>,
      %cst_27 = arith.constant 0.000000e+00 : f32
      %59 = vector.broadcast %cst_27 : f32 to vector<1x256xf32>
      %c0_28 = arith.constant 0 : index
      %c0_29 = arith.constant 0 : index
      %60 = vector.load %arg7[%c0_28, %c0_29] : memref<1x256xf32, #tpu.memory_space<vmem>>, vector<1x256xf32>
      tpu.vector_store %arg7[%c0_28, %c0_29], %59 {strides = array<i32>} : memref<1x256xf32, #tpu.memory_space<vmem>>, vector<1x256xf32>,
    } else {
    }
    %c0 = arith.constant 0 : index
    %c0_1 = arith.constant 0 : index
    %c0_2 = arith.constant 0 : index
    %3 = vector.load %arg2[%c0, %c0_1, %c0_2] : memref<1x4x256xf32, #tpu.memory_space<vmem>>, vector<1x4x256xf32>
    %4 = vector.shape_cast %3 : vector<1x4x256xf32> to vector<4x256xf32>
    %c0_3 = arith.constant 0 : index
    %c0_4 = arith.constant 0 : index
    %c0_5 = arith.constant 0 : index
    %5 = vector.load %arg3[%c0_3, %c0_4, %c0_5] : memref<1x1x256xi32, #tpu.memory_space<vmem>>, vector<1x1x256xi32>
    %6 = vector.shape_cast %5 : vector<1x1x256xi32> to vector<1x256xi32>
    %c-100_i32 = arith.constant -100 : i32
    %7 = vector.broadcast %c-100_i32 : i32 to vector<1x256xi32>
    %8 = arith.cmpi ne, %6, %7 : vector<1x256xi32>
    %cst = arith.constant dense<0xFF800000> : vector<256xf32>
    %9 = vector.multi_reduction <maximumf>, %4, %cst [0] : vector<4x256xf32> to vector<256xf32>
    %10 = vector.shape_cast %9 : vector<256xf32> to vector<1x256xf32>
    %11 = vector.broadcast %10 : vector<1x256xf32> to vector<4x256xf32>
    %12 = arith.subf %4, %11 : vector<4x256xf32>
    %13 = math.exp %12 : vector<4x256xf32>
    %cst_6 = arith.constant dense<0.000000e+00> : vector<256xf32>
    %14 = vector.multi_reduction <add>, %13, %cst_6 [0] : vector<4x256xf32> to vector<256xf32>
    %15 = vector.shape_cast %14 : vector<256xf32> to vector<1x256xf32>
    %16 = math.log %15 : vector<1x256xf32>
    %17 = arith.addf %16, %10 : vector<1x256xf32>
    %cst_7 = arith.constant 0.000000e+00 : f32
    %18 = vector.broadcast %cst_7 : f32 to vector<1x256xf32>
    %c0_i32_8 = arith.constant 0 : i32
    %19 = vector.broadcast %c0_i32_8 : i32 to vector<1x256xi32>
    %20 = arith.cmpi eq, %6, %19 : vector<1x256xi32>
    %21 = vector.extract_strided_slice %4 {offsets = [0, 0], sizes = [1, 256], strides = [1, 1]} : vector<4x256xf32> to vector<1x256xf32>
    %cst_9 = arith.constant 0.000000e+00 : f32
    %22 = vector.broadcast %cst_9 : f32 to vector<1x256xf32>
    %23 = arith.select %20, %21, %22 : vector<1x256xi1>, vector<1x256xf32>
    %24 = arith.addf %18, %23 : vector<1x256xf32>
    %c1_i32 = arith.constant 1 : i32
    %25 = vector.broadcast %c1_i32 : i32 to vector<1x256xi32>
    %26 = arith.cmpi eq, %6, %25 : vector<1x256xi32>
    %27 = vector.extract_strided_slice %4 {offsets = [1, 0], sizes = [1, 256], strides = [1, 1]} : vector<4x256xf32> to vector<1x256xf32>
    %cst_10 = arith.constant 0.000000e+00 : f32
    %28 = vector.broadcast %cst_10 : f32 to vector<1x256xf32>
    %29 = arith.select %26, %27, %28 : vector<1x256xi1>, vector<1x256xf32>
    %30 = arith.addf %24, %29 : vector<1x256xf32>
    %c2_i32 = arith.constant 2 : i32
    %31 = vector.broadcast %c2_i32 : i32 to vector<1x256xi32>
    %32 = arith.cmpi eq, %6, %31 : vector<1x256xi32>
    %33 = vector.extract_strided_slice %4 {offsets = [2, 0], sizes = [1, 256], strides = [1, 1]} : vector<4x256xf32> to vector<1x256xf32>
    %cst_11 = arith.constant 0.000000e+00 : f32
    %34 = vector.broadcast %cst_11 : f32 to vector<1x256xf32>
    %35 = arith.select %32, %33, %34 : vector<1x256xi1>, vector<1x256xf32>
    %36 = arith.addf %30, %35 : vector<1x256xf32>
    %c3_i32 = arith.constant 3 : i32
    %37 = vector.broadcast %c3_i32 : i32 to vector<1x256xi32>
    %38 = arith.cmpi eq, %6, %37 : vector<1x256xi32>
    %39 = vector.extract_strided_slice %4 {offsets = [3, 0], sizes = [1, 256], strides = [1, 1]} : vector<4x256xf32> to vector<1x256xf32>
    %cst_12 = arith.constant 0.000000e+00 : f32
    %40 = vector.broadcast %cst_12 : f32 to vector<1x256xf32>
    %41 = arith.select %38, %39, %40 : vector<1x256xi1>, vector<1x256xf32>
    %42 = arith.addf %36, %41 : vector<1x256xf32>
    %c0_13 = arith.constant 0 : index
    %c0_14 = arith.constant 0 : index
    %43 = vector.load %arg6[%c0_13, %c0_14] : memref<1x256xf32, #tpu.memory_space<vmem>>, vector<1x256xf32>
    %44 = arith.subf %17, %42 : vector<1x256xf32>
    %cst_15 = arith.constant 0.000000e+00 : f32
    %45 = vector.broadcast %cst_15 : f32 to vector<1x256xf32>
    %46 = arith.select %8, %44, %45 : vector<1x256xi1>, vector<1x256xf32>
    %47 = arith.addf %43, %46 : vector<1x256xf32>
    %c0_16 = arith.constant 0 : index
    %c0_17 = arith.constant 0 : index
    %48 = vector.load %arg6[%c0_16, %c0_17] : memref<1x256xf32, #tpu.memory_space<vmem>>, vector<1x256xf32>
    tpu.vector_store %arg6[%c0_16, %c0_17], %47 {strides = array<i32>} : memref<1x256xf32, #tpu.memory_space<vmem>>, vector<1x256xf32>,
    %c0_18 = arith.constant 0 : index
    %c0_19 = arith.constant 0 : index
    %49 = vector.load %arg7[%c0_18, %c0_19] : memref<1x256xf32, #tpu.memory_space<vmem>>, vector<1x256xf32>
    %50 = arith.extui %8 : vector<1x256xi1> to vector<1x256xi32>
    %51 = arith.sitofp %50 : vector<1x256xi32> to vector<1x256xf32>
    %52 = arith.addf %49, %51 : vector<1x256xf32>
    %c0_20 = arith.constant 0 : index
    %c0_21 = arith.constant 0 : index
    %53 = vector.load %arg7[%c0_20, %c0_21] : memref<1x256xf32, #tpu.memory_space<vmem>>, vector<1x256xf32>
    tpu.vector_store %arg7[%c0_20, %c0_21], %52 {strides = array<i32>} : memref<1x256xf32, #tpu.memory_space<vmem>>, vector<1x256xf32>,
    %c0_i32_22 = arith.constant 0 : i32
    %54 = arith.cmpi eq, %arg1, %c0_i32_22 : i32
    %55 = arith.extui %54 : i1 to i32
    %c0_i32_23 = arith.constant 0 : i32
    %56 = arith.cmpi ne, %55, %c0_i32_23 : i32
    scf.if %56 {
      %c0_24 = arith.constant 0 : index
      %c0_25 = arith.constant 0 : index
      %57 = vector.load %arg6[%c0_24, %c0_25] : memref<1x256xf32, #tpu.memory_space<vmem>>, vector<1x256xf32>
      %58 = vector.shape_cast %57 : vector<1x256xf32> to vector<1x1x256xf32>
      %cst_26 = arith.constant dense<0.000000e+00> : vector<1xf32>
      %59 = vector.multi_reduction <add>, %58, %cst_26 [1, 2] : vector<1x1x256xf32> to vector<1xf32>
      %60 = vector.shape_cast %59 : vector<1xf32> to vector<1x1x1xf32>
      %61 = vector.extract %60[0, 0, 0] : f32 from vector<1x1x1xf32>
      %62 = vector.broadcast %61 : f32 to vector<1x1x128xf32>
      %c0_27 = arith.constant 0 : index
      %c0_28 = arith.constant 0 : index
      %c0_29 = arith.constant 0 : index
      %63 = vector.load %arg4[%c0_27, %c0_28, %c0_29] : memref<1x1x128xf32, #tpu.memory_space<vmem>>, vector<1x1x128xf32>
      tpu.vector_store %arg4[%c0_27, %c0_28, %c0_29], %62 {strides = array<i32>} : memref<1x1x128xf32, #tpu.memory_space<vmem>>, vector<1x1x128xf32>,
      %c0_30 = arith.constant 0 : index
      %c0_31 = arith.constant 0 : index
      %64 = vector.load %arg7[%c0_30, %c0_31] : memref<1x256xf32, #tpu.memory_space<vmem>>, vector<1x256xf32>
      %65 = vector.shape_cast %64 : vector<1x256xf32> to vector<1x1x256xf32>
      %cst_32 = arith.constant dense<0.000000e+00> : vector<1xf32>
      %66 = vector.multi_reduction <add>, %65, %cst_32 [1, 2] : vector<1x1x256xf32> to vector<1xf32>
      %67 = vector.shape_cast %66 : vector<1xf32> to vector<1x1x1xf32>
      %68 = vector.extract %67[0, 0, 0] : f32 from vector<1x1x1xf32>
      %69 = vector.broadcast %68 : f32 to vector<1x1x128xf32>
      %c0_33 = arith.constant 0 : index
      %c0_34 = arith.constant 0 : index
      %c0_35 = arith.constant 0 : index
      %70 = vector.load %arg5[%c0_33, %c0_34, %c0_35] : memref<1x1x128xf32, #tpu.memory_space<vmem>>, vector<1x1x128xf32>
      tpu.vector_store %arg5[%c0_33, %c0_34, %c0_35], %69 {strides = array<i32>} : memref<1x1x128xf32, #tpu.memory_space<vmem>>, vector<1x1x128xf32>,
    } else {
    }
    return
  }
  func.func @transform_0(%arg0: i32, %arg1: i32) -> (i32, i32, i32) {
    %c0_i32 = arith.constant 0 : i32
    %c0_i32_0 = arith.constant 0 : i32
    return %arg0, %c0_i32, %arg1 : i32, i32, i32
  }
  func.func @transform_1(%arg0: i32, %arg1: i32) -> (i32, i32, i32) {
    %c0_i32 = arith.constant 0 : i32
    %c0_i32_0 = arith.constant 0 : i32
    return %arg0, %c0_i32, %arg1 : i32, i32, i32
  }
  func.func @transform_2(%arg0: i32, %arg1: i32) -> (i32, i32, i32) {
    %c0_i32 = arith.constant 0 : i32
    %c0_i32_0 = arith.constant 0 : i32
    %c0_i32_1 = arith.constant 0 : i32
    return %arg0, %c0_i32, %c0_i32_0 : i32, i32, i32
  }
  func.func @transform_3(%arg0: i32, %arg1: i32) -> (i32, i32, i32) {
    %c0_i32 = arith.constant 0 : i32
    %c0_i32_0 = arith.constant 0 : i32
    %c0_i32_1 = arith.constant 0 : i32
    return %arg0, %c0_i32, %c0_i32_0 : i32, i32, i32
  }
}

module attributes {stable_mosaic.version = 11 : i64} {
  func.func @_ce_kernel(%arg0: i32, %arg1: i32, %arg2: memref<1x4x4736xf32, #tpu.memory_space<vmem>>, %arg3: memref<1x1x4736xi32, #tpu.memory_space<vmem>>, %arg4: memref<1x1x128xf32, #tpu.memory_space<vmem>>, %arg5: memref<1x1x128xf32, #tpu.memory_space<vmem>>, %arg6: memref<1x4736xf32, #tpu.memory_space<vmem>>, %arg7: memref<1x4736xf32, #tpu.memory_space<vmem>>) attributes {dimension_semantics = [#tpu.dimension_semantics<parallel>, #tpu.dimension_semantics<arbitrary>], iteration_bounds = array<i64: 2, 1>, scalar_prefetch = 0 : i64, scratch_operands = 2 : i64, tpu.core_type = #tpu.core_type<tc>, window_params = [{transform_indices = @transform_0, window_bounds = array<i64: 1, 4, 4736>}, {transform_indices = @transform_1, window_bounds = array<i64: 1, 1, 4736>}, {transform_indices = @transform_2, window_bounds = array<i64: 1, 1, 128>}, {transform_indices = @transform_3, window_bounds = array<i64: 1, 1, 128>}]} {
    %c0_i32 = arith.constant 0 : i32
    %0 = arith.cmpi eq, %arg1, %c0_i32 : i32
    %1 = arith.extui %0 : i1 to i32
    %c0_i32_0 = arith.constant 0 : i32
    %2 = arith.cmpi ne, %1, %c0_i32_0 : i32
    scf.if %2 {
      %cst_25 = arith.constant 0.000000e+00 : f32
      %68 = vector.broadcast %cst_25 : f32 to vector<1x4736xf32>
      %c0_26 = arith.constant 0 : index
      %c0_27 = arith.constant 0 : index
      %69 = vector.load %arg6[%c0_26, %c0_27] : memref<1x4736xf32, #tpu.memory_space<vmem>>, vector<1x4736xf32>
      tpu.vector_store %arg6[%c0_26, %c0_27], %68 {strides = array<i32>} : memref<1x4736xf32, #tpu.memory_space<vmem>>, vector<1x4736xf32>,
      %cst_28 = arith.constant 0.000000e+00 : f32
      %70 = vector.broadcast %cst_28 : f32 to vector<1x4736xf32>
      %c0_29 = arith.constant 0 : index
      %c0_30 = arith.constant 0 : index
      %71 = vector.load %arg7[%c0_29, %c0_30] : memref<1x4736xf32, #tpu.memory_space<vmem>>, vector<1x4736xf32>
      tpu.vector_store %arg7[%c0_29, %c0_30], %70 {strides = array<i32>} : memref<1x4736xf32, #tpu.memory_space<vmem>>, vector<1x4736xf32>,
    } else {
    }
    %c0 = arith.constant 0 : index
    %c0_1 = arith.constant 0 : index
    %c0_2 = arith.constant 0 : index
    %3 = vector.load %arg2[%c0, %c0_1, %c0_2] : memref<1x4x4736xf32, #tpu.memory_space<vmem>>, vector<1x4x4736xf32>
    %4 = vector.shape_cast %3 : vector<1x4x4736xf32> to vector<4x4736xf32>
    %c0_3 = arith.constant 0 : index
    %c0_4 = arith.constant 0 : index
    %c0_5 = arith.constant 0 : index
    %5 = vector.load %arg3[%c0_3, %c0_4, %c0_5] : memref<1x1x4736xi32, #tpu.memory_space<vmem>>, vector<1x1x4736xi32>
    %6 = vector.shape_cast %5 : vector<1x1x4736xi32> to vector<1x4736xi32>
    %c-100_i32 = arith.constant -100 : i32
    %7 = vector.broadcast %c-100_i32 : i32 to vector<1x4736xi32>
    %8 = arith.cmpi ne, %6, %7 : vector<1x4736xi32>
    %c4736_i32 = arith.constant 4736 : i32
    %9 = arith.muli %arg1, %c4736_i32 : i32
    %10 = tpu.iota {dimensions = array<i32: 1>} : vector<1x4736xi32>
    %11 = vector.broadcast %9 : i32 to vector<1x4736xi32>
    %12 = arith.addi %11, %10 : vector<1x4736xi32>
    %c4624_i32 = arith.constant 4624 : i32
    %13 = vector.broadcast %c4624_i32 : i32 to vector<1x4736xi32>
    %14 = arith.cmpi slt, %12, %13 : vector<1x4736xi32>
    %cst = arith.constant 0.000000e+00 : f32
    %15 = vector.shape_cast %14 : vector<1x4736xi1> to vector<1x4736xi1>
    %16 = vector.broadcast %15 : vector<1x4736xi1> to vector<4x4736xi1>
    %17 = vector.broadcast %cst : f32 to vector<4x4736xf32>
    %18 = arith.select %16, %4, %17 : vector<4x4736xi1>, vector<4x4736xf32>
    %19 = arith.andi %8, %14 : vector<1x4736xi1>
    %cst_6 = arith.constant dense<0xFF800000> : vector<4736xf32>
    %20 = vector.multi_reduction <maximumf>, %18, %cst_6 [0] : vector<4x4736xf32> to vector<4736xf32>
    %21 = vector.shape_cast %20 : vector<4736xf32> to vector<1x4736xf32>
    %22 = vector.broadcast %21 : vector<1x4736xf32> to vector<4x4736xf32>
    %23 = arith.subf %18, %22 : vector<4x4736xf32>
    %24 = math.exp %23 : vector<4x4736xf32>
    %cst_7 = arith.constant dense<0.000000e+00> : vector<4736xf32>
    %25 = vector.multi_reduction <add>, %24, %cst_7 [0] : vector<4x4736xf32> to vector<4736xf32>
    %26 = vector.shape_cast %25 : vector<4736xf32> to vector<1x4736xf32>
    %27 = math.log %26 : vector<1x4736xf32>
    %28 = arith.addf %27, %21 : vector<1x4736xf32>
    %cst_8 = arith.constant 0.000000e+00 : f32
    %29 = vector.broadcast %cst_8 : f32 to vector<1x4736xf32>
    %c0_i32_9 = arith.constant 0 : i32
    %30 = vector.broadcast %c0_i32_9 : i32 to vector<1x4736xi32>
    %31 = arith.cmpi eq, %6, %30 : vector<1x4736xi32>
    %32 = vector.extract_strided_slice %18 {offsets = [0, 0], sizes = [1, 4736], strides = [1, 1]} : vector<4x4736xf32> to vector<1x4736xf32>
    %cst_10 = arith.constant 0.000000e+00 : f32
    %33 = vector.broadcast %cst_10 : f32 to vector<1x4736xf32>
    %34 = arith.select %31, %32, %33 : vector<1x4736xi1>, vector<1x4736xf32>
    %35 = arith.addf %29, %34 : vector<1x4736xf32>
    %c1_i32 = arith.constant 1 : i32
    %36 = vector.broadcast %c1_i32 : i32 to vector<1x4736xi32>
    %37 = arith.cmpi eq, %6, %36 : vector<1x4736xi32>
    %38 = vector.extract_strided_slice %18 {offsets = [1, 0], sizes = [1, 4736], strides = [1, 1]} : vector<4x4736xf32> to vector<1x4736xf32>
    %cst_11 = arith.constant 0.000000e+00 : f32
    %39 = vector.broadcast %cst_11 : f32 to vector<1x4736xf32>
    %40 = arith.select %37, %38, %39 : vector<1x4736xi1>, vector<1x4736xf32>
    %41 = arith.addf %35, %40 : vector<1x4736xf32>
    %c2_i32 = arith.constant 2 : i32
    %42 = vector.broadcast %c2_i32 : i32 to vector<1x4736xi32>
    %43 = arith.cmpi eq, %6, %42 : vector<1x4736xi32>
    %44 = vector.extract_strided_slice %18 {offsets = [2, 0], sizes = [1, 4736], strides = [1, 1]} : vector<4x4736xf32> to vector<1x4736xf32>
    %cst_12 = arith.constant 0.000000e+00 : f32
    %45 = vector.broadcast %cst_12 : f32 to vector<1x4736xf32>
    %46 = arith.select %43, %44, %45 : vector<1x4736xi1>, vector<1x4736xf32>
    %47 = arith.addf %41, %46 : vector<1x4736xf32>
    %c3_i32 = arith.constant 3 : i32
    %48 = vector.broadcast %c3_i32 : i32 to vector<1x4736xi32>
    %49 = arith.cmpi eq, %6, %48 : vector<1x4736xi32>
    %50 = vector.extract_strided_slice %18 {offsets = [3, 0], sizes = [1, 4736], strides = [1, 1]} : vector<4x4736xf32> to vector<1x4736xf32>
    %cst_13 = arith.constant 0.000000e+00 : f32
    %51 = vector.broadcast %cst_13 : f32 to vector<1x4736xf32>
    %52 = arith.select %49, %50, %51 : vector<1x4736xi1>, vector<1x4736xf32>
    %53 = arith.addf %47, %52 : vector<1x4736xf32>
    %c0_14 = arith.constant 0 : index
    %c0_15 = arith.constant 0 : index
    %54 = vector.load %arg6[%c0_14, %c0_15] : memref<1x4736xf32, #tpu.memory_space<vmem>>, vector<1x4736xf32>
    %55 = arith.subf %28, %53 : vector<1x4736xf32>
    %cst_16 = arith.constant 0.000000e+00 : f32
    %56 = vector.broadcast %cst_16 : f32 to vector<1x4736xf32>
    %57 = arith.select %19, %55, %56 : vector<1x4736xi1>, vector<1x4736xf32>
    %58 = arith.addf %54, %57 : vector<1x4736xf32>
    %c0_17 = arith.constant 0 : index
    %c0_18 = arith.constant 0 : index
    %59 = vector.load %arg6[%c0_17, %c0_18] : memref<1x4736xf32, #tpu.memory_space<vmem>>, vector<1x4736xf32>
    tpu.vector_store %arg6[%c0_17, %c0_18], %58 {strides = array<i32>} : memref<1x4736xf32, #tpu.memory_space<vmem>>, vector<1x4736xf32>,
    %c0_19 = arith.constant 0 : index
    %c0_20 = arith.constant 0 : index
    %60 = vector.load %arg7[%c0_19, %c0_20] : memref<1x4736xf32, #tpu.memory_space<vmem>>, vector<1x4736xf32>
    %61 = arith.extui %19 : vector<1x4736xi1> to vector<1x4736xi32>
    %62 = arith.sitofp %61 : vector<1x4736xi32> to vector<1x4736xf32>
    %63 = arith.addf %60, %62 : vector<1x4736xf32>
    %c0_21 = arith.constant 0 : index
    %c0_22 = arith.constant 0 : index
    %64 = vector.load %arg7[%c0_21, %c0_22] : memref<1x4736xf32, #tpu.memory_space<vmem>>, vector<1x4736xf32>
    tpu.vector_store %arg7[%c0_21, %c0_22], %63 {strides = array<i32>} : memref<1x4736xf32, #tpu.memory_space<vmem>>, vector<1x4736xf32>,
    %c0_i32_23 = arith.constant 0 : i32
    %65 = arith.cmpi eq, %arg1, %c0_i32_23 : i32
    %66 = arith.extui %65 : i1 to i32
    %c0_i32_24 = arith.constant 0 : i32
    %67 = arith.cmpi ne, %66, %c0_i32_24 : i32
    scf.if %67 {
      %c0_25 = arith.constant 0 : index
      %c0_26 = arith.constant 0 : index
      %68 = vector.load %arg6[%c0_25, %c0_26] : memref<1x4736xf32, #tpu.memory_space<vmem>>, vector<1x4736xf32>
      %69 = vector.shape_cast %68 : vector<1x4736xf32> to vector<1x1x4736xf32>
      %cst_27 = arith.constant dense<0.000000e+00> : vector<1xf32>
      %70 = vector.multi_reduction <add>, %69, %cst_27 [1, 2] : vector<1x1x4736xf32> to vector<1xf32>
      %71 = vector.shape_cast %70 : vector<1xf32> to vector<1x1x1xf32>
      %72 = vector.extract %71[0, 0, 0] : f32 from vector<1x1x1xf32>
      %73 = vector.broadcast %72 : f32 to vector<1x1x128xf32>
      %c0_28 = arith.constant 0 : index
      %c0_29 = arith.constant 0 : index
      %c0_30 = arith.constant 0 : index
      %74 = vector.load %arg4[%c0_28, %c0_29, %c0_30] : memref<1x1x128xf32, #tpu.memory_space<vmem>>, vector<1x1x128xf32>
      tpu.vector_store %arg4[%c0_28, %c0_29, %c0_30], %73 {strides = array<i32>} : memref<1x1x128xf32, #tpu.memory_space<vmem>>, vector<1x1x128xf32>,
      %c0_31 = arith.constant 0 : index
      %c0_32 = arith.constant 0 : index
      %75 = vector.load %arg7[%c0_31, %c0_32] : memref<1x4736xf32, #tpu.memory_space<vmem>>, vector<1x4736xf32>
      %76 = vector.shape_cast %75 : vector<1x4736xf32> to vector<1x1x4736xf32>
      %cst_33 = arith.constant dense<0.000000e+00> : vector<1xf32>
      %77 = vector.multi_reduction <add>, %76, %cst_33 [1, 2] : vector<1x1x4736xf32> to vector<1xf32>
      %78 = vector.shape_cast %77 : vector<1xf32> to vector<1x1x1xf32>
      %79 = vector.extract %78[0, 0, 0] : f32 from vector<1x1x1xf32>
      %80 = vector.broadcast %79 : f32 to vector<1x1x128xf32>
      %c0_34 = arith.constant 0 : index
      %c0_35 = arith.constant 0 : index
      %c0_36 = arith.constant 0 : index
      %81 = vector.load %arg5[%c0_34, %c0_35, %c0_36] : memref<1x1x128xf32, #tpu.memory_space<vmem>>, vector<1x1x128xf32>
      tpu.vector_store %arg5[%c0_34, %c0_35, %c0_36], %80 {strides = array<i32>} : memref<1x1x128xf32, #tpu.memory_space<vmem>>, vector<1x1x128xf32>,
    } else {
    }
    return
  }
  func.func @transform_0(%arg0: i32, %arg1: i32) -> (i32, i32, i32) {
    %c0_i32 = arith.constant 0 : i32
    %c0_i32_0 = arith.constant 0 : i32
    return %arg0, %c0_i32, %arg1 : i32, i32, i32
  }
  func.func @transform_1(%arg0: i32, %arg1: i32) -> (i32, i32, i32) {
    %c0_i32 = arith.constant 0 : i32
    %c0_i32_0 = arith.constant 0 : i32
    return %arg0, %c0_i32, %arg1 : i32, i32, i32
  }
  func.func @transform_2(%arg0: i32, %arg1: i32) -> (i32, i32, i32) {
    %c0_i32 = arith.constant 0 : i32
    %c0_i32_0 = arith.constant 0 : i32
    %c0_i32_1 = arith.constant 0 : i32
    return %arg0, %c0_i32, %c0_i32_0 : i32, i32, i32
  }
  func.func @transform_3(%arg0: i32, %arg1: i32) -> (i32, i32, i32) {
    %c0_i32 = arith.constant 0 : i32
    %c0_i32_0 = arith.constant 0 : i32
    %c0_i32_1 = arith.constant 0 : i32
    return %arg0, %c0_i32, %c0_i32_0 : i32, i32, i32
  }
}

</mosaic_0001>

<bundles_post_ra>
// kernel: _msc_cross_entropy_loss.4
= control target key start
LH: loop header
LB: loop body
LE: loop exit
PB: predicated region body
PF: predicated region fallthrough
CT: control target
= control target key end

     0   :  { %s525_s12 = smov 0   ;;  %s527_s13 = smov 0   ;;  %s580_s0 = inlined_call_operand.vmem [shape: f32[2,4,64], index: 0, kind: input, shape index: {}]   ;;  %s581_s1 = inlined_call_operand.vmem [shape: s32[2,1,64], index: 1, kind: input, shape index: {}]   ;;  %s582_s2 = inlined_call_operand.vmem [shape: f32[2,1,128], index: 2, kind: output, shape index: {0}]   ;;  %s583_s3 = inlined_call_operand.vmem [shape: f32[2,1,128], index: 3, kind: output, shape index: {1}]  }
   0x1   :  { %s529_s14 = smov 0  }
   0x2 LB: > { %s26_s15 = sadd.s32 1, %s497_s13  ;;  %p440_p0 = scmp.ge.s32.totalorder %s501_s14, 1  ;;  %s501_s14 = sphi %s529_s14, %s14_s14   ;;  %s497_s13 = sphi %s527_s13, %s587_s13   ;;  %s493_s12 = sphi %s525_s12, %s586_s12  }
   0x3   : > { %p28_p1 = scmp.ge.s32.totalorder %s26_s15, 2  ;;  %p169_p2 = scmp.lt.s32.totalorder %s501_s14, 3 }
   0x5   : > { %s589_s15 = smov (%p28_p1, %s26_s15), 0  ;;  %p170_p3 = pnand %p440_p0, %p169_p2 }
   0x6   : > { %p202_p4 = scmp.lt.s32.totalorder (!%p170_p3), %s493_s12, 1  ;;  %v231_v0 = vlaneseq (!%p170_p3)  ;;  %v503_v1 = vmov (!%p170_p3), 0.0   ;;  %vm240_vm1 = vcmask (!%p170_p3), 1043456   ;;  %v504_v19 = vmov (!%p170_p3), 1966171168  }
   0x7   : > { %173 = sbr.rel (%p170_p3) target bundleno = 299 (0x12b), region = 28  ;;  %225 = vst [vmem:[#allocation2] sm:$0x1] (!%p170_p3), %v503_v1  ;;  %226 = vst [vmem:[#allocation3] sm:$0x1] (!%p170_p3), %v503_v1  ;;  %v267_v20 = vunpack.c.l.s4 (!%p170_p3), %v504_v19  ;;  %vm315_vm8 = vcmask (!%p170_p3), 1040384  }
   0x8   : > { %v232_v2 = vand.u32 (!%p170_p3), 127, %v231_v0  ;;  %v270_v22 = vshrl.u32 (!%p170_p3), %v231_v0, 7 }
   0x9   : > { %v268_v21 = vunpack.c.0.s8 (!%p170_p3), %v267_v20 }
   0xa   : > { %vm235_vm0 = vcmp.lt.s32.totalorder (!%p170_p3), %v232_v2, 64 }
   0xb   : > { %v271_v23 = vsub.s32 (!%p170_p3), %v268_v21, %v270_v22 }
   0xe   : > { %s591_s12 = smov (!%p202_p4, %s493_s12), 1  ;;  %v306_v8 = vld [vmem:[#allocation3] sm:$0x1]  ;;  %v301_v48 = vld [vmem:[#allocation2] sm:$0x1] }
   0xf   : > { %s441_s16 = sshll.u32 %s591_s12, 2  ;;  %s214_s19 = scalar_lea.vmem %s581_s1, %s591_s12 }
  0x10   : > { %s208_s22 = scalar_lea.vmem %s580_s0, %s441_s16  ;;  %v228_v3 = vld [vmem:[%s214_s19] sm:$0x1]  ;;  %s217_s25 = scalar_lea.vmem %s582_s2, %s591_s12 }
  0x11   : > { %v227_v4 = vld [vmem:[%s208_s22] sm:$0xf]  ;;  %vm229_vm2 = vcmp.ne.s32.totalorder %v228_v3, 4294967196  ;;  %vm261_vm4 = vcmp.eq.s32.totalorder %v228_v3, 0  ;;  %vm264_vm5 = vcmp.eq.s32.totalorder %v228_v3, 1  ;;  %vm291_vm6 = vcmp.eq.s32.totalorder %v228_v3, 2  ;;  %s220_s29 = scalar_lea.vmem %s583_s3, %s591_s12 }
  0x12   : > { %v238_v5 = vsel %vm235_vm0, %v227_v4, 0.0  ;;  %vm553_vm3 = vmand %vm229_vm2, %vm235_vm0  ;;  %vm296_vm7 = vcmp.eq.s32.totalorder %v228_v3, 3 }
  0x13   : > { %v241_v7 = vsel %vm240_vm1, %v238_v5, -inf  ;;  %v442_v10 = vsel %vm553_vm3, 1.0, %v503_v1  ;;  %v272_v27 = vrot.slane %v238_v5, %v271_v23  ;;  %v262_v36 = vsel %vm261_vm4, %v238_v5, 0.0 }
  0x14   : > { %v242_v9 = vrot.slane %v241_v7, 4  ;;  %v309_v11 = vadd.f32 %v442_v10, %v306_v8 }
  0x15   : > { %v273_v30 = vcombine.high %v272_v27, %v272_v27  ;;  %v280_v33 = vrot.slane %v272_v27, %v271_v23 }
  0x16   : > { %v243_v12 = vmax.f32 %v241_v7, %v242_v9  ;;  %310 = vst [vmem:[#allocation3] sm:$0x1] %v309_v11 }
  0x17   : > { %v287_v34 = vrot.slane %v273_v30, %v271_v23  ;;  %v292_v38 = vcombine.high %v280_v33, %v280_v33 }
  0x18   : > { %v244_v13 = vrot.slane %v243_v12, 2 }
  0x19   : > { %v289_v37 = vsel %vm264_vm5, %v287_v34, 0.0  ;;  %v294_v40 = vsel %vm291_vm6, %v292_v38, 0.0  ;;  %v297_v41 = vcombine.high %v287_v34, %v287_v34 }
  0x1a   : > { %v245_v14 = vmax.f32 %v243_v12, %v244_v13  ;;  %v290_v39 = vadd.f32 %v289_v37, %v262_v36 }
  0x1b   : > { %v299_v43 = vsel %vm296_vm7, %v297_v41, 0.0 }
  0x1c   : > { %v246_v15 = vrot.slane %v245_v14, 1  ;;  %v295_v42 = vadd.f32 %v294_v40, %v290_v39 }
  0x1d   : > { %v328_v53 = vld [vmem:[#allocation3] sm:$0x1] }
  0x1e   : > { %v247_v16 = vmax.f32 %v245_v14, %v246_v15  ;;  %v300_v46 = vadd.f32 %v299_v43, %v295_v42  ;;  %v329_v55 = vsel %vm315_vm8, %v328_v53, 0.0 }
  0x20   : > { %v248_v17 = vsub.f32 %v238_v5, %v247_v16 }
  0x22   : > { %v249_v18 = vmul.f32 1.442695, %v248_v17 }
  0x24   : > { %475 = vpow2.f32 %v249_v18 }
  0x2e   : > { %v476_v24 = vpop.eup %475 }
  0x2f   : > { %v251_v25 = vsel %vm240_vm1, %v476_v24, 0.0 }
  0x30   : > { %v252_v26 = vrot.slane %v251_v25, 4 }
  0x32   : > { %v253_v28 = vadd.f32 %v252_v26, %v251_v25 }
  0x34   : > { %v254_v29 = vrot.slane %v253_v28, 2 }
  0x36   : > { %v255_v31 = vadd.f32 %v254_v29, %v253_v28 }
  0x38   : > { %v256_v32 = vrot.slane %v255_v31, 1 }
  0x3a   : > { %v257_v35 = vadd.f32 %v256_v32, %v255_v31 }
  0x3c   : > { %477 = vlog2.f32 %v257_v35 }
  0x46   : > { %v478_v44 = vpop.eup %477 }
  0x47   : > { %v259_v45 = vmul.f32 0.6931472, %v478_v44 }
  0x49   : > { %v260_v47 = vadd.f32 %v259_v45, %v247_v16 }
  0x4b   : > { %v302_v49 = vsub.f32 %v260_v47, %v300_v46 }
  0x4d   : > { %v303_v50 = vsel %vm553_vm3, %v302_v49, 0.0 }
  0x4e   : > { %v304_v51 = vadd.f32 %v303_v50, %v301_v48 }
  0x50   : > { %305 = vst [vmem:[#allocation2] sm:$0x1] %v304_v51 }
  0x57   : > { %v314_v52 = vld [vmem:[#allocation2] sm:$0x1] }
  0x58   : > { %v316_v54 = vsel %vm315_vm8, %v314_v52, 0.0 }
  0x59   : > { %317 = vadd.xlane.f32.xlu0 %v316_v54 }
  0x5d   : > { %330 = vadd.xlane.f32.xlu0 %v329_v55 }
  0xe6   : > { %v318_v56 = vpop.xlane.xlu0 %317 }
  0xe7   : > { %v319_v57 = vrot.slane %v318_v56, 4 }
  0xe9   : > { %v320_v58 = vadd.f32 %v319_v57, %v318_v56 }
  0xea   : > { %v331_v59 = vpop.xlane.xlu0 %330 }
  0xeb   : > { %v321_v60 = vrot.slane %v320_v58, 2  ;;  %v332_v61 = vrot.slane %v331_v59, 4 }
  0xed   : > { %v333_v62 = vadd.f32 %v332_v61, %v331_v59  ;;  %v322_v63 = vadd.f32 %v321_v60, %v320_v58 }
  0xef   : > { %v334_v0 = vrot.slane %v333_v62, 2  ;;  %v323_v1 = vrot.slane %v322_v63, 1 }
  0xf1   : > { %v335_v2 = vadd.f32 %v334_v0, %v333_v62  ;;  %v324_v3 = vadd.f32 %v323_v1, %v322_v63 }
  0xf3   : > { %445 = vpush %v324_v3  ;;  %v336_v4 = vrot.slane %v335_v2, 1 }
  0xf5   : > { %v337_v5 = vadd.f32 %v336_v4, %v335_v2 }
  0xf7   : > { %447 = vpush %v337_v5 }
 0x124   : > { %s446_s26 = spop %445 }
 0x125   : > { %v326_v6 = vstv %s446_s26 }
 0x126   : > { %327 = vst [vmem:[%s217_s25] sm:$0x1] %v326_v6 }
 0x128   : > { %s448_s30 = spop %447 }
 0x129   : > { %v339_v7 = vstv %s448_s30 }
 0x12a   : > { %340 = vst [vmem:[%s220_s29] sm:$0x1] %v339_v7 }
 0x12b PF: > { %s14_s14 = sadd.s32 1, %s501_s14   ;;  %s586_s12 = smov %s497_s13 }
 0x12c   : > { %p11_p5 = scmp.ge.s32.totalorder %s14_s14, 4   ;;  %s587_s13 = smov %s589_s15 }
 0x12e   :  { %13 = sbr.rel (!%p11_p5) target bundleno = 2 (0x2), region = 81 }

// kernel: _msc_cross_entropy_loss.3
= control target key start
LH: loop header
LB: loop body
LE: loop exit
PB: predicated region body
PF: predicated region fallthrough
CT: control target
= control target key end

     0   :  { %s634_s12 = smov 0   ;;  %s636_s13 = smov 0   ;;  %s706_s0 = inlined_call_operand.vmem [shape: f32[2,4,256], index: 0, kind: input, shape index: {}]   ;;  %s707_s1 = inlined_call_operand.vmem [shape: s32[2,1,256], index: 1, kind: input, shape index: {}]   ;;  %s708_s2 = inlined_call_operand.vmem [shape: f32[2,1,128], index: 2, kind: output, shape index: {0}]   ;;  %s709_s3 = inlined_call_operand.vmem [shape: f32[2,1,128], index: 3, kind: output, shape index: {1}]  }
   0x1   :  { %s638_s14 = smov 0  }
   0x2 LB: > { %s26_s15 = sadd.s32 1, %s606_s13  ;;  %p543_p0 = scmp.ge.s32.totalorder %s610_s14, 1  ;;  %s610_s14 = sphi %s638_s14, %s14_s14   ;;  %s606_s13 = sphi %s636_s13, %s713_s13   ;;  %s602_s12 = sphi %s634_s12, %s712_s12  }
   0x3   : > { %p28_p1 = scmp.ge.s32.totalorder %s26_s15, 2  ;;  %p175_p2 = scmp.lt.s32.totalorder %s610_s14, 3 }
   0x5   : > { %s715_s15 = smov (%p28_p1, %s26_s15), 0  ;;  %p176_p3 = pnand %p543_p0, %p175_p2 }
   0x6   : > { %p213_p4 = scmp.lt.s32.totalorder (!%p176_p3), %s602_s12, 1  ;;  %v241_v0 = vlaneseq (!%p176_p3)  ;;  %v612_v2 = vmov (!%p176_p3), 0.0   ;;  %vm253_vm1 = vcmask (!%p176_p3), 1043456   ;;  %v613_v25 = vmov (!%p176_p3), 1966171168  }
   0x7   : > { %179 = sbr.rel (%p176_p3) target bundleno = 314 (0x13a), region = 28  ;;  %v300_v26 = vunpack.c.l.s4 (!%p176_p3), %v613_v25  ;;  %vm397_vm7 = vcmask (!%p176_p3), 1040384  }
   0x8   : > { %vm654_vm0 = vcmp.lt.s32.totalorder (!%p176_p3), %v241_v0, 256  ;;  %v303_v29 = vshrl.u32 (!%p176_p3), %v241_v0, 7 }
   0x9   : > { %245 = vst.msk [vmem:[#allocation2] sm:$0x3] (!%p176_p3), %vm654_vm0, %v612_v2  ;;  %246 = vst.msk [vmem:[#allocation3] sm:$0x3] (!%p176_p3), %vm654_vm0, %v612_v2  ;;  %v301_v28 = vunpack.c.0.s8 (!%p176_p3), %v300_v26 }
   0xa   : > { %v342_v60 = vsub.s32 (!%p176_p3), 0, %v303_v29  ;;  %v346_v61 = vsub.s32 (!%p176_p3), 1, %v303_v29 }
   0xb   : > { %v304_v30 = vsub.s32 (!%p176_p3), %v301_v28, %v303_v29 }
   0xe   : > { %s717_s12 = smov (!%p213_p4, %s602_s12), 1 }
   0xf   : > { %s550_s16 = sshll.u32 %s717_s12, 3  ;;  %s546_s17 = sshll.u32 %s717_s12, 1 }
  0x10   : > { %s220_s20 = scalar_lea.vmem %s706_s0, %s550_s16  ;;  %s229_s23 = scalar_lea.vmem %s707_s1, %s546_s17  ;;  %v377_v12 = vld [vmem:[#allocation3] sm:$0x3] }
  0x11   : > { %v247_v3 = vld [vmem:[%s220_s20] sm:$0xff]  ;;  %s233_s26 = scalar_lea.vmem %s708_s2, %s717_s12  ;;  %s236_s30 = scalar_lea.vmem %s709_s3, %s717_s12 }
  0x12   : > { %v670_v4 = vld [vmem:[%s229_s23] sm:$0x3]  ;;  %v251_v5 = vcombine.high %v247_v3, %v247_v3  ;;  %v254_v6 = vsel %vm253_vm1, %v247_v3, -inf  ;;  %v305_v31 = vrot.slane %v247_v3, %v304_v30 }
  0x13   : > { %vm249_vm2 = vcmp.ne.s32.totalorder %v670_v4, 4294967196  ;;  %v255_v7 = vrot.slane %v254_v6, 4  ;;  %vm298_vm3 = vcmp.eq.s32.totalorder %v670_v4, 0  ;;  %vm316_vm4 = vcmp.eq.s32.totalorder %v670_v4, 1 }
  0x14   : > { %v261_v8 = vsel %vm253_vm1, %v251_v5, -inf  ;;  %v547_v9 = vsel %vm249_vm2, 1.0, %v612_v2  ;;  %v317_v36 = vcombine.high %v305_v31, %v305_v31  ;;  %v312_v40 = vrot.slane %v305_v31, %v304_v30 }
  0x15   : > { %v256_v10 = vmax.f32 %v254_v6, %v255_v7  ;;  %v262_v11 = vrot.slane %v261_v8, 4  ;;  %v380_v13 = vadd.f32 %v547_v9, %v377_v12  ;;  %vm328_vm5 = vcmp.eq.s32.totalorder %v670_v4, 2  ;;  %v338_v12 = vld [vmem:[#allocation2] sm:$0x3] }
  0x16   : > { %v324_v43 = vrot.slane %v317_v36, %v304_v30  ;;  %v314_v46 = vsel %vm298_vm3, %v312_v40, 0.0  ;;  %v329_v50 = vcombine.high %v312_v40, %v312_v40  ;;  %vm333_vm6 = vcmp.eq.s32.totalorder %v670_v4, 3 }
  0x17   : > { %v257_v14 = vrot.slane %v256_v10, 2  ;;  %v263_v15 = vmax.f32 %v261_v8, %v262_v11  ;;  %381 = vst.msk [vmem:[#allocation3] sm:$0x3] %vm654_vm0, %v380_v13 }
  0x18   : > { %v326_v49 = vsel %vm316_vm4, %v324_v43, 0.0  ;;  %v331_v55 = vsel %vm328_vm5, %v329_v50, 0.0  ;;  %v334_v56 = vcombine.high %v324_v43, %v324_v43 }
  0x19   : > { %v258_v16 = vmax.f32 %v256_v10, %v257_v14  ;;  %v264_v17 = vrot.slane %v263_v15, 2  ;;  %v327_v53 = vadd.f32 %v326_v49, %v314_v46 }
  0x1a   : > { %v336_v58 = vsel %vm333_vm6, %v334_v56, 0.0 }
  0x1b   : > { %v259_v18 = vrot.slane %v258_v16, 1  ;;  %v265_v19 = vmax.f32 %v263_v15, %v264_v17  ;;  %v332_v57 = vadd.f32 %v331_v55, %v327_v53 }
  0x1d   : > { %v260_v20 = vmax.f32 %v258_v16, %v259_v18  ;;  %v266_v21 = vrot.slane %v265_v19, 1  ;;  %v337_v59 = vadd.f32 %v336_v58, %v332_v57 }
  0x1e   : > { %v412_v16 = vld [vmem:[#allocation3] sm:$0x3] }
  0x1f   : > { %v267_v22 = vmax.f32 %v265_v19, %v266_v21  ;;  %v343_v0 = vrot.slane %v337_v59, %v342_v60  ;;  %v347_v6 = vrot.slane %v337_v59, %v346_v61  ;;  %v417_v17 = vrot.slane %v412_v16, %v342_v60 }
  0x20   : > { %v421_v18 = vrot.slane %v412_v16, %v346_v61 }
  0x21   : > { %v270_v23 = vcombine.low %v260_v20, %v267_v22 }
  0x22   : > { %v425_v25 = vsel %vm397_vm7, %v421_v18, 0.0 }
  0x23   : > { %v272_v24 = vsub.f32 %v247_v3, %v270_v23 }
  0x25   : > { %v273_v27 = vmul.f32 1.442695, %v272_v24  ;;  %v424_v24 = vsel %vm397_vm7, %v417_v17, 0.0 }
  0x27   : > { %582 = vpow2.f32 %v273_v27  ;;  %v426_v27 = vadd.f32 %v425_v25, %v424_v24 }
  0x31   : > { %v583_v32 = vpop.eup %582 }
  0x32   : > { %v276_v33 = vcombine.high %v583_v32, %v583_v32  ;;  %v278_v34 = vsel %vm253_vm1, %v583_v32, 0.0 }
  0x33   : > { %v279_v35 = vrot.slane %v278_v34, 4 }
  0x34   : > { %v285_v37 = vsel %vm253_vm1, %v276_v33, 0.0 }
  0x35   : > { %v280_v38 = vadd.f32 %v279_v35, %v278_v34  ;;  %v286_v39 = vrot.slane %v285_v37, 4 }
  0x37   : > { %v281_v41 = vrot.slane %v280_v38, 2  ;;  %v287_v42 = vadd.f32 %v286_v39, %v285_v37 }
  0x39   : > { %v282_v44 = vadd.f32 %v281_v41, %v280_v38  ;;  %v288_v45 = vrot.slane %v287_v42, 2 }
  0x3b   : > { %v283_v47 = vrot.slane %v282_v44, 1  ;;  %v289_v48 = vadd.f32 %v288_v45, %v287_v42 }
  0x3d   : > { %v284_v51 = vadd.f32 %v283_v47, %v282_v44  ;;  %v290_v52 = vrot.slane %v289_v48, 1 }
  0x3f   : > { %v291_v54 = vadd.f32 %v290_v52, %v289_v48  ;;  %584 = vlog2.f32 %v284_v51 }
  0x41   : > { %586 = vlog2.f32 %v291_v54 }
  0x49   : > { %v585_v62 = vpop.eup %584 }
  0x4a   : > { %v293_v63 = vmul.f32 0.6931472, %v585_v62 }
  0x4b   : > { %v587_v2 = vpop.eup %586 }
  0x4c   : > { %v295_v3 = vmul.f32 0.6931472, %v587_v2  ;;  %v296_v5 = vadd.f32 %v293_v63, %v260_v20 }
  0x4e   : > { %v297_v7 = vadd.f32 %v295_v3, %v267_v22  ;;  %v350_v8 = vsub.f32 %v296_v5, %v343_v0 }
  0x50   : > { %v351_v9 = vsub.f32 %v297_v7, %v347_v6 }
  0x52   : > { %v354_v10 = vcombine.low %v350_v8, %v351_v9 }
  0x54   : > { %v361_v11 = vrot.slane %v354_v10, %v304_v30 }
  0x56   : > { %v368_v13 = vrot.slane %v361_v11, %v304_v30 }
  0x58   : > { %v370_v14 = vsel %vm249_vm2, %v368_v13, 0.0 }
  0x59   : > { %v371_v15 = vadd.f32 %v370_v14, %v338_v12 }
  0x5b   : > { %376 = vst.msk [vmem:[#allocation2] sm:$0x3] %vm654_vm0, %v371_v15 }
  0x62   : > { %v385_v19 = vld [vmem:[#allocation2] sm:$0x3] }
  0x63   : > { %v390_v20 = vrot.slane %v385_v19, %v342_v60  ;;  %v394_v21 = vrot.slane %v385_v19, %v346_v61 }
  0x65   : > { %v398_v22 = vsel %vm397_vm7, %v390_v20, 0.0  ;;  %v399_v23 = vsel %vm397_vm7, %v394_v21, 0.0 }
  0x66   : > { %v400_v26 = vadd.f32 %v399_v23, %v398_v22 }
  0x68   : > { %401 = vadd.xlane.f32.xlu0 %v400_v26 }
  0x6c   : > { %427 = vadd.xlane.f32.xlu0 %v426_v27 }
  0xf5   : > { %v402_v4 = vpop.xlane.xlu0 %401 }
  0xf6   : > { %v403_v28 = vrot.slane %v402_v4, 4 }
  0xf8   : > { %v404_v1 = vadd.f32 %v403_v28, %v402_v4 }
  0xf9   : > { %v428_v29 = vpop.xlane.xlu0 %427 }
  0xfa   : > { %v405_v30 = vrot.slane %v404_v1, 2  ;;  %v429_v31 = vrot.slane %v428_v29, 4 }
  0xfc   : > { %v430_v32 = vadd.f32 %v429_v31, %v428_v29  ;;  %v406_v33 = vadd.f32 %v405_v30, %v404_v1 }
  0xfe   : > { %v431_v34 = vrot.slane %v430_v32, 2  ;;  %v407_v35 = vrot.slane %v406_v33, 1 }
 0x100   : > { %v432_v36 = vadd.f32 %v431_v34, %v430_v32  ;;  %v408_v37 = vadd.f32 %v407_v35, %v406_v33 }
 0x102   : > { %551 = vpush %v408_v37  ;;  %v433_v38 = vrot.slane %v432_v36, 1 }
 0x104   : > { %v434_v39 = vadd.f32 %v433_v38, %v432_v36 }
 0x106   : > { %553 = vpush %v434_v39 }
 0x133   : > { %s552_s27 = spop %551 }
 0x134   : > { %v410_v40 = vstv %s552_s27 }
 0x135   : > { %411 = vst [vmem:[%s233_s26] sm:$0x1] %v410_v40 }
 0x137   : > { %s554_s4 = spop %553 }
 0x138   : > { %v436_v41 = vstv %s554_s4 }
 0x139   : > { %437 = vst [vmem:[%s236_s30] sm:$0x1] %v436_v41 }
 0x13a PF: > { %s14_s14 = sadd.s32 1, %s610_s14   ;;  %s712_s12 = smov %s606_s13 }
 0x13b   : > { %p11_p5 = scmp.ge.s32.totalorder %s14_s14, 4   ;;  %s713_s13 = smov %s715_s15 }
 0x13d   :  { %13 = sbr.rel (!%p11_p5) target bundleno = 2 (0x2), region = 81 }

// kernel: _msc_cross_entropy_loss.5
= control target key start
LH: loop header
LB: loop body
LE: loop exit
PB: predicated region body
PF: predicated region fallthrough
CT: control target
= control target key end

     0   :  { %s3489_s12 = smov 0   ;;  %s3491_s13 = smov 0   ;;  %s5074_s0 = inlined_call_operand.vmem [shape: f32[2,4,4624], index: 0, kind: input, shape index: {}]   ;;  %s5075_s1 = inlined_call_operand.vmem [shape: s32[2,1,4624], index: 1, kind: input, shape index: {}]   ;;  %s5076_s2 = inlined_call_operand.vmem [shape: f32[2,1,128], index: 2, kind: output, shape index: {0}]   ;;  %s5077_s3 = inlined_call_operand.vmem [shape: f32[2,1,128], index: 3, kind: output, shape index: {1}]  }
   0x1   :  { %s3493_s14 = smov 0  }
   0x2 LB: > { %s26_s15 = sadd.s32 1, %s3459_s13  ;;  %p3216_p0 = scmp.ge.s32.totalorder %s3463_s14, 1  ;;  %s3463_s14 = sphi %s3493_s14, %s14_s14   ;;  %s3459_s13 = sphi %s3491_s13, %s5460_s13   ;;  %s3455_s12 = sphi %s3489_s12, %s5459_s12  }
   0x3   : > { %p28_p1 = scmp.ge.s32.totalorder %s26_s15, 2  ;;  %p175_p2 = scmp.lt.s32.totalorder %s3463_s14, 3 }
   0x5   : > { %s5462_s15 = smov (%p28_p1, %s26_s15), 0  ;;  %p176_p3 = pnand %p3216_p0, %p175_p2 }
   0x7   : > { %179 = sbr.rel (%p176_p3) target bundleno = 585 (0x249), region = 28 }
   0xe   : > { %p213_p4 = scmp.lt.s32.totalorder %s3455_s12, 1  ;;  %v245_v0 = vlaneseq  ;;  %v5198_v1 = vmov 0  ;;  %v3465_v3 = vmov 1966171168   ;;  %v5078_v6 = vmov 0.0  }
   0xf   : > { %v568_v4 = vunpack.c.l.s4 %v3465_v3  ;;  %v3467_v8 = vmov 1   ;;  %v3468_v15 = vmov 0   ;;  %vm808_vm2 = vcmask 1043456  }
  0x10   : > { %s5464_s12 = smov (!%p213_p4, %s3455_s12), 1  ;;  %vm3509_vm0 = vcmp.lt.s32.totalorder %v245_v0, 640  ;;  %v286_v2 = vand.u32 127, %v245_v0  ;;  %v3513_v5 = vshrl.u32 %v245_v0, 7  ;;  %v563_v9 = vcombine.low %v3467_v8, %v3467_v8 }
  0x11   : > { %v5199_v1 = vsel %vm3509_vm0, 4294967295, %v5198_v1  ;;  %249 = vst.msk [vmem:[#allocation2 + $0x20] sm:$0x1f] %vm3509_vm0, %v5078_v6  ;;  %254 = vst.msk [vmem:[#allocation3 + $0x20] sm:$0x1f] %vm3509_vm0, %v5078_v6  ;;  %s3225_s16 = smul.u32 148, %s5464_s12  ;;  %v569_v10 = vunpack.c.0.s8 %v568_v4  ;;  %s233_s26 = scalar_lea.vmem %s5076_s2, %s5464_s12 }
  0x12   : > { %5200 = vst [vmem:[#allocation4_spill] sm:$0xff] %v5199_v1  ;;  %5201 = vst [vmem:[#allocation5_spill] sm:$0xff] %v3513_v5  ;;  %v3522_v7 = vadd.s32 4608, %v286_v2  ;;  %s3226_s20 = smul.u32 37, %s5464_s12  ;;  %s236_s30 = scalar_lea.vmem %s5077_s3, %s5464_s12 }
  0x13   : > { %s3527_s19 = scalar_lea.vmem %s5074_s0, %s3225_s16  ;;  %v3530_v11 = vsub.s32 %v569_v10, %v3513_v5 }
  0x14   : > { %vm397_vm1 = vcmp.lt.s32.totalorder %v3522_v7, 4624  ;;  %v3534_v12 = vld [vmem:[%s3527_s19] sm:$0xff]  ;;  %v3537_v13 = vld [vmem:[%s3527_s19 + $0x8] sm:$0xff]  ;;  %v3540_v14 = vld [vmem:[%s3527_s19 + $0x10] sm:$0xff]  ;;  %s4292_s23 = scalar_lea.vmem %s5075_s1, %s3226_s20 }
  0x15   : > { %5202 = vst [vmem:[#allocation6_spill] sm:$0xff] %v3530_v11  ;;  %5203 = vst [vmem:[#allocation7_spill] sm:$0xff] %v3534_v12  ;;  %v434_v16 = vsel %vm397_vm1, 1, %v3468_v15  ;;  %v573_v17 = vrot.slane %v563_v9, %v3530_v11  ;;  %v3546_v18 = vld [vmem:[%s3527_s19 + $0x18] sm:$0xff]  ;;  %v3549_v19 = vld [vmem:[%s3527_s19 + $0x20] sm:$0xff]  ;;  %v3574_v27 = vcombine.high %v3534_v12, %v3534_v12  ;;  %v3578_v28 = vcombine.high %v3537_v13, %v3537_v13 }
  0x16   : > { %5204 = vst [vmem:[#allocation8_spill] sm:$0xff] %v3537_v13  ;;  %5205 = vst [vmem:[#allocation9_spill] sm:$0xff] %v3540_v14  ;;  %v3552_v20 = vld [vmem:[%s3527_s19 + $0x28] sm:$0xff]  ;;  %v3555_v21 = vld [vmem:[%s3527_s19 + $0x30] sm:$0xff]  ;;  %v781_v29 = vrot.slane %v434_v16, %v3530_v11  ;;  %v3592_v33 = vcombine.high %v3540_v14, %v3540_v14  ;;  %v3596_v34 = vcombine.high %v3546_v18, %v3546_v18  ;;  %v809_v41 = vsel %vm808_vm2, %v3534_v12, -inf }
  0x17   : > { %5206 = vst [vmem:[#allocation10_spill] sm:$0xff] %v3546_v18  ;;  %5207 = vst [vmem:[#allocation11_spill] sm:$0xff] %v3549_v19  ;;  %v3558_v22 = vld [vmem:[%s3527_s19 + $0x38] sm:$0xff]  ;;  %v3561_v23 = vld [vmem:[%s3527_s19 + $0x40] sm:$0xff]  ;;  %v3600_v35 = vcombine.high %v3549_v19, %v3549_v19  ;;  %v595_v36 = vcombine.low %v573_v17, %v573_v17  ;;  %v3607_v38 = vcombine.high %v3552_v20, %v3552_v20  ;;  %v810_v52 = vrot.slane %v809_v41, 4 }
  0x18   : > { %5208 = vst [vmem:[#allocation12_spill] sm:$0xff] %v3552_v20  ;;  %5209 = vst [vmem:[#allocation13_spill] sm:$0xff] %v3555_v21  ;;  %v3564_v24 = vld [vmem:[%s3527_s19 + $0x48] sm:$0xff]  ;;  %v3567_v25 = vld [vmem:[%s3527_s19 + $0x50] sm:$0xff]  ;;  %v3611_v39 = vcombine.high %v3555_v21, %v3555_v21  ;;  %v3615_v40 = vcombine.high %v3558_v22, %v3558_v22  ;;  %v3621_v42 = vcombine.high %v3561_v23, %v3561_v23  ;;  %v816_v53 = vsel %vm808_vm2, %v3574_v27, -inf }
  0x19   : > { %5210 = vst [vmem:[#allocation14_spill] sm:$0xff] %v3558_v22  ;;  %5211 = vst [vmem:[#allocation15_spill] sm:$0xff] %v3561_v23  ;;  %v3570_v26 = vld [vmem:[%s3527_s19 + $0x58] sm:$0xff]  ;;  %v3582_v30 = vld [vmem:[%s3527_s19 + $0x60] sm:$0xff]  ;;  %v3625_v43 = vcombine.high %v3564_v24, %v3564_v24  ;;  %v3629_v44 = vcombine.high %v3567_v25, %v3567_v25  ;;  %v3648_v49 = vrot.slane %v781_v29, %v3530_v11  ;;  %v817_v54 = vrot.slane %v816_v53, 4 }
  0x1a   : > { %5212 = vst [vmem:[#allocation16_spill] sm:$0xff] %v3564_v24  ;;  %5213 = vst [vmem:[#allocation17_spill] sm:$0xff] %v3567_v25  ;;  %v3585_v31 = vld [vmem:[%s3527_s19 + $0x68] sm:$0xff]  ;;  %v3588_v32 = vld [vmem:[%s3527_s19 + $0x70] sm:$0xff]  ;;  %v3633_v45 = vcombine.high %v3570_v26, %v3570_v26  ;;  %v3637_v46 = vcombine.high %v3582_v30, %v3582_v30  ;;  %v3655_v51 = vrot.slane %v595_v36, %v3530_v11  ;;  %v823_v55 = vsel %vm808_vm2, %v3537_v13, -inf }
  0x1b   : > { %5214 = vst [vmem:[#allocation18_spill] sm:$0xff] %v3570_v26  ;;  %5215 = vst [vmem:[#allocation19_spill] sm:$0xff] %v3574_v27  ;;  %v3603_v37 = vld [vmem:[%s3527_s19 + $0x78] sm:$0xff]  ;;  %v3641_v47 = vcombine.high %v3585_v31, %v3585_v31  ;;  %v3645_v48 = vcombine.high %v3588_v32, %v3588_v32  ;;  %v830_v56 = vsel %vm808_vm2, %v3578_v28, -inf  ;;  %v837_v57 = vsel %vm808_vm2, %v3540_v14, -inf }
  0x1c   : > { %5216 = vst [vmem:[#allocation20_spill] sm:$0xff] %v3578_v28  ;;  %5217 = vst [vmem:[#allocation21_spill] sm:$0xff] %v3585_v31  ;;  %v3652_v50 = vcombine.high %v3603_v37, %v3603_v37  ;;  %v811_v58 = vmax.f32 %v809_v41, %v810_v52  ;;  %v824_v59 = vrot.slane %v823_v55, 4  ;;  %v831_v60 = vrot.slane %v830_v56, 4 }
  0x1d   : > { %5218 = vst [vmem:[#allocation22_spill] sm:$0xff] %v3588_v32  ;;  %5219 = vst [vmem:[#allocation23_spill] sm:$0xff] %v3592_v33  ;;  %v838_v61 = vrot.slane %v837_v57, 4  ;;  %v818_v62 = vmax.f32 %v816_v53, %v817_v54  ;;  %v844_v63 = vsel %vm808_vm2, %v3592_v33, -inf  ;;  %v851_v0 = vsel %vm808_vm2, %v3546_v18, -inf  ;;  %v3672_v53 = vld [vmem:[%s3527_s19 + $0x80] sm:$0xff] }
  0x1e   : > { %5220 = vst [vmem:[#allocation24_spill] sm:$0xff] %v3596_v34  ;;  %5221 = vst [vmem:[#allocation25_spill] sm:$0xff] %v3600_v35  ;;  %v858_v2 = vsel %vm808_vm2, %v3596_v34, -inf  ;;  %v812_v3 = vrot.slane %v811_v58, 2  ;;  %v825_v4 = vmax.f32 %v823_v55, %v824_v59  ;;  %v832_v8 = vmax.f32 %v830_v56, %v831_v60  ;;  %v3675_v54 = vld [vmem:[%s3527_s19 + $0x88] sm:$0xff] }
  0x1f   : > { %5222 = vst [vmem:[#allocation26_spill] sm:$0xff] %v3603_v37  ;;  %5223 = vst [vmem:[#allocation27_spill] sm:$0xff] %v3607_v38  ;;  %v839_v9 = vmax.f32 %v837_v57, %v838_v61  ;;  %v819_v10 = vrot.slane %v818_v62, 2  ;;  %v845_v15 = vrot.slane %v844_v63, 4  ;;  %v852_v16 = vrot.slane %v851_v0, 4 }
  0x20   : > { %5224 = vst [vmem:[#allocation28_spill] sm:$0xff] %v3611_v39  ;;  %5225 = vst [vmem:[#allocation29_spill] sm:$0xff] %v3615_v40  ;;  %v859_v17 = vrot.slane %v858_v2, 4  ;;  %v813_v29 = vmax.f32 %v811_v58, %v812_v3  ;;  %v826_v36 = vrot.slane %v825_v4, 2  ;;  %v833_v41 = vrot.slane %v832_v8, 2 }
  0x21   : > { %5226 = vst [vmem:[#allocation30_spill] sm:$0xff] %v3621_v42  ;;  %5227 = vst [vmem:[#allocation31_spill] sm:$0xff] %v3625_v43  ;;  %v840_v52 = vrot.slane %v839_v9, 2  ;;  %v820_v6 = vmax.f32 %v818_v62, %v819_v10  ;;  %v846_v1 = vmax.f32 %v844_v63, %v845_v15  ;;  %v853_v5 = vmax.f32 %v851_v0, %v852_v16  ;;  %v273_v60 = vld [vmem:[%s3527_s19 + $0x90] sm:$0xf] }
  0x22   : > { %5228 = vst [vmem:[#allocation32_spill] sm:$0xff] %v3629_v44  ;;  %5229 = vst [vmem:[#allocation33_spill] sm:$0xff] %v3633_v45  ;;  %v860_v11 = vmax.f32 %v858_v2, %v859_v17  ;;  %v814_v55 = vrot.slane %v813_v29, 1  ;;  %v827_v56 = vmax.f32 %v825_v4, %v826_v36  ;;  %v834_v57 = vmax.f32 %v832_v8, %v833_v41 }
  0x23   : > { %5230 = vst [vmem:[#allocation34_spill] sm:$0xff] %v3637_v46  ;;  %5231 = vst [vmem:[#allocation35_spill] sm:$0xff] %v3641_v47  ;;  %v841_v59 = vmax.f32 %v839_v9, %v840_v52  ;;  %v821_v61 = vrot.slane %v820_v6, 1  ;;  %v847_v34 = vrot.slane %v846_v1, 2  ;;  %v854_v18 = vrot.slane %v853_v5, 2 }
  0x24   : > { %5232 = vst [vmem:[#allocation36_spill] sm:$0xff] %v3645_v48  ;;  %5233 = vst [vmem:[#allocation37_spill] sm:$0xff] %v3648_v49  ;;  %v861_v58 = vrot.slane %v860_v11, 2  ;;  %v3680_v3 = vcombine.high %v3672_v53, %v3672_v53  ;;  %v3684_v33 = vcombine.high %v3675_v54, %v3675_v54  ;;  %v828_v63 = vrot.slane %v827_v56, 1 }
  0x25   : > { %5234 = vst [vmem:[#allocation38_spill] sm:$0xff] %v3652_v50  ;;  %5235 = vst [vmem:[#allocation39_spill] sm:$0xff] %v3655_v51  ;;  %v835_v2 = vrot.slane %v834_v57, 1  ;;  %v848_v4 = vmax.f32 %v846_v1, %v847_v34  ;;  %v855_v8 = vmax.f32 %v853_v5, %v854_v18  ;;  %v3692_v9 = vsel %vm397_vm1, %v273_v60, 0.0 }
  0x26   : > { %5236 = vst [vmem:[#allocation40_spill] sm:$0xff] %v3680_v3  ;;  %5237 = vst [vmem:[#allocation41_spill] sm:$0xff] %v3684_v33  ;;  %v3694_v10 = vmax.f32 %v813_v29, %v814_v55  ;;  %v842_v15 = vrot.slane %v841_v59, 1  ;;  %v865_v16 = vsel %vm808_vm2, %v3549_v19, -inf  ;;  %v3698_v17 = vmax.f32 %v820_v6, %v821_v61 }
  0x27   : > { %5238 = vst [vmem:[#allocation42_spill] sm:$0xff] %v3692_v9  ;;  %v3700_v36 = vmax.f32 %v827_v56, %v828_v63  ;;  %v862_v41 = vmax.f32 %v860_v11, %v861_v58  ;;  %v866_v52 = vrot.slane %v865_v16, 4  ;;  %v872_v1 = vsel %vm808_vm2, %v3600_v35, -inf }
  0x28   : > { %5239 = vst [vmem:[#allocation43_spill] sm:$0xff] %v3694_v10  ;;  %5240 = vst [vmem:[#allocation44_spill] sm:$0xff] %v3698_v17  ;;  %v879_v5 = vsel %vm808_vm2, %v3552_v20, -inf  ;;  %v886_v7 = vsel %vm808_vm2, %v3607_v38, -inf  ;;  %v893_v18 = vsel %vm808_vm2, %v3555_v21, -inf  ;;  %v3710_v34 = vmax.f32 %v834_v57, %v835_v2 }
  0x29   : > { %5241 = vst [vmem:[#allocation45_spill] sm:$0xff] %v3700_v36  ;;  %v849_v6 = vrot.slane %v848_v4, 1  ;;  %v856_v29 = vrot.slane %v855_v8, 1  ;;  %v867_v55 = vmax.f32 %v865_v16, %v866_v52  ;;  %v873_v56 = vrot.slane %v872_v1, 4 }
  0x2a   : > { %5242 = vst [vmem:[#allocation46_spill] sm:$0xff] %v3710_v34  ;;  %v880_v11 = vrot.slane %v879_v5, 4  ;;  %v887_v60 = vrot.slane %v886_v7, 4  ;;  %v894_v61 = vrot.slane %v893_v18, 4  ;;  %v900_v63 = vsel %vm808_vm2, %v3611_v39, -inf }
  0x2b   : > { %v868_v58 = vrot.slane %v867_v55, 2  ;;  %v907_v0 = vsel %vm808_vm2, %v3558_v22, -inf  ;;  %v914_v62 = vsel %vm808_vm2, %v3615_v40, -inf  ;;  %v874_v49 = vmax.f32 %v872_v1, %v873_v56 }
  0x2c   : > { %v881_v57 = vmax.f32 %v879_v5, %v880_v11  ;;  %v888_v2 = vmax.f32 %v886_v7, %v887_v60  ;;  %v895_v51 = vmax.f32 %v893_v18, %v894_v61  ;;  %v901_v16 = vrot.slane %v900_v63, 4 }
  0x2d   : > { %v869_v21 = vmax.f32 %v867_v55, %v868_v58  ;;  %v908_v52 = vrot.slane %v907_v0, 4  ;;  %v915_v38 = vrot.slane %v914_v62, 4  ;;  %v875_v20 = vrot.slane %v874_v49, 2 }
  0x2e   : > { %v882_v35 = vrot.slane %v881_v57, 2  ;;  %v889_v19 = vrot.slane %v888_v2, 2  ;;  %v896_v14 = vrot.slane %v895_v51, 2  ;;  %v863_v28 = vrot.slane %v862_v41, 1 }
  0x2f   : > { %v902_v39 = vmax.f32 %v900_v63, %v901_v16  ;;  %v909_v34 = vmax.f32 %v907_v0, %v908_v52  ;;  %v916_v13 = vmax.f32 %v914_v62, %v915_v38  ;;  %v870_v22 = vrot.slane %v869_v21, 1 }
  0x30   : > { %v876_v36 = vmax.f32 %v874_v49, %v875_v20  ;;  %v883_v27 = vmax.f32 %v881_v57, %v882_v35  ;;  %v890_v40 = vmax.f32 %v888_v2, %v889_v19  ;;  %v897_v1 = vmax.f32 %v895_v51, %v896_v14 }
  0x31   : > { %v903_v5 = vrot.slane %v902_v39, 2  ;;  %v910_v7 = vrot.slane %v909_v34, 2  ;;  %v917_v18 = vrot.slane %v916_v13, 2  ;;  %v3718_v55 = vmax.f32 %v841_v59, %v842_v15 }
  0x32   : > { %v3720_v56 = vmax.f32 %v848_v4, %v849_v6  ;;  %v877_v11 = vrot.slane %v876_v36, 1  ;;  %v884_v60 = vrot.slane %v883_v27, 1  ;;  %v921_v38 = vsel %vm808_vm2, %v3561_v23, -inf }
  0x33   : > { %5243 = vst [vmem:[#allocation47_spill] sm:$0xff] %v3718_v55  ;;  %v904_v61 = vmax.f32 %v902_v39, %v903_v5  ;;  %v911_v58 = vmax.f32 %v909_v34, %v910_v7  ;;  %v918_v17 = vmax.f32 %v916_v13, %v917_v18  ;;  %v3724_v62 = vmax.f32 %v855_v8, %v856_v29 }
  0x34   : > { %5244 = vst [vmem:[#allocation48_spill] sm:$0xff] %v3720_v56  ;;  %v3726_v20 = vmax.f32 %v862_v41, %v863_v28  ;;  %v3728_v14 = vmax.f32 %v869_v21, %v870_v22  ;;  %v891_v19 = vrot.slane %v890_v40, 1  ;;  %v3730_v35 = vmax.f32 %v876_v36, %v877_v11 }
  0x35   : > { %5245 = vst [vmem:[#allocation49_spill] sm:$0xff] %v3724_v62  ;;  %v3732_v49 = vmax.f32 %v883_v27, %v884_v60  ;;  %v898_v51 = vrot.slane %v897_v1, 1  ;;  %v922_v59 = vrot.slane %v921_v38, 4  ;;  %v928_v39 = vsel %vm808_vm2, %v3621_v42, -inf }
  0x36   : > { %5246 = vst [vmem:[#allocation50_spill] sm:$0xff] %v3726_v20  ;;  %5247 = vst [vmem:[#allocation51_spill] sm:$0xff] %v3728_v14  ;;  %v935_v13 = vsel %vm808_vm2, %v3564_v24, -inf  ;;  %v942_v0 = vsel %vm808_vm2, %v3625_v43, -inf  ;;  %v949_v21 = vsel %vm808_vm2, %v3567_v25, -inf  ;;  %v905_v22 = vrot.slane %v904_v61, 1 }
  0x37   : > { %5248 = vst [vmem:[#allocation52_spill] sm:$0xff] %v3730_v35  ;;  %5249 = vst [vmem:[#allocation53_spill] sm:$0xff] %v3732_v49  ;;  %v912_v28 = vrot.slane %v911_v58, 1  ;;  %v919_v4 = vrot.slane %v918_v17, 1  ;;  %v923_v8 = vmax.f32 %v921_v38, %v922_v59  ;;  %v929_v27 = vrot.slane %v928_v39, 4 }
  0x38   : > { %v936_v15 = vrot.slane %v935_v13, 4  ;;  %v943_v36 = vrot.slane %v942_v0, 4  ;;  %v950_v41 = vrot.slane %v949_v21, 4  ;;  %v956_v6 = vsel %vm808_vm2, %v3629_v44, -inf }
  0x39   : > { %v924_v34 = vrot.slane %v923_v8, 2  ;;  %v963_v29 = vsel %vm808_vm2, %v3570_v26, -inf  ;;  %v970_v63 = vsel %vm808_vm2, %v3633_v45, -inf  ;;  %v930_v57 = vmax.f32 %v928_v39, %v929_v27 }
  0x3a   : > { %v937_v2 = vmax.f32 %v935_v13, %v936_v15  ;;  %v944_v16 = vmax.f32 %v942_v0, %v943_v36  ;;  %v951_v52 = vmax.f32 %v949_v21, %v950_v41  ;;  %v957_v7 = vrot.slane %v956_v6, 4 }
  0x3b   : > { %v925_v5 = vmax.f32 %v923_v8, %v924_v34  ;;  %v964_v18 = vrot.slane %v963_v29, 4  ;;  %v971_v11 = vrot.slane %v970_v63, 4  ;;  %v931_v60 = vrot.slane %v930_v57, 2 }
  0x3c   : > { %v938_v38 = vrot.slane %v937_v2, 2  ;;  %v945_v59 = vrot.slane %v944_v16, 2  ;;  %v952_v25 = vrot.slane %v951_v52, 2  ;;  %v958_v44 = vmax.f32 %v956_v6, %v957_v7 }
  0x3d   : > { %v926_v43 = vrot.slane %v925_v5, 1  ;;  %v965_v24 = vmax.f32 %v963_v29, %v964_v18  ;;  %v972_v42 = vmax.f32 %v970_v63, %v971_v11  ;;  %v932_v26 = vmax.f32 %v930_v57, %v931_v60 }
  0x3e   : > { %v939_v23 = vmax.f32 %v937_v2, %v938_v38  ;;  %v946_v49 = vmax.f32 %v944_v16, %v945_v59  ;;  %v953_v45 = vmax.f32 %v951_v52, %v952_v25  ;;  %v3748_v39 = vmax.f32 %v890_v40, %v891_v19 }
  0x3f   : > { %v959_v13 = vrot.slane %v958_v44, 2  ;;  %v966_v0 = vrot.slane %v965_v24, 2  ;;  %v973_v21 = vrot.slane %v972_v42, 2  ;;  %v3750_v8 = vmax.f32 %v897_v1, %v898_v51 }
  0x40   : > { %5250 = vst [vmem:[#allocation54_spill] sm:$0xff] %v3748_v39  ;;  %v3752_v27 = vmax.f32 %v904_v61, %v905_v22  ;;  %v933_v15 = vrot.slane %v932_v26, 1  ;;  %v940_v36 = vrot.slane %v939_v23, 1  ;;  %v947_v41 = vrot.slane %v946_v49, 1 }
  0x41   : > { %5251 = vst [vmem:[#allocation55_spill] sm:$0xff] %v3750_v8  ;;  %v960_v34 = vmax.f32 %v958_v44, %v959_v13  ;;  %v967_v6 = vmax.f32 %v965_v24, %v966_v0  ;;  %v977_v29 = vsel %vm808_vm2, %v3582_v30, -inf  ;;  %v3756_v63 = vmax.f32 %v911_v58, %v912_v28 }
  0x42   : > { %5252 = vst [vmem:[#allocation56_spill] sm:$0xff] %v3752_v27  ;;  %v3758_v25 = vmax.f32 %v918_v17, %v919_v4  ;;  %v3760_v40 = vmax.f32 %v925_v5, %v926_v43  ;;  %v954_v19 = vrot.slane %v953_v45, 1  ;;  %v3762_v57 = vmax.f32 %v932_v26, %v933_v15 }
  0x43   : > { %5253 = vst [vmem:[#allocation57_spill] sm:$0xff] %v3756_v63  ;;  %v3764_v1 = vmax.f32 %v939_v23, %v940_v36  ;;  %v974_v61 = vmax.f32 %v972_v42, %v973_v21  ;;  %v978_v51 = vrot.slane %v977_v29, 4  ;;  %v984_v44 = vsel %vm808_vm2, %v3637_v46, -inf }
  0x44   : > { %5254 = vst [vmem:[#allocation58_spill] sm:$0xff] %v3758_v25  ;;  %5255 = vst [vmem:[#allocation59_spill] sm:$0xff] %v3760_v40  ;;  %v991_v24 = vsel %vm808_vm2, %v3585_v31, -inf  ;;  %v998_v58 = vsel %vm808_vm2, %v3641_v47, -inf  ;;  %v1005_v43 = vsel %vm808_vm2, %v3588_v32, -inf  ;;  %v3774_v17 = vmax.f32 %v946_v49, %v947_v41 }
  0x45   : > { %5256 = vst [vmem:[#allocation60_spill] sm:$0xff] %v3762_v57  ;;  %5257 = vst [vmem:[#allocation61_spill] sm:$0xff] %v3764_v1  ;;  %v961_v26 = vrot.slane %v960_v34, 1  ;;  %v968_v22 = vrot.slane %v967_v6, 1  ;;  %v979_v23 = vmax.f32 %v977_v29, %v978_v51  ;;  %v985_v28 = vrot.slane %v984_v44, 4 }
  0x46   : > { %5258 = vst [vmem:[#allocation62_spill] sm:$0xff] %v3774_v17  ;;  %v992_v42 = vrot.slane %v991_v24, 4  ;;  %v999_v4 = vrot.slane %v998_v58, 4  ;;  %v1006_v2 = vrot.slane %v1005_v43, 4  ;;  %v1012_v52 = vsel %vm808_vm2, %v3645_v48, -inf }
  0x47   : > { %v980_v16 = vrot.slane %v979_v23, 2  ;;  %v1019_v5 = vsel %vm808_vm2, %v3603_v37, -inf  ;;  %v1026_v7 = vsel %vm808_vm2, %v3652_v50, -inf  ;;  %v986_v18 = vmax.f32 %v984_v44, %v985_v28 }
  0x48   : > { %v993_v49 = vmax.f32 %v991_v24, %v992_v42  ;;  %v1000_v11 = vmax.f32 %v998_v58, %v999_v4  ;;  %v1007_v60 = vmax.f32 %v1005_v43, %v1006_v2  ;;  %v1013_v59 = vrot.slane %v1012_v52, 4 }
  0x49   : > { %v981_v38 = vmax.f32 %v979_v23, %v980_v16  ;;  %v1020_v13 = vrot.slane %v1019_v5, 4  ;;  %v1027_v0 = vrot.slane %v1026_v7, 4  ;;  %v987_v21 = vrot.slane %v986_v18, 2 }
  0x4a   : > { %v994_v15 = vrot.slane %v993_v49, 2  ;;  %v1001_v36 = vrot.slane %v1000_v11, 2  ;;  %v1008_v41 = vrot.slane %v1007_v60, 2  ;;  %v975_v29 = vrot.slane %v974_v61, 1 }
  0x4b   : > { %v1014_v51 = vmax.f32 %v1012_v52, %v1013_v59  ;;  %v1021_v48 = vmax.f32 %v1019_v5, %v1020_v13  ;;  %v1028_v32 = vmax.f32 %v1026_v7, %v1027_v0  ;;  %v982_v37 = vrot.slane %v981_v38, 1 }
  0x4c   : > { %v988_v47 = vmax.f32 %v986_v18, %v987_v21  ;;  %v995_v31 = vmax.f32 %v993_v49, %v994_v15  ;;  %v1002_v50 = vmax.f32 %v1000_v11, %v1001_v36  ;;  %v1009_v44 = vmax.f32 %v1007_v60, %v1008_v41 }
  0x4d   : > { %v1015_v24 = vrot.slane %v1014_v51, 2  ;;  %v1022_v58 = vrot.slane %v1021_v48, 2  ;;  %v1029_v43 = vrot.slane %v1028_v32, 2  ;;  %v3782_v23 = vmax.f32 %v953_v45, %v954_v19 }
  0x4e   : > { %v3784_v28 = vmax.f32 %v960_v34, %v961_v26  ;;  %v989_v42 = vrot.slane %v988_v47, 1  ;;  %v996_v4 = vrot.slane %v995_v31, 1  ;;  %v1033_v52 = vsel %vm808_vm2, %v3672_v53, -inf }
  0x4f   : > { %5259 = vst [vmem:[#allocation63_spill] sm:$0xff] %v3782_v23  ;;  %v1016_v2 = vmax.f32 %v1014_v51, %v1015_v24  ;;  %v1023_v16 = vmax.f32 %v1021_v48, %v1022_v58  ;;  %v1030_v46 = vmax.f32 %v1028_v32, %v1029_v43  ;;  %v3788_v5 = vmax.f32 %v967_v6, %v968_v22 }
  0x50   : > { %5260 = vst [vmem:[#allocation64_spill] sm:$0xff] %v3784_v28  ;;  %v3790_v7 = vmax.f32 %v974_v61, %v975_v29  ;;  %v3792_v18 = vmax.f32 %v981_v38, %v982_v37  ;;  %v1003_v49 = vrot.slane %v1002_v50, 1  ;;  %v3794_v11 = vmax.f32 %v988_v47, %v989_v42 }
  0x51   : > { %5261 = vst [vmem:[#allocation65_spill] sm:$0xff] %v3788_v5  ;;  %v1010_v45 = vrot.slane %v1009_v44, 1  ;;  %v1017_v34 = vrot.slane %v1016_v2, 1  ;;  %v1034_v19 = vrot.slane %v1033_v52, 4  ;;  %v1040_v26 = vsel %vm808_vm2, %v3680_v3, -inf }
  0x52   : > { %5262 = vst [vmem:[#allocation66_spill] sm:$0xff] %v3790_v7  ;;  %5263 = vst [vmem:[#allocation67_spill] sm:$0xff] %v3792_v18  ;;  %v1047_v32 = vsel %vm808_vm2, %v3675_v54, -inf  ;;  %v1054_v48 = vsel %vm808_vm2, %v3684_v33, -inf  ;;  %v1061_v6 = vsel %vm808_vm2, %v3692_v9, -inf  ;;  %v3804_v37 = vmax.f32 %v995_v31, %v996_v4 }
  0x53   : > { %5264 = vst [vmem:[#allocation68_spill] sm:$0xff] %v3794_v11  ;;  %v1024_v61 = vrot.slane %v1023_v16, 1  ;;  %v1031_v47 = vrot.slane %v1030_v46, 1  ;;  %v1035_v22 = vmax.f32 %v1033_v52, %v1034_v19  ;;  %v1041_v60 = vrot.slane %v1040_v26, 4  ;;  %v5273_v19 = vld [vmem:[#allocation45_spill] sm:$0xff] }
  0x54   : > { %5265 = vst [vmem:[#allocation69_spill] sm:$0xff] %v3804_v37  ;;  %v1048_v38 = vrot.slane %v1047_v32, 4  ;;  %v1055_v59 = vrot.slane %v1054_v48, 4  ;;  %v1062_v13 = vrot.slane %v1061_v6, 4  ;;  %v3806_v0 = vmax.f32 %v1002_v50, %v1003_v49 }
  0x55   : > { %v3808_v21 = vmax.f32 %v1009_v44, %v1010_v45  ;;  %v3810_v15 = vmax.f32 %v1016_v2, %v1017_v34  ;;  %v1036_v36 = vrot.slane %v1035_v22, 2  ;;  %v1042_v41 = vmax.f32 %v1040_v26, %v1041_v60  ;;  %v5271_v2 = vld [vmem:[#allocation44_spill] sm:$0xff]  ;;  %v5272_v45 = vld [vmem:[#allocation19_spill] sm:$0xff]  ;;  %v5277_v60 = vld [vmem:[#allocation9_spill] sm:$0xff] }
  0x56   : > { %5266 = vst [vmem:[#allocation70_spill] sm:$0xff] %v3806_v0  ;;  %v1049_v29 = vmax.f32 %v1047_v32, %v1048_v38  ;;  %v1056_v51 = vmax.f32 %v1054_v48, %v1055_v59  ;;  %v1063_v24 = vmax.f32 %v1061_v6, %v1062_v13  ;;  %v3812_v31 = vmax.f32 %v1023_v16, %v1024_v61  ;;  %v5274_v26 = vld [vmem:[#allocation8_spill] sm:$0xff]  ;;  %v5275_v48 = vld [vmem:[#allocation46_spill] sm:$0xff]  ;;  %v5278_v59 = vld [vmem:[#allocation23_spill] sm:$0xff] }
  0x57   : > { %5267 = vst [vmem:[#allocation71_spill] sm:$0xff] %v3808_v21  ;;  %5268 = vst [vmem:[#allocation72_spill] sm:$0xff] %v3810_v15  ;;  %v3814_v58 = vmax.f32 %v1030_v46, %v1031_v47  ;;  %v1037_v43 = vmax.f32 %v1035_v22, %v1036_v36  ;;  %v1068_v42 = vsub.f32 %v3534_v12, %v3694_v10  ;;  %v1043_v4 = vrot.slane %v1042_v41, 2  ;;  %v5276_v16 = vld [vmem:[#allocation20_spill] sm:$0xff]  ;;  %v5279_v36 = vld [vmem:[#allocation10_spill] sm:$0xff] }
  0x58   : > { %5269 = vst [vmem:[#allocation73_spill] sm:$0xff] %v3812_v31  ;;  %v1050_v50 = vrot.slane %v1049_v29, 2  ;;  %v1057_v52 = vrot.slane %v1056_v51, 2  ;;  %v1064_v44 = vrot.slane %v1063_v24, 2  ;;  %v1069_v34 = vsub.f32 %v5272_v45, %v5271_v2  ;;  %v5280_v2 = vld [vmem:[#allocation24_spill] sm:$0xff] }
  0x59   : > { %5270 = vst [vmem:[#allocation74_spill] sm:$0xff] %v3814_v58  ;;  %v1038_v49 = vrot.slane %v1037_v43, 1  ;;  %v1070_v32 = vsub.f32 %v5274_v26, %v5273_v19  ;;  %v1071_v6 = vsub.f32 %v5276_v16, %v5275_v48  ;;  %v1044_v46 = vmax.f32 %v1042_v41, %v1043_v4 }
  0x5a   : > { %v1051_v61 = vmax.f32 %v1049_v29, %v1050_v50  ;;  %v1058_v47 = vmax.f32 %v1056_v51, %v1057_v52  ;;  %v1065_v22 = vmax.f32 %v1063_v24, %v1064_v44  ;;  %v1072_v38 = vsub.f32 %v5277_v60, %v3718_v55  ;;  %v5282_v29 = vld [vmem:[#allocation11_spill] sm:$0xff]  ;;  %v5283_v24 = vld [vmem:[#allocation25_spill] sm:$0xff]  ;;  %v5285_v52 = vld [vmem:[#allocation12_spill] sm:$0xff] }
  0x5b   : > { %v1073_v13 = vsub.f32 %v5278_v59, %v3720_v56  ;;  %v1074_v10 = vsub.f32 %v5279_v36, %v3724_v62  ;;  %v1075_v12 = vsub.f32 %v5280_v2, %v3726_v20  ;;  %v1045_v19 = vrot.slane %v1044_v46, 1  ;;  %v5284_v50 = vld [vmem:[#allocation53_spill] sm:$0xff]  ;;  %v5286_v60 = vld [vmem:[#allocation27_spill] sm:$0xff]  ;;  %v5288_v56 = vld [vmem:[#allocation28_spill] sm:$0xff] }
  0x5c   : > { %v1052_v26 = vrot.slane %v1051_v61, 1  ;;  %v1059_v45 = vrot.slane %v1058_v47, 1  ;;  %v1066_v48 = vrot.slane %v1065_v22, 1  ;;  %v3832_v41 = vmax.f32 %v1037_v43, %v1038_v49  ;;  %v5287_v20 = vld [vmem:[#allocation13_spill] sm:$0xff]  ;;  %v5289_v43 = vld [vmem:[#allocation14_spill] sm:$0xff] }
  0x5d   : > { %v1076_v51 = vsub.f32 %v5282_v29, %v3728_v14  ;;  %v1077_v4 = vsub.f32 %v5283_v24, %v3730_v35  ;;  %v1078_v44 = vsub.f32 %v5285_v52, %v5284_v50  ;;  %v1079_v36 = vsub.f32 %v5286_v60, %v3748_v39  ;;  %v5293_v52 = vld [vmem:[#allocation29_spill] sm:$0xff]  ;;  %v5295_v39 = vld [vmem:[#allocation15_spill] sm:$0xff] }
  0x5e   : > { %5281 = vst [vmem:[#allocation20_spill] sm:$0xff] %v3832_v41  ;;  %v1080_v62 = vsub.f32 %v5287_v20, %v3750_v8  ;;  %v1081_v55 = vsub.f32 %v5288_v56, %v3752_v27  ;;  %v1082_v49 = vsub.f32 %v5289_v43, %v3756_v63  ;;  %v3848_v2 = vmax.f32 %v1044_v46, %v1045_v19  ;;  %v5296_v8 = vld [vmem:[#allocation30_spill] sm:$0xff]  ;;  %v5297_v56 = vld [vmem:[#allocation16_spill] sm:$0xff]  ;;  %v5298_v19 = vld [vmem:[#allocation31_spill] sm:$0xff] }
  0x5f   : > { %v3850_v29 = vmax.f32 %v1051_v61, %v1052_v26  ;;  %v3852_v35 = vmax.f32 %v1058_v47, %v1059_v45  ;;  %v1083_v50 = vsub.f32 %v5293_v52, %v3758_v25  ;;  %v3856_v14 = vmax.f32 %v1065_v22, %v1066_v48  ;;  %v5299_v45 = vld [vmem:[#allocation17_spill] sm:$0xff]  ;;  %v5300_v61 = vld [vmem:[#allocation32_spill] sm:$0xff]  ;;  %v5301_v48 = vld [vmem:[#allocation18_spill] sm:$0xff] }
  0x60   : > { %5290 = vst [vmem:[#allocation9_spill] sm:$0xff] %v3848_v2  ;;  %v1084_v20 = vsub.f32 %v5295_v39, %v3760_v40  ;;  %v1085_v27 = vsub.f32 %v5296_v8, %v3762_v57  ;;  %v1086_v43 = vsub.f32 %v5297_v56, %v3764_v1  ;;  %v1087_v26 = vsub.f32 %v5298_v19, %v3774_v17  ;;  %v5302_v39 = vld [vmem:[#allocation33_spill] sm:$0xff]  ;;  %v5303_v56 = vld [vmem:[#allocation34_spill] sm:$0xff] }
  0x61   : > { %5291 = vst [vmem:[#allocation23_spill] sm:$0xff] %v3850_v29  ;;  %5292 = vst [vmem:[#allocation10_spill] sm:$0xff] %v3852_v35  ;;  %v1088_v46 = vsub.f32 %v5299_v45, %v3782_v23  ;;  %v1089_v47 = vsub.f32 %v5300_v61, %v3784_v28  ;;  %v1090_v22 = vsub.f32 %v5301_v48, %v3788_v5  ;;  %v5304_v17 = vld [vmem:[#allocation21_spill] sm:$0xff]  ;;  %v5305_v45 = vld [vmem:[#allocation35_spill] sm:$0xff]  ;;  %v1105_v61 = vmul.f32 1.442695, %v1068_v42 }
  0x62   : > { %5294 = vst [vmem:[#allocation11_spill] sm:$0xff] %v3856_v14  ;;  %v1091_v40 = vsub.f32 %v5302_v39, %v3790_v7  ;;  %v1092_v57 = vsub.f32 %v3582_v30, %v3792_v18  ;;  %v1093_v1 = vsub.f32 %v5303_v56, %v3794_v11  ;;  %v1094_v25 = vsub.f32 %v5304_v17, %v3804_v37  ;;  %v5306_v28 = vld [vmem:[#allocation22_spill] sm:$0xff]  ;;  %v5307_v48 = vld [vmem:[#allocation36_spill] sm:$0xff] }
  0x63   : > { %v1095_v23 = vsub.f32 %v5305_v45, %v3806_v0  ;;  %v1096_v63 = vsub.f32 %v5306_v28, %v3808_v21  ;;  %v1097_v5 = vsub.f32 %v5307_v48, %v3810_v15  ;;  %v5308_v7 = vld [vmem:[#allocation26_spill] sm:$0xff]  ;;  %v1107_v11 = vmul.f32 1.442695, %v1069_v34 }
  0x64   : > { %v1098_v39 = vsub.f32 %v5308_v7, %v3812_v31  ;;  %v5309_v30 = vld [vmem:[#allocation38_spill] sm:$0xff]  ;;  %v1109_v56 = vmul.f32 1.442695, %v1070_v32  ;;  %v1100_v17 = vsub.f32 %v3672_v53, %v3832_v41  ;;  %v1101_v0 = vsub.f32 %v3680_v3, %v3848_v2  ;;  %v5311_v53 = vld [vmem:[#allocation7_spill] sm:$0xff] }
  0x65   : > { %v1099_v18 = vsub.f32 %v5309_v30, %v3814_v58  ;;  %v1102_v28 = vsub.f32 %v3675_v54, %v3850_v29  ;;  %v1111_v21 = vmul.f32 1.442695, %v1071_v6  ;;  %v1103_v15 = vsub.f32 %v3684_v33, %v3852_v35  ;;  %v5310_v58 = vld [vmem:[#allocation19_spill] sm:$0xff] }
  0x66   : > { %v1104_v7 = vsub.f32 %v3692_v9, %v3856_v14  ;;  %3277 = vpow2.f32 %v1105_v61  ;;  %v1113_v42 = vmul.f32 1.442695, %v1072_v38  ;;  %v1115_v34 = vmul.f32 1.442695, %v1073_v13 }
  0x67   : > { %3279 = vpow2.f32 %v1107_v11  ;;  %v1117_v32 = vmul.f32 1.442695, %v1074_v10  ;;  %v1119_v2 = vmul.f32 1.442695, %v1075_v12  ;;  %v1121_v31 = vmul.f32 1.442695, %v1076_v51 }
  0x68   : > { %3281 = vpow2.f32 %v1109_v56  ;;  %v1123_v37 = vmul.f32 1.442695, %v1077_v4  ;;  %v1125_v54 = vmul.f32 1.442695, %v1078_v44  ;;  %v1127_v6 = vmul.f32 1.442695, %v1079_v36 }
  0x69   : > { %3283 = vpow2.f32 %v1111_v21  ;;  %v1129_v29 = vmul.f32 1.442695, %v1080_v62  ;;  %v1131_v35 = vmul.f32 1.442695, %v1081_v55  ;;  %v1133_v33 = vmul.f32 1.442695, %v1082_v49 }
  0x6a   : > { %3285 = vpow2.f32 %v1113_v42  ;;  %v1135_v14 = vmul.f32 1.442695, %v1083_v50  ;;  %v1137_v38 = vmul.f32 1.442695, %v1084_v20  ;;  %v1139_v11 = vmul.f32 1.442695, %v1085_v27 }
  0x6b   : > { %3287 = vpow2.f32 %v1115_v34  ;;  %v1141_v13 = vmul.f32 1.442695, %v1086_v43  ;;  %v1143_v10 = vmul.f32 1.442695, %v1087_v26  ;;  %v3902_v61 = vmul.f32 1.442695, %v1088_v46 }
  0x6c   : > { %3289 = vpow2.f32 %v1117_v32  ;;  %v3904_v56 = vmul.f32 1.442695, %v1089_v47  ;;  %v3906_v12 = vmul.f32 1.442695, %v1090_v22  ;;  %v3908_v21 = vmul.f32 1.442695, %v1091_v40 }
  0x6d   : > { %3291 = vpow2.f32 %v1119_v2  ;;  %v3910_v62 = vmul.f32 1.442695, %v1092_v57  ;;  %v3912_v55 = vmul.f32 1.442695, %v1093_v1  ;;  %v3914_v51 = vmul.f32 1.442695, %v1094_v25 }
  0x6e   : > { %3293 = vpow2.f32 %v1121_v31  ;;  %v3916_v27 = vmul.f32 1.442695, %v1095_v23  ;;  %v3918_v4 = vmul.f32 1.442695, %v1096_v63  ;;  %v3920_v50 = vmul.f32 1.442695, %v1097_v5 }
  0x6f   : > { %3295 = vpow2.f32 %v1123_v37  ;;  %v3922_v44 = vmul.f32 1.442695, %v1098_v39  ;;  %v3924_v40 = vmul.f32 1.442695, %v1099_v18  ;;  %v3926_v57 = vmul.f32 1.442695, %v1100_v17 }
  0x70   : > { %v3278_v2 = vpop.eup %3277  ;;  %3297 = vpow2.f32 %v1125_v54  ;;  %v3928_v31 = vmul.f32 1.442695, %v1101_v0  ;;  %v3930_v25 = vmul.f32 1.442695, %v1102_v28  ;;  %v3932_v23 = vmul.f32 1.442695, %v1103_v15 }
  0x71   : > { %v3280_v1 = vpop.eup %3279  ;;  %3299 = vpow2.f32 %v1127_v6  ;;  %v1179_v63 = vsel %vm808_vm2, %v3278_v2, 0.0  ;;  %v3935_v37 = vmul.f32 1.442695, %v1104_v7  ;;  %v5312_v43 = vld [vmem:[#allocation8_spill] sm:$0xff] }
  0x72   : > { %v3282_v5 = vpop.eup %3281  ;;  %3301 = vpow2.f32 %v1129_v29  ;;  %v1180_v36 = vrot.slane %v1179_v63, 4  ;;  %v1186_v18 = vsel %vm808_vm2, %v3280_v1, 0.0 }
  0x73   : > { %v3284_v49 = vpop.eup %3283  ;;  %3303 = vpow2.f32 %v1131_v35  ;;  %v1187_v20 = vrot.slane %v1186_v18, 4  ;;  %v1193_v0 = vsel %vm808_vm2, %v3282_v5, 0.0 }
  0x74   : > { %v3286_v46 = vpop.eup %3285  ;;  %3305 = vpow2.f32 %v1133_v33  ;;  %v1181_v15 = vadd.f32 %v1180_v36, %v1179_v63  ;;  %v1194_v47 = vrot.slane %v1193_v0, 4  ;;  %v1200_v22 = vsel %vm808_vm2, %v3284_v49, 0.0 }
  0x75   : > { %v3288_v29 = vpop.eup %3287  ;;  %3307 = vpow2.f32 %v1135_v14  ;;  %v1188_v39 = vadd.f32 %v1187_v20, %v1186_v18  ;;  %v1201_v17 = vrot.slane %v1200_v22, 4  ;;  %v1207_v28 = vsel %vm808_vm2, %v3286_v46, 0.0 }
  0x76   : > { %v3290_v7 = vpop.eup %3289  ;;  %3309 = vpow2.f32 %v1137_v38  ;;  %v1182_v35 = vrot.slane %v1181_v15, 2  ;;  %v1195_v42 = vadd.f32 %v1194_v47, %v1193_v0  ;;  %v1208_v34 = vrot.slane %v1207_v28, 4 }
  0x77   : > { %v3292_v32 = vpop.eup %3291  ;;  %3311 = vpow2.f32 %v1139_v11  ;;  %v1189_v54 = vrot.slane %v1188_v39, 2  ;;  %v1202_v6 = vadd.f32 %v1201_v17, %v1200_v22  ;;  %v1214_v33 = vsel %vm808_vm2, %v3288_v29, 0.0 }
  0x78   : > { %v3294_v2 = vpop.eup %3293  ;;  %3313 = vpow2.f32 %v1141_v13  ;;  %v1183_v1 = vadd.f32 %v1182_v35, %v1181_v15  ;;  %v1196_v63 = vrot.slane %v1195_v42, 2  ;;  %v1209_v14 = vadd.f32 %v1208_v34, %v1207_v28 }
  0x79   : > { %v3296_v5 = vpop.eup %3295  ;;  %3315 = vpow2.f32 %v1143_v10  ;;  %v1190_v36 = vadd.f32 %v1189_v54, %v1188_v39  ;;  %v1203_v18 = vrot.slane %v1202_v6, 2  ;;  %v1215_v49 = vrot.slane %v1214_v33, 4 }
  0x7a   : > { %v3298_v38 = vpop.eup %3297  ;;  %3317 = vpow2.f32 %v3902_v61  ;;  %v1184_v20 = vrot.slane %v1183_v1, 1  ;;  %v1197_v0 = vadd.f32 %v1196_v63, %v1195_v42  ;;  %v1210_v11 = vrot.slane %v1209_v14, 2 }
  0x7b   : > { %v3300_v46 = vpop.eup %3299  ;;  %3319 = vpow2.f32 %v3904_v56  ;;  %v1191_v47 = vrot.slane %v1190_v36, 1  ;;  %v1204_v22 = vadd.f32 %v1203_v18, %v1202_v6  ;;  %v1216_v13 = vadd.f32 %v1215_v49, %v1214_v33 }
  0x7c   : > { %v3946_v15 = vpop.eup %3301  ;;  %3321 = vpow2.f32 %v3906_v12  ;;  %v3949_v10 = vadd.f32 %v1184_v20, %v1183_v1  ;;  %v1198_v29 = vrot.slane %v1197_v0, 1  ;;  %v1211_v39 = vadd.f32 %v1210_v11, %v1209_v14 }
  0x7d   : > { %v3951_v17 = vpop.eup %3303  ;;  %3323 = vpow2.f32 %v3908_v21  ;;  %v3954_v61 = vadd.f32 %v1191_v47, %v1190_v36  ;;  %v1205_v28 = vrot.slane %v1204_v22, 1  ;;  %v1217_v35 = vrot.slane %v1216_v13, 2 }
  0x7e   : > { %v3956_v56 = vpop.eup %3305  ;;  %3325 = vpow2.f32 %v3910_v62  ;;  %v3959_v42 = vadd.f32 %v1198_v29, %v1197_v0  ;;  %v1212_v34 = vrot.slane %v1211_v39, 1  ;;  %v1221_v12 = vsel %vm808_vm2, %v3290_v7, 0.0 }
  0x7f   : > { %v3962_v54 = vpop.eup %3307  ;;  %3327 = vpow2.f32 %v3912_v55  ;;  %v3965_v6 = vadd.f32 %v1205_v28, %v1204_v22  ;;  %v1218_v21 = vadd.f32 %v1217_v35, %v1216_v13  ;;  %v1222_v33 = vrot.slane %v1221_v12, 4 }
  0x80   : > { %v3967_v1 = vpop.eup %3309  ;;  %3329 = vpow2.f32 %v3914_v51  ;;  %v3970_v63 = vadd.f32 %v1212_v34, %v1211_v39  ;;  %v1228_v62 = vsel %vm808_vm2, %v3292_v32, 0.0  ;;  %v1235_v14 = vsel %vm808_vm2, %v3294_v2, 0.0 }
  0x81   : > { %v3974_v36 = vpop.eup %3311  ;;  %3331 = vpow2.f32 %v3916_v27  ;;  %v1219_v7 = vrot.slane %v1218_v21, 1  ;;  %v1223_v55 = vadd.f32 %v1222_v33, %v1221_v12  ;;  %v1229_v18 = vrot.slane %v1228_v62, 4 }
  0x82   : > { %v3977_v49 = vpop.eup %3313  ;;  %3333 = vpow2.f32 %v3918_v4  ;;  %v1236_v20 = vrot.slane %v1235_v14, 4  ;;  %v1242_v51 = vsel %vm808_vm2, %v3296_v5, 0.0  ;;  %v1249_v0 = vsel %vm808_vm2, %v3298_v38, 0.0 }
  0x83   : > { %v3982_v11 = vpop.eup %3315  ;;  %3335 = vpow2.f32 %v3920_v50  ;;  %v3985_v32 = vadd.f32 %v1219_v7, %v1218_v21  ;;  %v1224_v2 = vrot.slane %v1223_v55, 2  ;;  %v1230_v27 = vadd.f32 %v1229_v18, %v1228_v62 }
  0x84   : > { %v3987_v47 = vpop.eup %3317  ;;  %3337 = vpow2.f32 %v3922_v44  ;;  %v1237_v22 = vadd.f32 %v1236_v20, %v1235_v14  ;;  %v1243_v13 = vrot.slane %v1242_v51, 4  ;;  %v1250_v4 = vrot.slane %v1249_v0, 4 }
  0x85   : > { %v3990_v29 = vpop.eup %3319  ;;  %3339 = vpow2.f32 %v3924_v40  ;;  %v1225_v5 = vadd.f32 %v1224_v2, %v1223_v55  ;;  %v1231_v38 = vrot.slane %v1230_v27, 2  ;;  %v1256_v39 = vsel %vm808_vm2, %v3300_v46, 0.0 }
  0x86   : > { %v3994_v50 = vpop.eup %3321  ;;  %3341 = vpow2.f32 %v3926_v57  ;;  %v1238_v28 = vrot.slane %v1237_v22, 2  ;;  %v1244_v35 = vadd.f32 %v1243_v13, %v1242_v51  ;;  %v1251_v34 = vadd.f32 %v1250_v4, %v1249_v0 }
  0x87   : > { %v3997_v12 = vpop.eup %3323  ;;  %3343 = vpow2.f32 %v3928_v31  ;;  %v1226_v44 = vrot.slane %v1225_v5, 1  ;;  %v1232_v21 = vadd.f32 %v1231_v38, %v1230_v27  ;;  %v1257_v33 = vrot.slane %v1256_v39, 4 }
  0x88   : > { %v4000_v62 = vpop.eup %3325  ;;  %3345 = vpow2.f32 %v3930_v25  ;;  %v1239_v40 = vadd.f32 %v1238_v28, %v1237_v22  ;;  %v1245_v46 = vrot.slane %v1244_v35, 2  ;;  %v1252_v14 = vrot.slane %v1251_v34, 2 }
  0x89   : > { %v4003_v7 = vpop.eup %3327  ;;  %3347 = vpow2.f32 %v3932_v23  ;;  %v4006_v57 = vadd.f32 %v1226_v44, %v1225_v5  ;;  %v1233_v55 = vrot.slane %v1232_v21, 1  ;;  %v1258_v18 = vadd.f32 %v1257_v33, %v1256_v39 }
  0x8a   : > { %v4008_v20 = vpop.eup %3329  ;;  %3349 = vpow2.f32 %v3935_v37  ;;  %v1240_v31 = vrot.slane %v1239_v40, 1  ;;  %v1246_v51 = vadd.f32 %v1245_v46, %v1244_v35  ;;  %v1253_v0 = vadd.f32 %v1252_v14, %v1251_v34 }
  0x8b   : > { %v4011_v2 = vpop.eup %3331  ;;  %v4013_v25 = vadd.f32 %v1233_v55, %v1232_v21  ;;  %v1259_v27 = vrot.slane %v1258_v18, 2  ;;  %v1263_v22 = vsel %vm808_vm2, %v3946_v15, 0.0  ;;  %v1270_v23 = vsel %vm808_vm2, %v3951_v17, 0.0 }
  0x8c   : > { %v4019_v13 = vpop.eup %3333  ;;  %v4021_v4 = vadd.f32 %v1240_v31, %v1239_v40  ;;  %v1247_v5 = vrot.slane %v1246_v51, 1  ;;  %v1254_v37 = vrot.slane %v1253_v0, 1  ;;  %v1264_v38 = vrot.slane %v1263_v22, 4 }
  0x8d   : > { %v4023_v39 = vpop.eup %3335  ;;  %v1260_v28 = vadd.f32 %v1259_v27, %v1258_v18  ;;  %v1271_v35 = vrot.slane %v1270_v23, 4  ;;  %v1277_v34 = vsel %vm808_vm2, %v3956_v56, 0.0  ;;  %v1284_v15 = vsel %vm808_vm2, %v3962_v54, 0.0 }
  0x8e   : > { %v4029_v44 = vpop.eup %3337  ;;  %v4031_v17 = vadd.f32 %v1247_v5, %v1246_v51  ;;  %v4033_v21 = vadd.f32 %v1254_v37, %v1253_v0  ;;  %v1265_v33 = vadd.f32 %v1264_v38, %v1263_v22  ;;  %v1278_v40 = vrot.slane %v1277_v34, 4 }
  0x8f   : > { %v4035_v46 = vpop.eup %3339  ;;  %v1261_v14 = vrot.slane %v1260_v28, 1  ;;  %v1272_v55 = vadd.f32 %v1271_v35, %v1270_v23  ;;  %v1285_v18 = vrot.slane %v1284_v15, 4  ;;  %v1291_v31 = vsel %vm808_vm2, %v3967_v1, 0.0 }
  0x90   : > { %v4039_v56 = vpop.eup %3341  ;;  %v1266_v27 = vrot.slane %v1265_v33, 2  ;;  %v1279_v54 = vadd.f32 %v1278_v40, %v1277_v34  ;;  %v1292_v26 = vrot.slane %v1291_v31, 4  ;;  %v1298_v51 = vsel %vm808_vm2, %v3974_v36, 0.0 }
  0x91   : > { %v4043_v0 = vpop.eup %3343  ;;  %v4045_v22 = vadd.f32 %v1261_v14, %v1260_v28  ;;  %v1273_v5 = vrot.slane %v1272_v55, 2  ;;  %v1286_v37 = vadd.f32 %v1285_v18, %v1284_v15  ;;  %v1299_v38 = vrot.slane %v1298_v51, 4 }
  0x92   : > { %v4047_v23 = vpop.eup %3345  ;;  %v1267_v35 = vadd.f32 %v1266_v27, %v1265_v33  ;;  %v1280_v41 = vrot.slane %v1279_v54, 2  ;;  %v1293_v1 = vadd.f32 %v1292_v26, %v1291_v31  ;;  %v1305_v9 = vsel %vm808_vm2, %v3977_v49, 0.0 }
  0x93   : > { %5313 = vst [vmem:[#allocation25_spill] sm:$0xff] %v4045_v22  ;;  %v4051_v34 = vpop.eup %3347  ;;  %v1274_v40 = vadd.f32 %v1273_v5, %v1272_v55  ;;  %v1287_v3 = vrot.slane %v1286_v37, 2  ;;  %v1300_v36 = vadd.f32 %v1299_v38, %v1298_v51  ;;  %v1306_v30 = vrot.slane %v1305_v9, 4 }
  0x94   : > { %v4053_v48 = vpop.eup %3349  ;;  %v1268_v28 = vrot.slane %v1267_v35, 1  ;;  %v1281_v14 = vadd.f32 %v1280_v41, %v1279_v54  ;;  %v1294_v15 = vrot.slane %v1293_v1, 2  ;;  %v1312_v18 = vsel %vm808_vm2, %v3982_v11, 0.0 }
  0x95   : > { %v1275_v33 = vrot.slane %v1274_v40, 1  ;;  %v1288_v27 = vadd.f32 %v1287_v3, %v1286_v37  ;;  %v1301_v26 = vrot.slane %v1300_v36, 2  ;;  %v1307_v31 = vadd.f32 %v1306_v30, %v1305_v9 }
  0x96   : > { %v4057_v45 = vadd.f32 %v1268_v28, %v1267_v35  ;;  %v1282_v49 = vrot.slane %v1281_v14, 1  ;;  %v1295_v19 = vadd.f32 %v1294_v15, %v1293_v1  ;;  %v1313_v55 = vrot.slane %v1312_v18, 4 }
  0x97   : > { %v4059_v5 = vadd.f32 %v1275_v33, %v1274_v40  ;;  %v1289_v51 = vrot.slane %v1288_v27, 1  ;;  %v1302_v38 = vadd.f32 %v1301_v26, %v1300_v36  ;;  %v1308_v8 = vrot.slane %v1307_v31, 2 }
  0x98   : > { %v4061_v22 = vadd.f32 %v1282_v49, %v1281_v14  ;;  %v1296_v41 = vrot.slane %v1295_v19, 1  ;;  %v1314_v54 = vadd.f32 %v1313_v55, %v1312_v18  ;;  %v1319_v11 = vsel %vm808_vm2, %v3987_v47, 0.0 }
  0x99   : > { %v4065_v3 = vadd.f32 %v1289_v51, %v1288_v27  ;;  %v1303_v9 = vrot.slane %v1302_v38, 1  ;;  %v1309_v30 = vadd.f32 %v1308_v8, %v1307_v31  ;;  %v1320_v37 = vrot.slane %v1319_v11, 4 }
  0x9a   : > { %v4067_v35 = vadd.f32 %v1296_v41, %v1295_v19  ;;  %v1315_v1 = vrot.slane %v1314_v54, 2  ;;  %v1326_v40 = vsel %vm808_vm2, %v3990_v29, 0.0  ;;  %v1333_v36 = vsel %vm808_vm2, %v3994_v50, 0.0 }
  0x9b   : > { %v4073_v28 = vadd.f32 %v1303_v9, %v1302_v38  ;;  %v1310_v14 = vrot.slane %v1309_v30, 1  ;;  %v1321_v15 = vadd.f32 %v1320_v37, %v1319_v11  ;;  %v1327_v18 = vrot.slane %v1326_v40, 4 }
  0x9c   : > { %v1316_v47 = vadd.f32 %v1315_v1, %v1314_v54  ;;  %v1334_v33 = vrot.slane %v1333_v36, 4  ;;  %v1340_v8 = vsel %vm808_vm2, %v3997_v12, 0.0  ;;  %v1347_v19 = vsel %vm808_vm2, %v4000_v62, 0.0 }
  0x9d   : > { %v4079_v27 = vadd.f32 %v1310_v14, %v1309_v30  ;;  %v1322_v26 = vrot.slane %v1321_v15, 2  ;;  %v1328_v29 = vadd.f32 %v1327_v18, %v1326_v40  ;;  %v1341_v31 = vrot.slane %v1340_v8, 4 }
  0x9e   : > { %v1317_v49 = vrot.slane %v1316_v47, 1  ;;  %v1335_v50 = vadd.f32 %v1334_v33, %v1333_v36  ;;  %v1348_v55 = vrot.slane %v1347_v19, 4  ;;  %v1354_v51 = vsel %vm808_vm2, %v4003_v7, 0.0 }
  0x9f   : > { %v1323_v38 = vadd.f32 %v1322_v26, %v1321_v15  ;;  %v1329_v41 = vrot.slane %v1328_v29, 2  ;;  %v1342_v54 = vadd.f32 %v1341_v31, %v1340_v8  ;;  %v1355_v11 = vrot.slane %v1354_v51, 4 }
  0xa0   : > { %v4083_v9 = vadd.f32 %v1317_v49, %v1316_v47  ;;  %v1336_v12 = vrot.slane %v1335_v50, 2  ;;  %v1349_v37 = vadd.f32 %v1348_v55, %v1347_v19  ;;  %v1361_v62 = vsel %vm808_vm2, %v4008_v20, 0.0 }
  0xa1   : > { %v1324_v30 = vrot.slane %v1323_v38, 1  ;;  %v1330_v1 = vadd.f32 %v1329_v41, %v1328_v29  ;;  %v1343_v40 = vrot.slane %v1342_v54, 2  ;;  %v1356_v14 = vadd.f32 %v1355_v11, %v1354_v51 }
  0xa2   : > { %v1337_v36 = vadd.f32 %v1336_v12, %v1335_v50  ;;  %v1350_v18 = vrot.slane %v1349_v37, 2  ;;  %v1362_v33 = vrot.slane %v1361_v62, 4  ;;  %v1368_v7 = vsel %vm808_vm2, %v4011_v2, 0.0 }
  0xa3   : > { %v4089_v15 = vadd.f32 %v1324_v30, %v1323_v38  ;;  %v1331_v8 = vrot.slane %v1330_v1, 1  ;;  %v1344_v47 = vadd.f32 %v1343_v40, %v1342_v54  ;;  %v1357_v26 = vrot.slane %v1356_v14, 2 }
  0xa4   : > { %v1338_v31 = vrot.slane %v1337_v36, 1  ;;  %v1351_v19 = vadd.f32 %v1350_v18, %v1349_v37  ;;  %v1363_v49 = vadd.f32 %v1362_v33, %v1361_v62  ;;  %v1369_v55 = vrot.slane %v1368_v7, 4 }
  0xa5   : > { %v4091_v20 = vadd.f32 %v1331_v8, %v1330_v1  ;;  %v1345_v29 = vrot.slane %v1344_v47, 1  ;;  %v1358_v41 = vadd.f32 %v1357_v26, %v1356_v14  ;;  %v1375_v50 = vsel %vm808_vm2, %v4019_v13, 0.0 }
  0xa6   : > { %v4095_v51 = vadd.f32 %v1338_v31, %v1337_v36  ;;  %v1352_v11 = vrot.slane %v1351_v19, 1  ;;  %v1364_v2 = vrot.slane %v1363_v49, 2  ;;  %v1370_v38 = vadd.f32 %v1369_v55, %v1368_v7 }
  0xa7   : > { %v4097_v12 = vadd.f32 %v1345_v29, %v1344_v47  ;;  %v1359_v54 = vrot.slane %v1358_v41, 1  ;;  %v1376_v30 = vrot.slane %v1375_v50, 4  ;;  %v1382_v37 = vsel %vm808_vm2, %v4023_v39, 0.0 }
  0xa8   : > { %v4101_v62 = vadd.f32 %v1352_v11, %v1351_v19  ;;  %v1365_v1 = vadd.f32 %v1364_v2, %v1363_v49  ;;  %v1371_v40 = vrot.slane %v1370_v38, 2  ;;  %v1383_v14 = vrot.slane %v1382_v37, 4 }
  0xa9   : > { %v4103_v18 = vadd.f32 %v1359_v54, %v1358_v41  ;;  %v1377_v13 = vadd.f32 %v1376_v30, %v1375_v50  ;;  %v1389_v36 = vsel %vm808_vm2, %v4029_v44, 0.0  ;;  %v1396_v33 = vsel %vm808_vm2, %v4035_v46, 0.0 }
  0xaa   : > { %v1366_v7 = vrot.slane %v1365_v1, 1  ;;  %v1372_v8 = vadd.f32 %v1371_v40, %v1370_v38  ;;  %v1384_v47 = vadd.f32 %v1383_v14, %v1382_v37  ;;  %v1390_v26 = vrot.slane %v1389_v36, 4 }
  0xab   : > { %v1378_v31 = vrot.slane %v1377_v13, 2  ;;  %v1397_v39 = vrot.slane %v1396_v33, 4  ;;  %v1403_v19 = vsel %vm808_vm2, %v4039_v56, 0.0  ;;  %v1410_v49 = vsel %vm808_vm2, %v4043_v0, 0.0 }
  0xac   : > { %v4113_v55 = vadd.f32 %v1366_v7, %v1365_v1  ;;  %v1373_v29 = vrot.slane %v1372_v8, 1  ;;  %v1385_v41 = vrot.slane %v1384_v47, 2  ;;  %v1391_v44 = vadd.f32 %v1390_v26, %v1389_v36 }
  0xad   : > { %v1379_v50 = vadd.f32 %v1378_v31, %v1377_v13  ;;  %v1398_v11 = vadd.f32 %v1397_v39, %v1396_v33  ;;  %v1404_v46 = vrot.slane %v1403_v19, 4  ;;  %v1411_v2 = vrot.slane %v1410_v49, 4 }
  0xae   : > { %5314 = vst [vmem:[#allocation12_spill] sm:$0xff] %v4113_v55  ;;  %v4115_v38 = vadd.f32 %v1373_v29, %v1372_v8  ;;  %v1386_v54 = vadd.f32 %v1385_v41, %v1384_v47  ;;  %v1392_v30 = vrot.slane %v1391_v44, 2  ;;  %v1417_v37 = vsel %vm808_vm2, %v4047_v23, 0.0 }
  0xaf   : > { %v1380_v56 = vrot.slane %v1379_v50, 1  ;;  %v1399_v40 = vrot.slane %v1398_v11, 2  ;;  %v1405_v14 = vadd.f32 %v1404_v46, %v1403_v19  ;;  %v1412_v0 = vadd.f32 %v1411_v2, %v1410_v49 }
  0xb0   : > { %v1387_v1 = vrot.slane %v1386_v54, 1  ;;  %v1393_v7 = vadd.f32 %v1392_v30, %v1391_v44  ;;  %v1418_v55 = vrot.slane %v1417_v37, 4  ;;  %v1424_v13 = vsel %vm808_vm2, %v4051_v34, 0.0 }
  0xb1   : > { %v4121_v36 = vadd.f32 %v1380_v56, %v1379_v50  ;;  %v1400_v33 = vadd.f32 %v1399_v40, %v1398_v11  ;;  %v1406_v8 = vrot.slane %v1405_v14, 2  ;;  %v1413_v26 = vrot.slane %v1412_v0, 2  ;;  %v3425_v40 = vld [vmem:[%s3527_s19 + $0x10] sm:$0xff] }
  0xb2   : > { %v4123_v47 = vadd.f32 %v1387_v1, %v1386_v54  ;;  %v1394_v31 = vrot.slane %v1393_v7, 1  ;;  %v1419_v39 = vadd.f32 %v1418_v55, %v1417_v37  ;;  %v1425_v23 = vrot.slane %v1424_v13, 4 }
  0xb3   : > { %v1401_v29 = vrot.slane %v1400_v33, 1  ;;  %v1407_v41 = vadd.f32 %v1406_v8, %v1405_v14  ;;  %v1414_v19 = vadd.f32 %v1413_v26, %v1412_v0  ;;  %v1431_v49 = vsel %vm808_vm2, %v4053_v48, 0.0 }
  0xb4   : > { %v4127_v44 = vadd.f32 %v1394_v31, %v1393_v7  ;;  %v1420_v34 = vrot.slane %v1419_v39, 2  ;;  %v1426_v50 = vadd.f32 %v1425_v23, %v1424_v13  ;;  %v1432_v46 = vrot.slane %v1431_v49, 4  ;;  %v5315_v13 = vld [vmem:[#allocation24_spill] sm:$0xff]  ;;  %v3427_v23 = vld [vmem:[%s3527_s19 + $0x20] sm:$0xff] }
  0xb5   : > { %v4129_v11 = vadd.f32 %v1401_v29, %v1400_v33  ;;  %v1408_v2 = vrot.slane %v1407_v41, 1  ;;  %v1415_v54 = vrot.slane %v1414_v19, 1  ;;  %3351 = vlog2.f32 %v3949_v10  ;;  %v3426_v10 = vld [vmem:[%s3527_s19 + $0x18] sm:$0xff] }
  0xb6   : > { %v1421_v55 = vadd.f32 %v1420_v34, %v1419_v39  ;;  %v1427_v30 = vrot.slane %v1426_v50, 2  ;;  %v1433_v37 = vadd.f32 %v1432_v46, %v1431_v49  ;;  %3353 = vlog2.f32 %v3954_v61  ;;  %v5316_v33 = vld [vmem:[#allocation6_spill] sm:$0xff]  ;;  %v3429_v34 = vld [vmem:[%s3527_s19 + $0x30] sm:$0xff] }
  0xb7   : > { %v4133_v56 = vadd.f32 %v1408_v2, %v1407_v41  ;;  %v4135_v48 = vadd.f32 %v1415_v54, %v1414_v19  ;;  %3355 = vlog2.f32 %v3959_v42  ;;  %v1593_v14 = vcombine.low %v3425_v40, %v5278_v59  ;;  %v3428_v41 = vld [vmem:[%s3527_s19 + $0x28] sm:$0xff]  ;;  %v3430_v46 = vld [vmem:[%s3527_s19 + $0x38] sm:$0xff] }
  0xb8   : > { %v1422_v0 = vrot.slane %v1421_v55, 1  ;;  %v1428_v1 = vadd.f32 %v1427_v30, %v1426_v50  ;;  %v1434_v7 = vrot.slane %v1433_v37, 2  ;;  %3357 = vlog2.f32 %v3965_v6  ;;  %v5320_v30 = vld [vmem:[#allocation25_spill] sm:$0xff] }
  0xb9   : > { %3359 = vlog2.f32 %v3970_v63  ;;  %v1594_v61 = vcombine.low %v3426_v10, %v5315_v13  ;;  %v5317_v8 = vcombine.low %v5311_v53, %v5310_v58  ;;  %v5318_v59 = vcombine.low %v5312_v43, %v5276_v16  ;;  %v5321_v10 = vld [vmem:[#allocation43_spill] sm:$0xff] }
  0xba   : > { %v4156_v31 = vadd.f32 %v1422_v0, %v1421_v55  ;;  %v1429_v6 = vrot.slane %v1428_v1, 1  ;;  %v1435_v63 = vadd.f32 %v1434_v7, %v1433_v37  ;;  %3361 = vlog2.f32 %v3985_v32 }
  0xbb   : > { %v4148_v26 = vrot.slane %v5317_v8, %v5316_v33  ;;  %v4154_v42 = vrot.slane %v5318_v59, %v5316_v33  ;;  %3363 = vlog2.f32 %v4006_v57  ;;  %v4161_v58 = vrot.slane %v1593_v14, %v5316_v33 }
  0xbc   : > { %v4164_v53 = vrot.slane %v1594_v61, %v5316_v33  ;;  %v4168_v43 = vadd.f32 %v1429_v6, %v1428_v1  ;;  %v1436_v39 = vrot.slane %v1435_v63, 1  ;;  %3365 = vlog2.f32 %v4013_v25  ;;  %v5319_v25 = vld [vmem:[#allocation28_spill] sm:$0xff] }
  0xbd   : > { %v1623_v16 = vcombine.low %v4148_v26, %v4154_v42  ;;  %v1640_v32 = vcombine.low %v3427_v23, %v5283_v24  ;;  %3367 = vlog2.f32 %v4021_v4  ;;  %v1641_v19 = vcombine.low %v3428_v41, %v5286_v60 }
  0xbe   : > { %v1624_v57 = vcombine.low %v4161_v58, %v4164_v53  ;;  %v4181_v49 = vadd.f32 %v1436_v39, %v1435_v63  ;;  %3369 = vlog2.f32 %v4031_v17  ;;  %v1642_v50 = vcombine.low %v3429_v34, %v5319_v25  ;;  %v3431_v34 = vld [vmem:[%s3527_s19 + $0x40] sm:$0xff] }
  0xbf   : > { %v4177_v29 = vrot.slane %v1623_v16, %v5316_v33  ;;  %v1643_v24 = vcombine.low %v3430_v46, %v5293_v52  ;;  %v3352_v4 = vpop.eup %3351  ;;  %3371 = vlog2.f32 %v4033_v21  ;;  %v4193_v54 = vrot.slane %v1640_v32, %v5316_v33  ;;  %v5325_v25 = vld [vmem:[#allocation30_spill] sm:$0xff] }
  0xc0   : > { %v4190_v2 = vrot.slane %v1624_v57, %v5316_v33  ;;  %v4196_v60 = vrot.slane %v1641_v19, %v5316_v33  ;;  %v3354_v55 = vpop.eup %3353  ;;  %v1439_v17 = vmul.f32 0.6931472, %v3352_v4  ;;  %3373 = vlog2.f32 %v5320_v30  ;;  %v5327_v30 = vld [vmem:[#allocation48_spill] sm:$0xff] }
  0xc1   : > { %v4200_v37 = vrot.slane %v1642_v50, %v5316_v33  ;;  %v4203_v52 = vrot.slane %v1643_v24, %v5316_v33  ;;  %v3356_v21 = vpop.eup %3355  ;;  %v1441_v40 = vmul.f32 0.6931472, %v3354_v55  ;;  %3375 = vlog2.f32 %v4057_v45  ;;  %v5322_v45 = vld [vmem:[#allocation44_spill] sm:$0xff]  ;;  %v5326_v24 = vld [vmem:[#allocation47_spill] sm:$0xff] }
  0xc2   : > { %v1672_v0 = vcombine.low %v4193_v54, %v4196_v60  ;;  %v3358_v1 = vpop.eup %3357  ;;  %v1443_v7 = vmul.f32 0.6931472, %v3356_v21  ;;  %3377 = vlog2.f32 %v4059_v5  ;;  %v4212_v13 = vadd.f32 %v1439_v17, %v5321_v10  ;;  %v5323_v5 = vld [vmem:[#allocation45_spill] sm:$0xff]  ;;  %v5359_v55 = vld [vmem:[#allocation36_spill] sm:$0xff] }
  0xc3   : > { %v1673_v61 = vcombine.low %v4200_v37, %v4203_v52  ;;  %v3360_v8 = vpop.eup %3359  ;;  %v1445_v59 = vmul.f32 0.6931472, %v3358_v1  ;;  %3379 = vlog2.f32 %v4061_v22  ;;  %v4218_v6 = vadd.f32 %v1441_v40, %v5322_v45  ;;  %v5324_v22 = vld [vmem:[#allocation46_spill] sm:$0xff]  ;;  %v3432_v40 = vld [vmem:[%s3527_s19 + $0x48] sm:$0xff]  ;;  %v5329_v10 = vld [vmem:[#allocation49_spill] sm:$0xff] }
  0xc4   : > { %v4221_v63 = vrot.slane %v1672_v0, %v5316_v33  ;;  %v3362_v16 = vpop.eup %3361  ;;  %v1447_v39 = vmul.f32 0.6931472, %v3360_v8  ;;  %3381 = vlog2.f32 %v4065_v3  ;;  %v4225_v23 = vadd.f32 %v1443_v7, %v5323_v5  ;;  %v5328_v0 = vld [vmem:[#allocation31_spill] sm:$0xff]  ;;  %v3433_v8 = vld [vmem:[%s3527_s19 + $0x50] sm:$0xff] }
  0xc5   : > { %v4228_v32 = vrot.slane %v1673_v61, %v5316_v33  ;;  %v3364_v57 = vpop.eup %3363  ;;  %v1449_v41 = vmul.f32 0.6931472, %v3362_v16  ;;  %3383 = vlog2.f32 %v4067_v35  ;;  %v4232_v19 = vadd.f32 %v1445_v59, %v5324_v22  ;;  %v5330_v59 = vld [vmem:[#allocation32_spill] sm:$0xff] }
  0xc6   : > { %v1689_v50 = vcombine.low %v3431_v34, %v5325_v25  ;;  %v3366_v46 = vpop.eup %3365  ;;  %v1451_v3 = vmul.f32 0.6931472, %v3364_v57  ;;  %3385 = vlog2.f32 %v4073_v28  ;;  %v4238_v4 = vadd.f32 %v1447_v39, %v5326_v24  ;;  %v3434_v57 = vld [vmem:[%s3527_s19 + $0x58] sm:$0xff] }
  0xc7   : > { %v3368_v17 = vpop.eup %3367  ;;  %v1453_v35 = vmul.f32 0.6931472, %v3366_v46  ;;  %3387 = vlog2.f32 %v4079_v27  ;;  %v4244_v21 = vadd.f32 %v1449_v41, %v5327_v30  ;;  %v1690_v1 = vcombine.low %v3432_v40, %v5328_v0  ;;  %v5331_v27 = vld [vmem:[#allocation50_spill] sm:$0xff]  ;;  %v5332_v41 = vld [vmem:[#allocation33_spill] sm:$0xff] }
  0xc8   : > { %v3370_v7 = vpop.eup %3369  ;;  %v1455_v28 = vmul.f32 0.6931472, %v3368_v17  ;;  %3389 = vlog2.f32 %v4083_v9  ;;  %v4250_v61 = vadd.f32 %v1451_v3, %v5329_v10  ;;  %v1691_v45 = vcombine.low %v3433_v8, %v5330_v59  ;;  %v5333_v9 = vld [vmem:[#allocation51_spill] sm:$0xff] }
  0xc9   : > { %v3372_v16 = vpop.eup %3371  ;;  %v1457_v39 = vmul.f32 0.6931472, %v3370_v7  ;;  %3391 = vlog2.f32 %v4089_v15  ;;  %v4256_v5 = vadd.f32 %v1453_v35, %v5331_v27  ;;  %v1692_v22 = vcombine.low %v3434_v57, %v5332_v41  ;;  %v5334_v15 = vld [vmem:[#allocation52_spill] sm:$0xff] }
  0xca   : > { %v3374_v34 = vpop.eup %3373  ;;  %v1459_v25 = vmul.f32 0.6931472, %v3372_v16  ;;  %3393 = vlog2.f32 %v4091_v20  ;;  %v4263_v46 = vadd.f32 %v1455_v28, %v5333_v9  ;;  %v4266_v3 = vrot.slane %v1689_v50, %v5316_v33  ;;  %v5335_v20 = vld [vmem:[#allocation53_spill] sm:$0xff]  ;;  %v5340_v57 = vld [vmem:[#allocation12_spill] sm:$0xff] }
  0xcb   : > { %v3376_v24 = vpop.eup %3375  ;;  %v1461_v17 = vmul.f32 0.6931472, %v3374_v34  ;;  %3395 = vlog2.f32 %v4095_v51  ;;  %v4270_v35 = vadd.f32 %v1457_v39, %v5334_v15  ;;  %v4273_v30 = vrot.slane %v1690_v1, %v5316_v33  ;;  %v5336_v51 = vld [vmem:[#allocation54_spill] sm:$0xff]  ;;  %v5341_v41 = vld [vmem:[#allocation56_spill] sm:$0xff] }
  0xcc   : > { %v3378_v40 = vpop.eup %3377  ;;  %v1463_v0 = vmul.f32 0.6931472, %v3376_v24  ;;  %3397 = vlog2.f32 %v4097_v12  ;;  %v4277_v7 = vadd.f32 %v1459_v25, %v5335_v20  ;;  %v4280_v50 = vrot.slane %v1691_v45, %v5316_v33  ;;  %v5338_v45 = vld [vmem:[#allocation55_spill] sm:$0xff]  ;;  %v5345_v20 = vld [vmem:[#allocation58_spill] sm:$0xff] }
  0xcd   : > { %v3380_v28 = vpop.eup %3379  ;;  %v1465_v10 = vmul.f32 0.6931472, %v3378_v40  ;;  %3399 = vlog2.f32 %v4101_v62  ;;  %v4284_v8 = vadd.f32 %v1461_v17, %v5336_v51  ;;  %v4287_v1 = vrot.slane %v1692_v22, %v5316_v33  ;;  %v4314_v40 = vld [vmem:[%s4292_s23] sm:$0xff] }
  0xce   : > { %v3382_v59 = vpop.eup %3381  ;;  %v1467_v12 = vmul.f32 0.6931472, %v3380_v28  ;;  %3401 = vlog2.f32 %v4103_v18  ;;  %v4296_v16 = vadd.f32 %v1463_v0, %v5338_v45  ;;  %v1721_v62 = vcombine.low %v4266_v3, %v4273_v30  ;;  %v5343_v18 = vld [vmem:[#allocation57_spill] sm:$0xff]  ;;  %v3435_v45 = vld [vmem:[%s3527_s19 + $0x60] sm:$0xff] }
  0xcf   : > { %5337 = vst [vmem:[#allocation27_spill] sm:$0xff] %v4284_v8  ;;  %v3384_v39 = vpop.eup %3383  ;;  %v1469_v27 = vmul.f32 0.6931472, %v3382_v59  ;;  %3403 = vlog2.f32 %v5340_v57  ;;  %v4302_v22 = vadd.f32 %v1465_v10, %v5341_v41  ;;  %v1722_v34 = vcombine.low %v4280_v50, %v4287_v1  ;;  %v5347_v59 = vld [vmem:[#allocation59_spill] sm:$0xff]  ;;  %v5350_v41 = vld [vmem:[#allocation60_spill] sm:$0xff] }
  0xd0   : > { %5339 = vst [vmem:[#allocation13_spill] sm:$0xff] %v4296_v16  ;;  %v3386_v25 = vpop.eup %3385  ;;  %v1471_v9 = vmul.f32 0.6931472, %v3384_v39  ;;  %3405 = vlog2.f32 %v4115_v38  ;;  %v4308_v24 = vadd.f32 %v1467_v12, %v5343_v18  ;;  %v4311_v17 = vrot.slane %v1721_v62, %v5316_v33  ;;  %v5349_v62 = vld [vmem:[#allocation34_spill] sm:$0xff]  ;;  %v4330_v57 = vld [vmem:[%s4292_s23 + $0x8] sm:$0xff]  ;;  %v5393_v16 = vld [vmem:[#allocation9_spill] sm:$0xff] }
  0xd1   : > { %5342 = vst [vmem:[#allocation14_spill] sm:$0xff] %v4302_v22  ;;  %v3388_v15 = vpop.eup %3387  ;;  %v1473_v0 = vmul.f32 0.6931472, %v3386_v25  ;;  %3407 = vlog2.f32 %v4121_v36  ;;  %v4318_v28 = vadd.f32 %v1469_v27, %v5345_v20  ;;  %v4321_v38 = vrot.slane %v1722_v34, %v5316_v33  ;;  %v4342_v18 = vld [vmem:[%s4292_s23 + $0x18] sm:$0xff] }
  0xd2   : > { %5344 = vst [vmem:[#allocation29_spill] sm:$0xff] %v4308_v24  ;;  %v3390_v10 = vpop.eup %3389  ;;  %v1475_v51 = vmul.f32 0.6931472, %v3388_v15  ;;  %3409 = vlog2.f32 %v4123_v47  ;;  %v4325_v12 = vadd.f32 %v1471_v9, %v5347_v59  ;;  %v1738_v39 = vcombine.low %v3435_v45, %v5349_v62  ;;  %v4339_v9 = vld [vmem:[%s4292_s23 + $0x10] sm:$0xff]  ;;  %5353 = vst [vmem:[#allocation21_spill] sm:$0xff] %v4342_v18 }
  0xd3   : > { %5346 = vst [vmem:[#allocation15_spill] sm:$0xff] %v4318_v28  ;;  %v3392_v36 = vpop.eup %3391  ;;  %v1477_v27 = vmul.f32 0.6931472, %v3390_v10  ;;  %3411 = vlog2.f32 %v4127_v44  ;;  %v4334_v34 = vadd.f32 %v1473_v0, %v5350_v41  ;;  %5352 = vst [vmem:[#allocation18_spill] sm:$0xff] %v4339_v9  ;;  %v5354_v20 = vld [vmem:[#allocation61_spill] sm:$0xff]  ;;  %vm1549_vm3 = vcmp.eq.s32.totalorder %v4314_v40, 0 }
  0xd4   : > { %5348 = vst [vmem:[#allocation16_spill] sm:$0xff] %v4325_v12  ;;  %v3394_v25 = vpop.eup %3393  ;;  %v1479_v15 = vmul.f32 0.6931472, %v3392_v36  ;;  %3413 = vlog2.f32 %v4129_v11  ;;  %v4346_v10 = vadd.f32 %v1475_v51, %v5354_v20  ;;  %v3436_v44 = vld [vmem:[%s3527_s19 + $0x68] sm:$0xff]  ;;  %v5357_v41 = vld [vmem:[#allocation62_spill] sm:$0xff]  ;;  %v3437_v36 = vld [vmem:[%s3527_s19 + $0x70] sm:$0xff] }
  0xd5   : > { %5351 = vst [vmem:[#allocation17_spill] sm:$0xff] %v4334_v34  ;;  %v5356_v0 = vld [vmem:[#allocation35_spill] sm:$0xff]  ;;  %v3396_v45 = vpop.eup %3395  ;;  %v1481_v62 = vmul.f32 0.6931472, %v3394_v25  ;;  %3415 = vlog2.f32 %v4133_v56  ;;  %v4353_v47 = vadd.f32 %v1477_v27, %v5357_v41  ;;  %v1740_v11 = vcombine.low %v3437_v36, %v5359_v55  ;;  %v5364_v41 = vld [vmem:[#allocation64_spill] sm:$0xff]  ;;  %v5366_v36 = vld [vmem:[#allocation65_spill] sm:$0xff] }
  0xd6   : > { %5355 = vst [vmem:[#allocation22_spill] sm:$0xff] %v4346_v10  ;;  %v1739_v59 = vcombine.low %v3436_v44, %v5356_v0  ;;  %v3398_v14 = vpop.eup %3397  ;;  %v1483_v34 = vmul.f32 0.6931472, %v3396_v45  ;;  %3417 = vlog2.f32 %v4135_v48  ;;  %v5360_v51 = vld [vmem:[#allocation63_spill] sm:$0xff]  ;;  %vm1550_vm4 = vcmp.eq.s32.totalorder %v4330_v57, 0  ;;  %v3438_v44 = vld [vmem:[%s3527_s19 + $0x78] sm:$0xff] }
  0xd7   : > { %5358 = vst [vmem:[#allocation26_spill] sm:$0xff] %v4353_v47  ;;  %v4359_v20 = vadd.f32 %v1479_v15, %v5360_v51  ;;  %v5362_v0 = vld [vmem:[#allocation38_spill] sm:$0xff]  ;;  %v3400_v10 = vpop.eup %3399  ;;  %v1485_v27 = vmul.f32 0.6931472, %v3398_v14  ;;  %3419 = vlog2.f32 %v4156_v31  ;;  %v4369_v55 = vadd.f32 %v1481_v62, %v5364_v41  ;;  %v5370_v41 = vld [vmem:[#allocation67_spill] sm:$0xff] }
  0xd8   : > { %v1741_v25 = vcombine.low %v3438_v44, %v5362_v0  ;;  %v4365_v56 = vld [vmem:[%s4292_s23 + $0x20] sm:$0x1f]  ;;  %vm1551_vm5 = vcmp.eq.s32.totalorder %v4339_v9, 0  ;;  %vm1552_vm6 = vcmp.eq.s32.totalorder %v4342_v18, 0  ;;  %v4374_v48 = vrot.slane %v1738_v39, %v5316_v33  ;;  %v3402_v15 = vpop.eup %3401 }
  0xd9   : > { %5361 = vst [vmem:[#allocation19_spill] sm:$0xff] %v4359_v20  ;;  %5363 = vst [vmem:[#allocation7_spill] sm:$0xff] %v4365_v56  ;;  %v1487_v45 = vmul.f32 0.6931472, %v3400_v10  ;;  %3421 = vlog2.f32 %v4168_v43  ;;  %v4378_v51 = vadd.f32 %v1483_v34, %v5366_v36  ;;  %v4381_v31 = vrot.slane %v1739_v59, %v5316_v33  ;;  %v3404_v14 = vpop.eup %3403  ;;  %v5368_v44 = vld [vmem:[#allocation66_spill] sm:$0xff]  ;;  %v5376_v20 = vld [vmem:[#allocation69_spill] sm:$0xff] }
  0xda   : > { %5365 = vst [vmem:[#allocation8_spill] sm:$0xff] %v4369_v55  ;;  %v1489_v62 = vmul.f32 0.6931472, %v3402_v15  ;;  %3423 = vlog2.f32 %v4181_v49  ;;  %v4385_v0 = vadd.f32 %v1485_v27, %v5368_v44  ;;  %v4388_v39 = vrot.slane %v1740_v11, %v5316_v33  ;;  %v3406_v10 = vpop.eup %3405  ;;  %v5372_v27 = vld [vmem:[#allocation68_spill] sm:$0xff]  ;;  %v3439_v11 = vld [vmem:[%s3527_s19 + $0x80] sm:$0xff]  ;;  %v5375_v55 = vld [vmem:[#allocation41_spill] sm:$0xff] }
  0xdb   : > { %5367 = vst [vmem:[#allocation24_spill] sm:$0xff] %v4378_v51  ;;  %v1491_v43 = vmul.f32 0.6931472, %v3404_v14  ;;  %v4391_v34 = vadd.f32 %v1487_v45, %v5370_v41  ;;  %vm1553_vm7 = vcmp.eq.s32.totalorder %v4365_v56, 0  ;;  %v4395_v59 = vrot.slane %v1741_v25, %v5316_v33  ;;  %v3408_v49 = vpop.eup %3407  ;;  %v3440_v14 = vld [vmem:[%s3527_s19 + $0x88] sm:$0xff] }
  0xdc   : > { %5369 = vst [vmem:[#allocation28_spill] sm:$0xff] %v4385_v0  ;;  %v1770_v15 = vcombine.low %v4374_v48, %v4381_v31  ;;  %v1493_v36 = vmul.f32 0.6931472, %v3406_v10  ;;  %v4400_v44 = vadd.f32 %v1489_v62, %v5372_v27  ;;  %v5374_v0 = vld [vmem:[#allocation40_spill] sm:$0xff]  ;;  %v1788_v45 = vcombine.low %v3440_v14, %v5375_v55  ;;  %v3410_v41 = vpop.eup %3409  ;;  %v5378_v27 = vld [vmem:[#allocation70_spill] sm:$0xff] }
  0xdd   : > { %5371 = vst [vmem:[#allocation25_spill] sm:$0xff] %v4391_v34  ;;  %v1787_v51 = vcombine.low %v3439_v11, %v5374_v0  ;;  %v1495_v34 = vmul.f32 0.6931472, %v3408_v49  ;;  %v4407_v47 = vadd.f32 %v1491_v43, %v5376_v20  ;;  %v1771_v25 = vcombine.low %v4388_v39, %v4395_v59  ;;  %v3412_v10 = vpop.eup %3411  ;;  %v5380_v43 = vld [vmem:[#allocation71_spill] sm:$0xff] }
  0xde   : > { %5373 = vst [vmem:[#allocation43_spill] sm:$0xff] %v4400_v44  ;;  %v4412_v12 = vrot.slane %v1770_v15, %v5316_v33  ;;  %v1497_v62 = vmul.f32 0.6931472, %v3410_v41  ;;  %v4415_v44 = vadd.f32 %v1493_v36, %v5378_v27  ;;  %v4421_v55 = vrot.slane %v1788_v45, %v5316_v33  ;;  %v3414_v49 = vpop.eup %3413  ;;  %v5382_v15 = vld [vmem:[#allocation42_spill] sm:$0xff]  ;;  %v5383_v27 = vld [vmem:[#allocation72_spill] sm:$0xff] }
  0xdf   : > { %5377 = vst [vmem:[#allocation44_spill] sm:$0xff] %v4407_v47  ;;  %v4418_v0 = vrot.slane %v1787_v51, %v5316_v33  ;;  %v1499_v20 = vmul.f32 0.6931472, %v3412_v10  ;;  %v4424_v11 = vadd.f32 %v1495_v34, %v5380_v43  ;;  %v4427_v14 = vrot.slane %v1771_v25, %v5316_v33  ;;  %v3416_v47 = vpop.eup %3415  ;;  %v5386_v43 = vld [vmem:[#allocation73_spill] sm:$0xff] }
  0xe0   : > { %5379 = vst [vmem:[#allocation45_spill] sm:$0xff] %v4415_v44  ;;  %v1809_v41 = vrot.slane %v5382_v15, %v5316_v33  ;;  %v1501_v36 = vmul.f32 0.6931472, %v3414_v49  ;;  %v4432_v44 = vadd.f32 %v1497_v62, %v5383_v27  ;;  %v5385_v45 = vcombine.low %v4177_v29, %v4190_v2  ;;  %v3418_v10 = vpop.eup %3417 }
  0xe1   : > { %5381 = vst [vmem:[#allocation46_spill] sm:$0xff] %v4424_v11  ;;  %v1810_v51 = vcombine.low %v4418_v0, %v4421_v55  ;;  %v1503_v25 = vmul.f32 0.6931472, %v3416_v47  ;;  %v4442_v11 = vadd.f32 %v1499_v20, %v5386_v43  ;;  %v1786_v49 = vcombine.low %v4412_v12, %v4427_v14  ;;  %v3420_v15 = vpop.eup %3419 }
  0xe2   : > { %5384 = vst [vmem:[#allocation30_spill] sm:$0xff] %v4432_v44  ;;  %v1831_v34 = vsel %vm1549_vm3, %v5385_v45, 0.0  ;;  %v4447_v62 = vrot.slane %v1809_v41, %v5316_v33  ;;  %v1505_v27 = vmul.f32 0.6931472, %v3418_v10  ;;  %v5388_v44 = vld [vmem:[#allocation74_spill] sm:$0xff]  ;;  %v5390_v47 = vcombine.low %v4221_v63, %v4228_v32 }
  0xe3   : > { %5387 = vst [vmem:[#allocation47_spill] sm:$0xff] %v4442_v11  ;;  %v4450_v28 = vadd.f32 %v1501_v36, %v5388_v44  ;;  %v4453_v24 = vrot.slane %v1810_v51, %v5316_v33  ;;  %v3422_v45 = vpop.eup %3421  ;;  %v1507_v43 = vmul.f32 0.6931472, %v3420_v15  ;;  %v5391_v11 = vld [vmem:[#allocation20_spill] sm:$0xff]  ;;  %v5392_v10 = vcombine.low %v4311_v17, %v4321_v38 }
  0xe4   : > { %v1832_v20 = vsel %vm1550_vm4, %v5390_v47, 0.0  ;;  %v4461_v22 = vadd.f32 %v1503_v25, %v5391_v11  ;;  %v1834_v36 = vsel %vm1552_vm6, %v1786_v49, 0.0  ;;  %v3424_v51 = vpop.eup %3423  ;;  %v4471_v8 = vadd.f32 %v1505_v27, %v5393_v16  ;;  %v5394_v25 = vld [vmem:[#allocation23_spill] sm:$0xff] }
  0xe5   : > { %5389 = vst [vmem:[#allocation48_spill] sm:$0xff] %v4450_v28  ;;  %v1833_v44 = vsel %vm1551_vm5, %v5392_v10, 0.0  ;;  %v1509_v28 = vmul.f32 0.6931472, %v3422_v45  ;;  %v1825_v15 = vcombine.low %v4453_v24, %v4447_v62  ;;  %vm1841_vm8 = vcmp.eq.s32.totalorder %v4314_v40, 1  ;;  %v5395_v10 = vld [vmem:[#allocation10_spill] sm:$0xff] }
  0xe6   : > { %v1511_v11 = vmul.f32 0.6931472, %v3424_v51  ;;  %v4477_v47 = vadd.f32 %v1507_v43, %v5394_v25  ;;  %vm1842_vm9 = vcmp.eq.s32.totalorder %v4330_v57, 1  ;;  %vm1843_vm10 = vcmp.eq.s32.totalorder %v4339_v9, 1  ;;  %v5397_v27 = vld [vmem:[#allocation11_spill] sm:$0xff] }
  0xe7   : > { %v4482_v49 = vadd.f32 %v1509_v28, %v5395_v10  ;;  %v1835_v16 = vsel %vm1553_vm7, %v1825_v15, 0.0  ;;  %vm1844_vm11 = vcmp.eq.s32.totalorder %v4342_v18, 1  ;;  %vm1845_vm12 = vcmp.eq.s32.totalorder %v4365_v56, 1 }
  0xe8   : > { %v4489_v45 = vadd.f32 %v1511_v11, %v5397_v27  ;;  %v1846_v43 = vcombine.high %v4148_v26, %v4154_v42  ;;  %v1847_v51 = vcombine.high %v4161_v58, %v4164_v53  ;;  %v1863_v28 = vcombine.high %v4193_v54, %v4196_v60 }
  0xe9   : > { %5396 = vst [vmem:[#allocation31_spill] sm:$0xff] %v4482_v49  ;;  %v1864_v25 = vcombine.high %v4200_v37, %v4203_v52  ;;  %v1880_v15 = vcombine.high %v4266_v3, %v4273_v30  ;;  %v1881_v10 = vcombine.high %v4280_v50, %v4287_v1  ;;  %v1897_v11 = vcombine.high %v4374_v48, %v4381_v31 }
  0xea   : > { %5398 = vst [vmem:[#allocation49_spill] sm:$0xff] %v4489_v45  ;;  %v1854_v26 = vrot.slane %v1846_v43, %v5316_v33  ;;  %v1861_v42 = vrot.slane %v1847_v51, %v5316_v33  ;;  %v1871_v58 = vrot.slane %v1863_v28, %v5316_v33  ;;  %v1898_v53 = vcombine.high %v4388_v39, %v4395_v59 }
  0xeb   : > { %v1878_v54 = vrot.slane %v1864_v25, %v5316_v33  ;;  %v1888_v60 = vrot.slane %v1880_v15, %v5316_v33  ;;  %v1895_v37 = vrot.slane %v1881_v10, %v5316_v33  ;;  %v1905_v52 = vrot.slane %v1897_v11, %v5316_v33 }
  0xec   : > { %v1862_v3 = vcombine.low %v1854_v26, %v1861_v42  ;;  %v1912_v30 = vrot.slane %v1898_v53, %v5316_v33  ;;  %v1914_v50 = vcombine.high %v4418_v0, %v4421_v55  ;;  %v1915_v1 = vcombine.high %v1809_v41, %v1809_v41 }
  0xed   : > { %v1879_v48 = vcombine.low %v1871_v58, %v1878_v54  ;;  %v1896_v31 = vcombine.low %v1888_v60, %v1895_v37  ;;  %vm1946_vm13 = vcmp.eq.s32.totalorder %v4314_v40, 2  ;;  %vm1947_vm14 = vcmp.eq.s32.totalorder %v4330_v57, 2 }
  0xee   : > { %v1913_v39 = vcombine.low %v1905_v52, %v1912_v30  ;;  %v1922_v59 = vrot.slane %v1914_v50, %v5316_v33  ;;  %v1929_v27 = vrot.slane %v1915_v1, %v5316_v33  ;;  %v1936_v43 = vsel %vm1841_vm8, %v1862_v3, 0.0 }
  0xef   : > { %v1937_v51 = vsel %vm1842_vm9, %v1879_v48, 0.0  ;;  %v1938_v0 = vsel %vm1843_vm10, %v1896_v31, 0.0  ;;  %v1941_v55 = vadd.f32 %v1936_v43, %v1831_v34  ;;  %vm1948_vm15 = vcmp.eq.s32.totalorder %v4339_v9, 2 }
  0xf0   : > { %v1930_v41 = vcombine.low %v1922_v59, %v1929_v27  ;;  %v1939_v28 = vsel %vm1844_vm11, %v1913_v39, 0.0  ;;  %v1942_v25 = vadd.f32 %v1937_v51, %v1832_v20  ;;  %v1943_v15 = vadd.f32 %v1938_v0, %v1833_v44  ;;  %v5399_v39 = vld [vmem:[#allocation5_spill] sm:$0xff] }
  0xf1   : > { %v1944_v10 = vadd.f32 %v1939_v28, %v1834_v36  ;;  %vm1949_vm1 = vcmp.eq.s32.totalorder %v4342_v18, 2  ;;  %vm1950_vm2 = vcmp.eq.s32.totalorder %v4365_v56, 2  ;;  %v1951_v11 = vcombine.high %v4177_v29, %v4190_v2 }
  0xf2   : > { %v1940_v53 = vsel %vm1845_vm12, %v1930_v41, 0.0  ;;  %v1952_v34 = vcombine.high %v4221_v63, %v4228_v32  ;;  %v1953_v3 = vcombine.high %v4311_v17, %v4321_v38  ;;  %v1954_v20 = vcombine.high %v4412_v12, %v4427_v14 }
  0xf3   : > { %v1945_v44 = vadd.f32 %v1940_v53, %v1835_v16  ;;  %v1955_v36 = vcombine.high %v4453_v24, %v4447_v62  ;;  %v1961_v50 = vsel %vm1946_vm13, %v1951_v11, 0.0  ;;  %vm1971_vm3 = vcmp.eq.s32.totalorder %v4314_v40, 3 }
  0xf4   : > { %v1962_v29 = vsel %vm1947_vm14, %v1952_v34, 0.0  ;;  %v1963_v2 = vsel %vm1948_vm15, %v1953_v3, 0.0  ;;  %v1964_v63 = vsel %vm1949_vm1, %v1954_v20, 0.0  ;;  %v1966_v32 = vadd.f32 %v1961_v50, %v1941_v55 }
  0xf5   : > { %v1965_v17 = vsel %vm1950_vm2, %v1955_v36, 0.0  ;;  %v1967_v38 = vadd.f32 %v1962_v29, %v1942_v25  ;;  %v1968_v12 = vadd.f32 %v1963_v2, %v1943_v15  ;;  %v1969_v14 = vadd.f32 %v1964_v63, %v1944_v10 }
  0xf6   : > { %v1970_v16 = vadd.f32 %v1965_v17, %v1945_v44  ;;  %vm1972_vm4 = vcmp.eq.s32.totalorder %v4330_v57, 3  ;;  %vm1973_vm5 = vcmp.eq.s32.totalorder %v4339_v9, 3  ;;  %vm1974_vm6 = vcmp.eq.s32.totalorder %v4342_v18, 3 }
  0xf7   : > { %vm1975_vm7 = vcmp.eq.s32.totalorder %v4365_v56, 3  ;;  %v1976_v24 = vcombine.high %v1854_v26, %v1861_v42  ;;  %v1977_v62 = vcombine.high %v1871_v58, %v1878_v54  ;;  %v1978_v1 = vcombine.high %v1888_v60, %v1895_v37 }
  0xf8   : > { %v1979_v48 = vcombine.high %v1905_v52, %v1912_v30  ;;  %v1980_v31 = vcombine.high %v1922_v59, %v1929_v27  ;;  %v4556_v43 = vsub.s32 0, %v5399_v39  ;;  %v4559_v51 = vsub.s32 1, %v5399_v39 }
  0xf9   : > { %v1986_v0 = vsel %vm1971_vm3, %v1976_v24, 0.0  ;;  %v1987_v55 = vsel %vm1972_vm4, %v1977_v62, 0.0  ;;  %v1988_v41 = vsel %vm1973_vm5, %v1978_v1, 0.0  ;;  %v4564_v28 = vsub.s32 2, %v5399_v39 }
  0xfa   : > { %5400 = vst [vmem:[#allocation32_spill] sm:$0xff] %v4556_v43  ;;  %5401 = vst [vmem:[#allocation50_spill] sm:$0xff] %v4559_v51  ;;  %v1989_v25 = vsel %vm1974_vm6, %v1979_v48, 0.0  ;;  %v1990_v26 = vsel %vm1975_vm7, %v1980_v31, 0.0  ;;  %v1991_v42 = vadd.f32 %v1986_v0, %v1966_v32  ;;  %v1992_v58 = vadd.f32 %v1987_v55, %v1967_v38 }
  0xfb   : > { %5402 = vst [vmem:[#allocation33_spill] sm:$0xff] %v4564_v28  ;;  %v4566_v54 = vadd.f32 %v1988_v41, %v1968_v12  ;;  %v4568_v60 = vadd.f32 %v1989_v25, %v1969_v14  ;;  %v4570_v37 = vadd.f32 %v1990_v26, %v1970_v16  ;;  %v4573_v52 = vsub.s32 3, %v5399_v39 }
  0xfc   : > { %v2009_v30 = vrot.slane %v1991_v42, %v4556_v43  ;;  %v2013_v59 = vrot.slane %v1991_v42, %v4559_v51  ;;  %v2017_v27 = vrot.slane %v1991_v42, %v4564_v28  ;;  %v4579_v15 = vsub.s32 4, %v5399_v39 }
  0xfd   : > { %5403 = vst [vmem:[#allocation51_spill] sm:$0xff] %v4573_v52  ;;  %v2021_v10 = vrot.slane %v1991_v42, %v4573_v52  ;;  %v4583_v11 = vsub.s32 5, %v5399_v39  ;;  %v4586_v53 = vsub.s32 6, %v5399_v39  ;;  %v4589_v34 = vsub.s32 7, %v5399_v39 }
  0xfe   : > { %v2025_v3 = vrot.slane %v1991_v42, %v4579_v15  ;;  %v2041_v20 = vrot.slane %v1992_v58, %v4556_v43  ;;  %v2045_v44 = vrot.slane %v1992_v58, %v4559_v51  ;;  %v2049_v36 = vrot.slane %v1992_v58, %v4564_v28 }
  0xff   : > { %5404 = vst [vmem:[#allocation52_spill] sm:$0xff] %v4583_v11  ;;  %5405 = vst [vmem:[#allocation53_spill] sm:$0xff] %v4586_v53  ;;  %v2029_v50 = vrot.slane %v1991_v42, %v4583_v11  ;;  %v2033_v29 = vrot.slane %v1991_v42, %v4586_v53  ;;  %v2037_v2 = vrot.slane %v1991_v42, %v4589_v34  ;;  %vm279_vm8 = vcmp.ne.s32.totalorder %v4314_v40, 4294967196 }
 0x100   : > { %5406 = vst [vmem:[#allocation54_spill] sm:$0xff] %v4589_v34  ;;  %v2053_v63 = vrot.slane %v1992_v58, %v4573_v52  ;;  %v2057_v32 = vrot.slane %v1992_v58, %v4579_v15  ;;  %v2061_v17 = vrot.slane %v1992_v58, %v4583_v11  ;;  %v2065_v38 = vrot.slane %v1992_v58, %v4586_v53 }
 0x101   : > { %v2069_v12 = vrot.slane %v1992_v58, %v4589_v34  ;;  %v2073_v14 = vrot.slane %v4566_v54, %v4556_v43  ;;  %v2077_v16 = vrot.slane %v4566_v54, %v4559_v51  ;;  %v2081_v24 = vrot.slane %v4566_v54, %v4564_v28 }
 0x102   : > { %v2085_v62 = vrot.slane %v4566_v54, %v4573_v52  ;;  %v2089_v1 = vrot.slane %v4566_v54, %v4579_v15  ;;  %v2093_v48 = vrot.slane %v4566_v54, %v4583_v11  ;;  %v2097_v31 = vrot.slane %v4566_v54, %v4586_v53 }
 0x103   : > { %v2101_v39 = vrot.slane %v4566_v54, %v4589_v34  ;;  %v2105_v0 = vrot.slane %v4568_v60, %v4556_v43  ;;  %v2109_v55 = vrot.slane %v4568_v60, %v4559_v51  ;;  %v2113_v41 = vrot.slane %v4568_v60, %v4564_v28 }
 0x104   : > { %v2117_v25 = vrot.slane %v4568_v60, %v4573_v52  ;;  %v2121_v26 = vrot.slane %v4568_v60, %v4579_v15  ;;  %v2125_v42 = vrot.slane %v4568_v60, %v4583_v11  ;;  %v2129_v58 = vrot.slane %v4568_v60, %v4586_v53 }
 0x105   : > { %v2133_v54 = vrot.slane %v4568_v60, %v4589_v34  ;;  %v2137_v56 = vrot.slane %v4570_v37, %v4556_v43  ;;  %v2141_v18 = vrot.slane %v4570_v37, %v4559_v51  ;;  %v2145_v33 = vrot.slane %v4570_v37, %v4564_v28 }
 0x106   : > { %v2149_v9 = vrot.slane %v4570_v37, %v4573_v52  ;;  %v2153_v11 = vrot.slane %v4570_v37, %v4579_v15  ;;  %v2191_v53 = vsub.f32 %v4212_v13, %v2009_v30  ;;  %v2192_v45 = vsub.f32 %v4218_v6, %v2013_v59  ;;  %v5407_v30 = vld [vmem:[#allocation27_spill] sm:$0xff]  ;;  %v5408_v59 = vld [vmem:[#allocation13_spill] sm:$0xff] }
 0x107   : > { %v2193_v60 = vsub.f32 %v4225_v23, %v2017_v27  ;;  %v2194_v34 = vsub.f32 %v4232_v19, %v2021_v10  ;;  %v2195_v43 = vsub.f32 %v4238_v4, %v2025_v3  ;;  %v2196_v51 = vsub.f32 %v4244_v21, %v2029_v50  ;;  %v5409_v27 = vld [vmem:[#allocation14_spill] sm:$0xff]  ;;  %v5410_v10 = vld [vmem:[#allocation29_spill] sm:$0xff]  ;;  %v5411_v3 = vld [vmem:[#allocation15_spill] sm:$0xff] }
 0x108   : > { %v2197_v28 = vsub.f32 %v4250_v61, %v2033_v29  ;;  %v2198_v49 = vsub.f32 %v4256_v5, %v2037_v2  ;;  %v2199_v52 = vsub.f32 %v4263_v46, %v2041_v20  ;;  %v2200_v37 = vsub.f32 %v4270_v35, %v2045_v44  ;;  %v5412_v50 = vld [vmem:[#allocation16_spill] sm:$0xff]  ;;  %v5413_v29 = vld [vmem:[#allocation17_spill] sm:$0xff]  ;;  %v5414_v2 = vld [vmem:[#allocation22_spill] sm:$0xff] }
 0x109   : > { %v2201_v13 = vsub.f32 %v4277_v7, %v2049_v36  ;;  %v2202_v6 = vsub.f32 %v5407_v30, %v2053_v63  ;;  %v2203_v23 = vsub.f32 %v5408_v59, %v2057_v32  ;;  %v2204_v19 = vsub.f32 %v5409_v27, %v2061_v17  ;;  %v5415_v20 = vld [vmem:[#allocation26_spill] sm:$0xff]  ;;  %v5416_v44 = vld [vmem:[#allocation19_spill] sm:$0xff]  ;;  %v5417_v36 = vld [vmem:[#allocation8_spill] sm:$0xff] }
 0x10a   : > { %v2205_v4 = vsub.f32 %v5410_v10, %v2065_v38  ;;  %v2206_v21 = vsub.f32 %v5411_v3, %v2069_v12  ;;  %v2207_v61 = vsub.f32 %v5412_v50, %v2073_v14  ;;  %v2208_v5 = vsub.f32 %v5413_v29, %v2077_v16  ;;  %v5418_v30 = vld [vmem:[#allocation24_spill] sm:$0xff]  ;;  %v5420_v27 = vld [vmem:[#allocation25_spill] sm:$0xff]  ;;  %v5421_v10 = vld [vmem:[#allocation43_spill] sm:$0xff] }
 0x10b   : > { %v2209_v46 = vsub.f32 %v5414_v2, %v2081_v24  ;;  %v2210_v35 = vsub.f32 %v5415_v20, %v2085_v62  ;;  %v2211_v7 = vsub.f32 %v5416_v44, %v2089_v1  ;;  %v2212_v63 = vsub.f32 %v5417_v36, %v2093_v48  ;;  %v5419_v59 = vld [vmem:[#allocation28_spill] sm:$0xff]  ;;  %v5423_v16 = vld [vmem:[#allocation39_spill] sm:$0xff]  ;;  %v5427_v1 = vld [vmem:[#allocation45_spill] sm:$0xff] }
 0x10c   : > { %v2213_v32 = vsub.f32 %v5418_v30, %v2097_v31  ;;  %v2214_v17 = vsub.f32 %v5419_v59, %v2101_v39  ;;  %v2215_v38 = vsub.f32 %v5420_v27, %v2105_v0  ;;  %v2216_v12 = vsub.f32 %v5421_v10, %v2109_v55  ;;  %v5422_v3 = vld [vmem:[#allocation44_spill] sm:$0xff]  ;;  %v5428_v31 = vld [vmem:[#allocation46_spill] sm:$0xff]  ;;  %v5430_v0 = vld [vmem:[#allocation47_spill] sm:$0xff] }
 0x10d   : > { %v2217_v14 = vsub.f32 %v5422_v3, %v2113_v41  ;;  %v5424_v24 = vcombine.low %v5423_v16, %v5423_v16  ;;  %v2218_v48 = vsub.f32 %v5427_v1, %v2117_v25  ;;  %v2219_v50 = vsub.f32 %v5428_v31, %v2121_v26  ;;  %v5429_v39 = vld [vmem:[#allocation30_spill] sm:$0xff]  ;;  %v5431_v55 = vld [vmem:[#allocation48_spill] sm:$0xff]  ;;  %v5432_v30 = vld [vmem:[#allocation31_spill] sm:$0xff] }
 0x10e   : > { %v2220_v29 = vsub.f32 %v5429_v39, %v2125_v42  ;;  %v2221_v2 = vsub.f32 %v5430_v0, %v2129_v58  ;;  %vm280_vm10 = vcmp.ne.s32.totalorder %v4330_v57, 4294967196  ;;  %v2222_v41 = vsub.f32 %v5431_v55, %v2133_v54  ;;  %v5433_v25 = vld [vmem:[#allocation49_spill] sm:$0xff]  ;;  %v5434_v54 = vld [vmem:[#allocation18_spill] sm:$0xff] }
 0x10f   : > { %vm4676_vm9 = vcmp.ne.s32.totalorder %v5424_v24, 0  ;;  %v2223_v20 = vsub.f32 %v4461_v22, %v2137_v56  ;;  %v2224_v44 = vsub.f32 %v4471_v8, %v2141_v18  ;;  %v4689_v36 = vsub.f32 %v4477_v47, %v2145_v33  ;;  %v5435_v22 = vld [vmem:[#allocation6_spill] sm:$0xff] }
 0x110   : > { %v4692_v59 = vsub.f32 %v5432_v30, %v2149_v9  ;;  %v4695_v26 = vsub.f32 %v5433_v25, %v2153_v11  ;;  %v2265_v42 = vcombine.low %v2191_v53, %v2192_v45  ;;  %v2266_v27 = vcombine.low %v2193_v60, %v2194_v34  ;;  %vm4719_vm13 = vmand %vm279_vm8, %vm4676_vm9 }
 0x111   : > { %v2267_v58 = vcombine.low %v2195_v43, %v2196_v51  ;;  %v2268_v10 = vcombine.low %v2197_v28, %v2198_v49  ;;  %v2314_v3 = vcombine.low %v2199_v52, %v2200_v37  ;;  %v2315_v24 = vcombine.low %v2201_v13, %v2202_v6  ;;  %v5436_v52 = vld [vmem:[#allocation21_spill] sm:$0xff]  ;;  %vm4727_vm14 = vmand %vm280_vm10, %vm4676_vm9 }
 0x112   : > { %vm281_vm11 = vcmp.ne.s32.totalorder %v5434_v54, 4294967196  ;;  %v2275_v56 = vrot.slane %v2265_v42, %v5435_v22  ;;  %v2282_v8 = vrot.slane %v2266_v27, %v5435_v22  ;;  %v2316_v33 = vcombine.low %v2203_v23, %v2204_v19 }
 0x113   : > { %v2317_v18 = vcombine.low %v2205_v4, %v2206_v21  ;;  %v2289_v9 = vrot.slane %v2267_v58, %v5435_v22  ;;  %v2296_v47 = vrot.slane %v2268_v10, %v5435_v22  ;;  %v2324_v11 = vrot.slane %v2314_v3, %v5435_v22  ;;  %vm4745_vm15 = vmand %vm281_vm11, %vm4676_vm9  ;;  %v5443_v58 = vld [vmem:[#allocation7_spill] sm:$0xff]  ;;  %v5444_v3 = vld [vmem:[#allocation37_spill] sm:$0xff] }
 0x114   : > { %v2331_v45 = vrot.slane %v2315_v24, %v5435_v22  ;;  %v2297_v43 = vcombine.low %v2275_v56, %v2282_v8  ;;  %v2338_v49 = vrot.slane %v2316_v33, %v5435_v22  ;;  %v2363_v28 = vcombine.low %v2207_v61, %v2208_v5 }
 0x115   : > { %v2345_v51 = vrot.slane %v2317_v18, %v5435_v22  ;;  %vm282_vm12 = vcmp.ne.s32.totalorder %v5436_v52, 4294967196  ;;  %v2298_v53 = vcombine.low %v2289_v9, %v2296_v47  ;;  %v2364_v60 = vcombine.low %v2209_v46, %v2210_v35  ;;  %v2000_v47 = vld [vmem:[#allocation2 + $0x20] sm:$0x1f] }
 0x116   : > { %v2346_v34 = vcombine.low %v2324_v11, %v2331_v45  ;;  %v2365_v37 = vcombine.low %v2211_v7, %v2212_v63  ;;  %v2305_v13 = vrot.slane %v2297_v43, %v5435_v22  ;;  %v2366_v23 = vcombine.low %v2213_v32, %v2214_v17  ;;  %vm4767_vm3 = vmand %vm282_vm12, %vm4676_vm9 }
 0x117   : > { %v2347_v6 = vcombine.low %v2338_v49, %v2345_v51  ;;  %v2373_v19 = vrot.slane %v2363_v28, %v5435_v22  ;;  %v2312_v4 = vrot.slane %v2298_v53, %v5435_v22  ;;  %v2380_v1 = vrot.slane %v2364_v60, %v5435_v22  ;;  %v5450_v49 = vld [vmem:[#allocation32_spill] sm:$0xff]  ;;  %v5451_v28 = vld [vmem:[#allocation50_spill] sm:$0xff]  ;;  %v5452_v53 = vld [vmem:[#allocation33_spill] sm:$0xff] }
 0x118   : > { %v2354_v21 = vrot.slane %v2346_v34, %v5435_v22  ;;  %v2387_v61 = vrot.slane %v2365_v37, %v5435_v22  ;;  %v2394_v31 = vrot.slane %v2366_v23, %v5435_v22  ;;  %v2412_v46 = vcombine.low %v2215_v38, %v2216_v12  ;;  %v5454_v60 = vld [vmem:[#allocation51_spill] sm:$0xff] }
 0x119   : > { %v2361_v5 = vrot.slane %v2347_v6, %v5435_v22  ;;  %v2413_v35 = vcombine.low %v2217_v14, %v2218_v48  ;;  %v2313_v63 = vcombine.low %v2305_v13, %v2312_v4  ;;  %v2395_v32 = vcombine.low %v2373_v19, %v2380_v1 }
 0x11a   : > { %v2414_v17 = vcombine.low %v2219_v50, %v2220_v29  ;;  %v2415_v39 = vcombine.low %v2221_v2, %v2222_v41  ;;  %v2396_v12 = vcombine.low %v2387_v61, %v2394_v31  ;;  %v2422_v40 = vrot.slane %v2412_v46, %v5435_v22  ;;  %v5456_v31 = vld [vmem:[#allocation53_spill] sm:$0xff] }
 0x11b   : > { %v2362_v38 = vcombine.low %v2354_v21, %v2361_v5  ;;  %v2429_v14 = vrot.slane %v2413_v35, %v5435_v22  ;;  %v2403_v48 = vrot.slane %v2395_v32, %v5435_v22  ;;  %v2461_v29 = vcombine.low %v2223_v20, %v2224_v44  ;;  %v5455_v21 = vld [vmem:[#allocation52_spill] sm:$0xff]  ;;  %v5457_v32 = vld [vmem:[#allocation54_spill] sm:$0xff] }
 0x11c   : > { %v2436_v55 = vrot.slane %v2414_v17, %v5435_v22  ;;  %v2443_v50 = vrot.slane %v2415_v39, %v5435_v22  ;;  %v2410_v2 = vrot.slane %v2396_v12, %v5435_v22  ;;  %v2462_v41 = vcombine.low %v4689_v36, %v4692_v59 }
 0x11d   : > { %v2444_v57 = vcombine.low %v2422_v40, %v2429_v14  ;;  %v2483_v30 = vrot.slane %v4695_v26, %v5435_v22  ;;  %v2469_v20 = vrot.slane %v2461_v29, %v5435_v22  ;;  %v2505_v44 = vsel %vm4719_vm13, %v2313_v63, 0.0 }
 0x11e   : > { %v2445_v42 = vcombine.low %v2436_v55, %v2443_v50  ;;  %v4754_v36 = vsel %vm4727_vm14, %v2362_v38, 0.0  ;;  %v2411_v59 = vcombine.low %v2403_v48, %v2410_v2  ;;  %v2476_v27 = vrot.slane %v2462_v41, %v5435_v22 }
 0x11f   : > { %v2452_v26 = vrot.slane %v2444_v57, %v5435_v22  ;;  %vm283_vm1 = vcmp.ne.s32.totalorder %v5443_v58, 4294967196  ;;  %v5445_v24 = vcombine.low %v5423_v16, %v5444_v3  ;;  %v2498_v8 = vrot.slane %v2483_v30, %v5435_v22 }
 0x120   : > { %v2459_v10 = vrot.slane %v2445_v42, %v5435_v22  ;;  %v2484_v56 = vcombine.low %v2469_v20, %v2476_v27  ;;  %v4774_v33 = vsel %vm4745_vm15, %v2411_v59, 0.0  ;;  %v2565_v51 = vrot.slane %v2505_v44, %v5450_v49  ;;  %v2528_v42 = vld [vmem:[#allocation3 + $0x20] sm:$0x1f] }
 0x121   : > { %vm802_vm2 = vcmp.ne.s32.totalorder %v5445_v24, 0  ;;  %v2569_v52 = vrot.slane %v2505_v44, %v5451_v28  ;;  %vm2747_vm5 = vcmask 1040384   ;;  %v2577_v37 = vrot.slane %v2505_v44, %v5454_v60 }
 0x122   : > { %v2460_v18 = vcombine.low %v2452_v26, %v2459_v10  ;;  %v2491_v9 = vrot.slane %v2484_v56, %v5435_v22  ;;  %vm4777_vm4 = vmand %vm283_vm1, %vm802_vm2  ;;  %v2573_v22 = vrot.slane %v2505_v44, %v5452_v53  ;;  %v2581_v13 = vrot.slane %v2505_v44, %v4579_v15 }
 0x123   : > { %v2748_v6 = vsel %vm2747_vm5, %v2565_v51, 0.0  ;;  %v2749_v23 = vsel %vm2747_vm5, %v2569_v52, 0.0  ;;  %v2585_v1 = vrot.slane %v2505_v44, %v5455_v21  ;;  %v2753_v61 = vsel %vm2747_vm5, %v2577_v37, 0.0 }
 0x124   : > { %v4783_v62 = vsel %vm4767_vm3, %v2460_v18, 0.0  ;;  %v2499_v11 = vcombine.low %v2491_v9, %v2498_v8  ;;  %v2751_v19 = vsel %vm2747_vm5, %v2573_v22, 0.0  ;;  %v2750_v4 = vadd.f32 %v2749_v23, %v2748_v6 }
 0x125   : > { %v2589_v46 = vrot.slane %v2505_v44, %v5456_v31  ;;  %v2755_v35 = vsel %vm2747_vm5, %v2581_v13, 0.0  ;;  %v2593_v17 = vrot.slane %v2505_v44, %v5457_v32  ;;  %v2757_v39 = vsel %vm2747_vm5, %v2585_v1, 0.0 }
 0x126   : > { %v2509_v45 = vsel %vm4777_vm4, %v2499_v11, 0.0  ;;  %v2752_v5 = vadd.f32 %v2751_v19, %v2750_v4  ;;  %v2597_v38 = vrot.slane %v4754_v36, %v5450_v49  ;;  %v5458_v48 = vmov 0.0  }
 0x127   : > { %v2514_v43 = vadd.f32 %v2509_v45, %v2000_v47  ;;  %v2759_v40 = vsel %vm2747_vm5, %v2589_v46, 0.0  ;;  %v4809_v55 = vsel %vm4719_vm13, 1.0, %v5458_v48  ;;  %v2601_v50 = vrot.slane %v4754_v36, %v5451_v28 }
 0x128   : > { %v2754_v63 = vadd.f32 %v2753_v61, %v2752_v5  ;;  %v2761_v29 = vsel %vm2747_vm5, %v2593_v17, 0.0  ;;  %v4817_v2 = vsel %vm4727_vm14, 1.0, %v5458_v48  ;;  %v2605_v57 = vrot.slane %v4754_v36, %v5452_v53 }
 0x129   : > { %2523 = vst.msk [vmem:[#allocation2 + $0x20] sm:$0x1f] %vm3509_vm0, %v2514_v43  ;;  %v2763_v30 = vsel %vm2747_vm5, %v2597_v38, 0.0  ;;  %v4825_v7 = vsel %vm4745_vm15, 1.0, %v5458_v48  ;;  %v4830_v20 = vsel %vm4767_vm3, 1.0, %v5458_v48  ;;  %v3222_v0 = vsel %vm4777_vm4, 1.0, %v5458_v48 }
 0x12a   : > { %v2756_v12 = vadd.f32 %v2755_v35, %v2754_v63  ;;  %v2609_v59 = vrot.slane %v4754_v36, %v5454_v60  ;;  %v2765_v26 = vsel %vm2747_vm5, %v2601_v50, 0.0  ;;  %v2543_v27 = vadd.f32 %v3222_v0, %v2528_v42 }
 0x12b   : > { %v2613_v25 = vrot.slane %v4754_v36, %v4579_v15  ;;  %v2767_v10 = vsel %vm2747_vm5, %v2605_v57, 0.0  ;;  %v2617_v3 = vrot.slane %v4754_v36, %v5455_v21  ;;  %v2621_v24 = vrot.slane %v4754_v36, %v5456_v31 }
 0x12c   : > { %v2758_v14 = vadd.f32 %v2757_v39, %v2756_v12  ;;  %2548 = vst.msk [vmem:[#allocation3 + $0x20] sm:$0x1f] %vm3509_vm0, %v2543_v27  ;;  %v2625_v56 = vrot.slane %v4754_v36, %v5457_v32  ;;  %v2629_v8 = vrot.slane %v4774_v33, %v5450_v49  ;;  %v2633_v18 = vrot.slane %v4774_v33, %v5451_v28 }
 0x12d   : > { %v2769_v9 = vsel %vm2747_vm5, %v2609_v59, 0.0  ;;  %v2637_v16 = vrot.slane %v4774_v33, %v5452_v53  ;;  %v2845_v11 = vrot.slane %v4809_v55, %v5450_v49  ;;  %v2849_v45 = vrot.slane %v4809_v55, %v5451_v28 }
 0x12e   : > { %v2760_v41 = vadd.f32 %v2759_v40, %v2758_v14  ;;  %v2641_v36 = vrot.slane %v4774_v33, %v5454_v60  ;;  %v2645_v43 = vrot.slane %v4774_v33, %v4579_v15  ;;  %v2649_v51 = vrot.slane %v4774_v33, %v5455_v21 }
 0x12f   : > { %v2771_v52 = vsel %vm2747_vm5, %v2613_v25, 0.0  ;;  %v2773_v34 = vsel %vm2747_vm5, %v2617_v3, 0.0  ;;  %v2775_v37 = vsel %vm2747_vm5, %v2621_v24, 0.0  ;;  %v2853_v13 = vrot.slane %v4809_v55, %v5452_v53 }
 0x130   : > { %v2762_v44 = vadd.f32 %v2761_v29, %v2760_v41  ;;  %v2777_v6 = vsel %vm2747_vm5, %v2625_v56, 0.0  ;;  %v2779_v23 = vsel %vm2747_vm5, %v2629_v8, 0.0  ;;  %v2781_v19 = vsel %vm2747_vm5, %v2633_v18, 0.0 }
 0x131   : > { %v2857_v4 = vrot.slane %v4809_v55, %v5454_v60  ;;  %v2783_v61 = vsel %vm2747_vm5, %v2637_v16, 0.0  ;;  %v3027_v5 = vsel %vm2747_vm5, %v2845_v11, 0.0  ;;  %v3028_v46 = vsel %vm2747_vm5, %v2849_v45, 0.0 }
 0x132   : > { %v2764_v58 = vadd.f32 %v2763_v30, %v2762_v44  ;;  %v2785_v35 = vsel %vm2747_vm5, %v2641_v36, 0.0  ;;  %v2861_v63 = vrot.slane %v4809_v55, %v4579_v15  ;;  %v2865_v17 = vrot.slane %v4809_v55, %v5455_v21 }
 0x133   : > { %v2869_v39 = vrot.slane %v4809_v55, %v5456_v31  ;;  %v2873_v12 = vrot.slane %v4809_v55, %v5457_v32  ;;  %v3029_v40 = vadd.f32 %v3028_v46, %v3027_v5  ;;  %v3030_v14 = vsel %vm2747_vm5, %v2853_v13, 0.0 }
 0x134   : > { %v2766_v54 = vadd.f32 %v2765_v26, %v2764_v58  ;;  %v2877_v48 = vrot.slane %v4817_v2, %v5450_v49  ;;  %v2881_v50 = vrot.slane %v4817_v2, %v5451_v28  ;;  %v2929_v29 = vrot.slane %v4825_v7, %v5455_v21 }
 0x135   : > { %v3032_v57 = vsel %vm2747_vm5, %v2857_v4, 0.0  ;;  %v2933_v30 = vrot.slane %v4825_v7, %v5456_v31  ;;  %v2937_v55 = vrot.slane %v4825_v7, %v5457_v32  ;;  %v3031_v42 = vadd.f32 %v3030_v14, %v3029_v40 }
 0x136   : > { %v2768_v47 = vadd.f32 %v2767_v10, %v2766_v54  ;;  %v2941_v0 = vrot.slane %v4830_v20, %v5450_v49  ;;  %v2945_v44 = vrot.slane %v4830_v20, %v5451_v28  ;;  %v2949_v59 = vrot.slane %v4830_v20, %v5452_v53 }
 0x137   : > { %v3034_v26 = vsel %vm2747_vm5, %v2861_v63, 0.0  ;;  %v2953_v58 = vrot.slane %v4830_v20, %v5454_v60  ;;  %v2957_v25 = vrot.slane %v4830_v20, %v4579_v15  ;;  %v3033_v10 = vadd.f32 %v3032_v57, %v3031_v42 }
 0x138   : > { %v2770_v22 = vadd.f32 %v2769_v9, %v2768_v47  ;;  %v2961_v3 = vrot.slane %v4830_v20, %v5455_v21  ;;  %v2965_v24 = vrot.slane %v4830_v20, %v5456_v31  ;;  %v2969_v54 = vrot.slane %v4830_v20, %v5457_v32 }
 0x139   : > { %v3036_v56 = vsel %vm2747_vm5, %v2865_v17, 0.0  ;;  %v3035_v18 = vadd.f32 %v3034_v26, %v3033_v10  ;;  %v3038_v9 = vsel %vm2747_vm5, %v2869_v39, 0.0  ;;  %v3040_v16 = vsel %vm2747_vm5, %v2873_v12, 0.0 }
 0x13a   : > { %v2772_v1 = vadd.f32 %v2771_v52, %v2770_v22  ;;  %v4921_v47 = vsel %vm2747_vm5, %v2929_v29, 0.0  ;;  %v4924_v11 = vsel %vm2747_vm5, %v2933_v30, 0.0  ;;  %v4927_v45 = vsel %vm2747_vm5, %v2937_v55, 0.0 }
 0x13b   : > { %v4930_v36 = vsel %vm2747_vm5, %v2941_v0, 0.0  ;;  %v3037_v52 = vadd.f32 %v3036_v56, %v3035_v18  ;;  %v4933_v22 = vsel %vm2747_vm5, %v2945_v44, 0.0  ;;  %v4942_v13 = vsel %vm2747_vm5, %v2957_v25, 0.0 }
 0x13c   : > { %v2774_v38 = vadd.f32 %v2773_v34, %v2772_v1  ;;  %v4936_v34 = vsel %vm2747_vm5, %v2949_v59, 0.0  ;;  %v4951_v1 = vsel %vm2747_vm5, %v2969_v54, 0.0  ;;  %v2653_v5 = vrot.slane %v4774_v33, %v5456_v31 }
 0x13d   : > { %v3039_v4 = vadd.f32 %v3038_v9, %v3037_v52  ;;  %v2787_v46 = vsel %vm2747_vm5, %v2645_v43, 0.0  ;;  %v2885_v63 = vrot.slane %v4817_v2, %v5452_v53  ;;  %v3042_v17 = vsel %vm2747_vm5, %v2877_v48, 0.0 }
 0x13e   : > { %v2776_v41 = vadd.f32 %v2775_v37, %v2774_v38  ;;  %v4939_v37 = vsel %vm2747_vm5, %v2953_v58, 0.0  ;;  %v2789_v12 = vsel %vm2747_vm5, %v2649_v51, 0.0  ;;  %v2889_v40 = vrot.slane %v4817_v2, %v5454_v60 }
 0x13f   : > { %v3041_v38 = vadd.f32 %v3040_v16, %v3039_v4  ;;  %v3044_v43 = vsel %vm2747_vm5, %v2881_v50, 0.0  ;;  %v2661_v48 = vrot.slane %v4783_v62, %v5450_v49  ;;  %v2893_v57 = vrot.slane %v4817_v2, %v4579_v15 }
 0x140   : > { %v2778_v27 = vadd.f32 %v2777_v6, %v2776_v41  ;;  %v4945_v6 = vsel %vm2747_vm5, %v2961_v3, 0.0  ;;  %v3046_v41 = vsel %vm2747_vm5, %v2885_v63, 0.0  ;;  %v2665_v51 = vrot.slane %v4783_v62, %v5451_v28 }
 0x141   : > { %v3043_v29 = vadd.f32 %v3042_v17, %v3041_v38  ;;  %v2897_v50 = vrot.slane %v4817_v2, %v5455_v21  ;;  %v3048_v42 = vsel %vm2747_vm5, %v2889_v40, 0.0  ;;  %v2669_v59 = vrot.slane %v4783_v62, %v5452_v53 }
 0x142   : > { %v2780_v8 = vadd.f32 %v2779_v23, %v2778_v27  ;;  %v4948_v23 = vsel %vm2747_vm5, %v2965_v24, 0.0  ;;  %v2795_v26 = vsel %vm2747_vm5, %v2661_v48, 0.0  ;;  %v2901_v27 = vrot.slane %v4817_v2, %v5456_v31 }
 0x143   : > { %v3045_v30 = vadd.f32 %v3044_v43, %v3043_v29  ;;  %v3050_v58 = vsel %vm2747_vm5, %v2893_v57, 0.0  ;;  %v2673_v3 = vrot.slane %v4783_v62, %v5454_v60  ;;  %v2797_v24 = vsel %vm2747_vm5, %v2665_v51, 0.0 }
 0x144   : > { %v2782_v20 = vadd.f32 %v2781_v19, %v2780_v8  ;;  %v2905_v54 = vrot.slane %v4817_v2, %v5457_v32  ;;  %v3052_v56 = vsel %vm2747_vm5, %v2897_v50, 0.0  ;;  %v2677_v9 = vrot.slane %v4783_v62, %v4579_v15 }
 0x145   : > { %v3047_v44 = vadd.f32 %v3046_v41, %v3045_v30  ;;  %v2799_v16 = vsel %vm2747_vm5, %v2669_v59, 0.0  ;;  %v3054_v52 = vsel %vm2747_vm5, %v2901_v27, 0.0  ;;  %v2801_v2 = vsel %vm2747_vm5, %v2673_v3, 0.0 }
 0x146   : > { %v2784_v19 = vadd.f32 %v2783_v61, %v2782_v20  ;;  %v2657_v61 = vrot.slane %v4774_v33, %v5457_v32  ;;  %v2909_v20 = vrot.slane %v4825_v7, %v5450_v49  ;;  %v3056_v63 = vsel %vm2747_vm5, %v2905_v54, 0.0 }
 0x147   : > { %v3049_v10 = vadd.f32 %v3048_v42, %v3047_v44  ;;  %v2685_v38 = vrot.slane %v4783_v62, %v5456_v31  ;;  %v2689_v29 = vrot.slane %v4783_v62, %v5457_v32  ;;  %v2925_v51 = vrot.slane %v4825_v7, %v4579_v15 }
 0x148   : > { %v2786_v39 = vadd.f32 %v2785_v35, %v2784_v19  ;;  %v2791_v35 = vsel %vm2747_vm5, %v2653_v5, 0.0  ;;  %v2793_v55 = vsel %vm2747_vm5, %v2657_v61, 0.0  ;;  %v2681_v5 = vrot.slane %v4783_v62, %v5455_v21  ;;  %v2556_v21 = vld [vmem:[#allocation2 + $0x20] sm:$0x1f] }
 0x149   : > { %v3051_v18 = vadd.f32 %v3050_v58, %v3049_v10  ;;  %v2803_v61 = vsel %vm2747_vm5, %v2677_v9, 0.0  ;;  %v3058_v40 = vsel %vm2747_vm5, %v2909_v20, 0.0  ;;  %v2807_v30 = vsel %vm2747_vm5, %v2685_v38, 0.0 }
 0x14a   : > { %v2788_v14 = vadd.f32 %v2787_v46, %v2786_v39  ;;  %v2913_v46 = vrot.slane %v4825_v7, %v5451_v28  ;;  %v2805_v48 = vsel %vm2747_vm5, %v2681_v5, 0.0  ;;  %v2697_v32 = vrot.slane %v2556_v21, %v5451_v28 }
 0x14b   : > { %v3053_v4 = vadd.f32 %v3052_v56, %v3051_v18  ;;  %v2809_v42 = vsel %vm2747_vm5, %v2689_v29, 0.0  ;;  %v3066_v58 = vsel %vm2747_vm5, %v2925_v51, 0.0  ;;  %v2705_v10 = vrot.slane %v2556_v21, %v5454_v60 }
 0x14c   : > { %v2790_v33 = vadd.f32 %v2789_v12, %v2788_v14  ;;  %v2917_v12 = vrot.slane %v4825_v7, %v5452_v53  ;;  %v3060_v31 = vsel %vm2747_vm5, %v2913_v46, 0.0  ;;  %v2813_v3 = vsel %vm2747_vm5, %v2697_v32, 0.0 }
 0x14d   : > { %v3055_v39 = vadd.f32 %v3054_v52, %v3053_v4  ;;  %v2709_v56 = vrot.slane %v2556_v21, %v4579_v15 }
 0x14e   : > { %v2792_v0 = vadd.f32 %v2791_v35, %v2790_v33  ;;  %v2921_v35 = vrot.slane %v4825_v7, %v5454_v60  ;;  %v2693_v33 = vrot.slane %v2556_v21, %v5450_v49 }
 0x14f   : > { %v3057_v14 = vadd.f32 %v3056_v63, %v3055_v39  ;;  %v2836_v39 = vld [vmem:[#allocation3 + $0x20] sm:$0x1f] }
 0x150   : > { %v2794_v25 = vadd.f32 %v2793_v55, %v2792_v0  ;;  %v3062_v55 = vsel %vm2747_vm5, %v2917_v12, 0.0  ;;  %v3064_v0 = vsel %vm2747_vm5, %v2921_v35, 0.0  ;;  %v2811_v27 = vsel %vm2747_vm5, %v2693_v33, 0.0 }
 0x151   : > { %v3059_v41 = vadd.f32 %v3058_v40, %v3057_v14  ;;  %v2977_v12 = vrot.slane %v2836_v39, %v5451_v28 }
 0x152   : > { %v2796_v8 = vadd.f32 %v2795_v26, %v2794_v25  ;;  %v2701_v26 = vrot.slane %v2556_v21, %v5452_v53 }
 0x153   : > { %v3061_v62 = vadd.f32 %v3060_v31, %v3059_v41 }
 0x154   : > { %v2798_v19 = vadd.f32 %v2797_v24, %v2796_v8  ;;  %v2815_v8 = vsel %vm2747_vm5, %v2701_v26, 0.0 }
 0x155   : > { %v3063_v59 = vadd.f32 %v3062_v55, %v3061_v62 }
 0x156   : > { %v2800_v17 = vadd.f32 %v2799_v16, %v2798_v19  ;;  %v2817_v16 = vsel %vm2747_vm5, %v2705_v10, 0.0  ;;  %v2819_v19 = vsel %vm2747_vm5, %v2709_v56, 0.0 }
 0x157   : > { %v3065_v7 = vadd.f32 %v3064_v0, %v3063_v59 }
 0x158   : > { %v2802_v43 = vadd.f32 %v2801_v2, %v2800_v17 }
 0x159   : > { %v3067_v54 = vadd.f32 %v3066_v58, %v3065_v7 }
 0x15a   : > { %v2804_v57 = vadd.f32 %v2803_v61, %v2802_v43 }
 0x15b   : > { %v3069_v9 = vadd.f32 %v4921_v47, %v3067_v54 }
 0x15c   : > { %v2806_v50 = vadd.f32 %v2805_v48, %v2804_v57 }
 0x15d   : > { %v3071_v52 = vadd.f32 %v4924_v11, %v3069_v9  ;;  %v2973_v11 = vrot.slane %v2836_v39, %v5450_v49 }
 0x15e   : > { %v2808_v44 = vadd.f32 %v2807_v30, %v2806_v50 }
 0x15f   : > { %v3073_v5 = vadd.f32 %v4927_v45, %v3071_v52  ;;  %v3090_v40 = vsel %vm2747_vm5, %v2973_v11, 0.0 }
 0x160   : > { %v2810_v25 = vadd.f32 %v2809_v42, %v2808_v44 }
 0x161   : > { %v3075_v46 = vadd.f32 %v4930_v36, %v3073_v5  ;;  %v2981_v36 = vrot.slane %v2836_v39, %v5452_v53 }
 0x162   : > { %v2812_v24 = vadd.f32 %v2811_v27, %v2810_v25 }
 0x163   : > { %v3077_v63 = vadd.f32 %v4933_v22, %v3075_v46  ;;  %v3094_v49 = vsel %vm2747_vm5, %v2981_v36, 0.0 }
 0x164   : > { %v2814_v18 = vadd.f32 %v2813_v3, %v2812_v24 }
 0x165   : > { %v3079_v17 = vadd.f32 %v4936_v34, %v3077_v63  ;;  %v2985_v34 = vrot.slane %v2836_v39, %v5454_v60 }
 0x166   : > { %v2816_v20 = vadd.f32 %v2815_v8, %v2814_v18 }
 0x167   : > { %v3081_v47 = vadd.f32 %v4939_v37, %v3079_v17  ;;  %v3092_v37 = vsel %vm2747_vm5, %v2977_v12, 0.0  ;;  %v3096_v28 = vsel %vm2747_vm5, %v2985_v34, 0.0 }
 0x168   : > { %v2818_v4 = vadd.f32 %v2817_v16, %v2816_v20 }
 0x169   : > { %v3083_v38 = vadd.f32 %v4942_v13, %v3081_v47  ;;  %v2989_v13 = vrot.slane %v2836_v39, %v4579_v15 }
 0x16a   : > { %v2820_v2 = vadd.f32 %v2819_v19, %v2818_v4 }
 0x16b   : > { %v3085_v61 = vadd.f32 %v4945_v6, %v3083_v38 }
 0x16c   : > { %2821 = vadd.xlane.f32.xlu0 %v2820_v2 }
 0x16d   : > { %v3087_v45 = vadd.f32 %v4948_v23, %v3085_v61  ;;  %v3098_v23 = vsel %vm2747_vm5, %v2989_v13, 0.0 }
 0x16f   : > { %v3089_v22 = vadd.f32 %v4951_v1, %v3087_v45 }
 0x171   : > { %v3091_v21 = vadd.f32 %v3090_v40, %v3089_v22 }
 0x173   : > { %v3093_v6 = vadd.f32 %v3092_v37, %v3091_v21 }
 0x175   : > { %v3095_v43 = vadd.f32 %v3094_v49, %v3093_v6 }
 0x177   : > { %v3097_v53 = vadd.f32 %v3096_v28, %v3095_v43 }
 0x179   : > { %v3099_v14 = vadd.f32 %v3098_v23, %v3097_v53 }
 0x17b   : > { %3100 = vadd.xlane.f32.xlu0 %v3099_v14 }
 0x1f9   : > { %v2822_v29 = vpop.xlane.xlu0 %2821 }
 0x1fa   : > { %v2823_v1 = vrot.slane %v2822_v29, 4 }
 0x1fc   : > { %v2824_v60 = vadd.f32 %v2823_v1, %v2822_v29 }
 0x1fe   : > { %v2825_v48 = vrot.slane %v2824_v60, 2 }
 0x200   : > { %v2826_v35 = vadd.f32 %v2825_v48, %v2824_v60 }
 0x202   : > { %v2827_v31 = vrot.slane %v2826_v35, 1 }
 0x204   : > { %v2828_v15 = vadd.f32 %v2827_v31, %v2826_v35 }
 0x206   : > { %3227 = vpush %v2828_v15 }
 0x208   : > { %v3101_v57 = vpop.xlane.xlu0 %3100 }
 0x209   : > { %v3102_v41 = vrot.slane %v3101_v57, 4 }
 0x20b   : > { %v3103_v33 = vadd.f32 %v3102_v41, %v3101_v57 }
 0x20d   : > { %v3104_v30 = vrot.slane %v3103_v33, 2 }
 0x20f   : > { %v3105_v51 = vadd.f32 %v3104_v30, %v3103_v33 }
 0x211   : > { %v3106_v55 = vrot.slane %v3105_v51, 1 }
 0x213   : > { %v3107_v50 = vadd.f32 %v3106_v55, %v3105_v51 }
 0x215   : > { %3229 = vpush %v3107_v50 }
 0x237   : > { %s3228_s27 = spop %3227 }
 0x238   : > { %v2830_v62 = vstv %s3228_s27 }
 0x239   : > { %2831 = vst [vmem:[%s233_s26] sm:$0x1] %v2830_v62 }
 0x246   : > { %s3230_s4 = spop %3229 }
 0x247   : > { %v3109_v32 = vstv %s3230_s4 }
 0x248   : > { %3110 = vst [vmem:[%s236_s30] sm:$0x1] %v3109_v32 }
 0x249 PF: > { %s14_s14 = sadd.s32 1, %s3463_s14   ;;  %s5459_s12 = smov %s3459_s13 }
 0x24a   : > { %p11_p5 = scmp.ge.s32.totalorder %s14_s14, 4   ;;  %s5460_s13 = smov %s5462_s15 }
 0x24c   :  { %13 = sbr.rel (!%p11_p5) target bundleno = 2 (0x2), region = 81 }

</bundles_post_ra>
